<compile_context>
chip_gen: v7x
topology: tpu7x:2x2x1
jax: 0.10.0
libtpu: 0.0.40
codegen_flags: <defaults>
</compile_context>

<pallas_src>
import functools

import jax
import jax.numpy as jnp
from jax.experimental import pallas as pl
from jax.experimental.pallas import tpu as pltpu

# ----------------------- small BERT-like config -----------------------------
VOCAB = 100
TYPE_VOCAB = 2
MAX_POS = 16
HIDDEN = 32
HEADS = 2
HEAD_DIM = HIDDEN // HEADS
FFN = 64
LAYERS = 2
SEQ = 8
BATCH = 2
LN_EPS = 1e-12
NEG_INF = -1e9

# Row indices inside the stacked per-layer vector operand `vecs` (LAYERS, 6, H).
_BO, _LN1G, _LN1B, _B2, _LN2G, _LN2B = range(6)


# ----------------------------- kernel helpers --------------------------------
def _layernorm(x, g, b):
    # x: (N, H) f32, g/b: (1, H) f32
    mu = jnp.mean(x, axis=-1, keepdims=True)
    var = jnp.mean((x - mu) ** 2, axis=-1, keepdims=True)
    return (x - mu) * jax.lax.rsqrt(var + LN_EPS) * g + b


# --------------------------- fused encoder kernel -----------------------------
def simcse_encoder_kernel(emb_ref, bias_ref, emb_ln_ref,
                          wqkv_ref, bqkv_ref, wo_ref, w1_ref, b1_ref, w2_ref,
                          vecs_ref, pool_w_ref, pool_b_ref, o_ref, *, gb):
    """gb = (num_branches * batch) examples, all folded into the row axis."""
    S, H, HD = SEQ, HIDDEN, HEAD_DIM
    N = gb * S
    bf16 = jnp.bfloat16

    # ---- embeddings (pre-flattened to (N, H) in the wrapper) + embedding LN ----
    x = emb_ref[...]                                               # (N, H) f32
    x = _layernorm(x, emb_ln_ref[0:1], emb_ln_ref[1:2])

    # additive key mask, built once in the wrapper and reused by every layer
    bias = bias_ref[...]                                           # (gb, S) f32

    # ---- transformer layers (statically unrolled; weights resident in VMEM) ----
    for l in range(LAYERS):
        wqkv = wqkv_ref[l]                                         # (H, 3H) bf16
        wo = wo_ref[l]                                             # (H, H)  bf16
        vecs = vecs_ref[l]                                         # (6, H)  f32

        # fused Q/K/V projection: one MXU matmul; the 1/sqrt(HD) attention scale
        # is already folded into the Q columns of wqkv at parameter-init time.
        qkv = jnp.dot(x.astype(bf16), wqkv,
                      preferred_element_type=jnp.float32) + bqkv_ref[l]  # (N, 3H)
        qkv = qkv.astype(bf16).reshape(gb, S, 3 * H)               # cast ONCE

        # attention, batched over all gb examples at once
        # TODO(synk): a single rank-4 two-batch-dim einsum ('bqhd,bkhd->bhqk')
        # would also fuse the 2-head loop, but its Mosaic dot_general lowering
        # is not guaranteed at this JAX version; HEADS=2 static unroll kept.
        ctx_heads = []
        for h in range(HEADS):
            qh = qkv[:, :, h * HD:(h + 1) * HD]                    # (gb, S, HD) bf16
            kh = qkv[:, :, H + h * HD:H + (h + 1) * HD]
            vh = qkv[:, :, 2 * H + h * HD:2 * H + (h + 1) * HD]

            s = jnp.einsum('bqd,bkd->bqk', qh, kh,
                           preferred_element_type=jnp.float32)     # (gb, S, S)
            s = s + bias[:, None, :]
            s = s - jnp.max(s, axis=-1, keepdims=True)
            p = jnp.exp(s)
            p = p / jnp.sum(p, axis=-1, keepdims=True)             # exact softmax
            ctx_heads.append(jnp.einsum('bqk,bkd->bqd', p.astype(bf16), vh,
                                        preferred_element_type=jnp.float32))

        # concat heads along the lane axis -> ONE full-width output projection
        ctx = jnp.concatenate(ctx_heads, axis=-1).reshape(N, H)    # (N, H) f32
        attn = jnp.dot(ctx.astype(bf16), wo,
                       preferred_element_type=jnp.float32) + vecs[_BO:_BO + 1]
        h1 = _layernorm(x + attn, vecs[_LN1G:_LN1G + 1], vecs[_LN1B:_LN1B + 1])

        # feed-forward
        ff = jnp.dot(h1.astype(bf16), w1_ref[l],
                     preferred_element_type=jnp.float32) + b1_ref[l]
        # TODO(synk): HuggingFace BERT uses exact erf GELU; tanh approximation here.
        ff = jax.nn.gelu(ff, approximate=True)
        ff = jnp.dot(ff.astype(bf16), w2_ref[l],
                     preferred_element_type=jnp.float32) + vecs[_B2:_B2 + 1]
        x = _layernorm(h1 + ff, vecs[_LN2G:_LN2G + 1], vecs[_LN2B:_LN2B + 1])

    # ---- BERT pooler on the [CLS] row of each example (the `[1]` output) ----
    cls = x.reshape(gb, S, H)[:, 0, :]                             # (gb, H)
    pooled = jnp.tanh(jnp.dot(cls.astype(bf16), pool_w_ref[...],
                              preferred_element_type=jnp.float32)
                      + pool_b_ref[...])
    o_ref[...] = pooled                                            # one lane-dense store


# --------------------------- pallas_call wrapper -------------------------------
def bert_encode_batched(params, input_ids, token_type_ids, attention_mask):
    """Pooler outputs for a stack of SimCSE branches, all in ONE pallas_call.

    input_ids / token_type_ids / attention_mask: (G, B, S) int32
    returns: (G, B, H) float32  (== `self.model(...)[1]` per branch)
    """
    G, B, S = input_ids.shape
    GB = G * B

    # embedding gathers stay in JAX glue (no clean Pallas gather at this size);
    # rows are pre-flattened so the kernel sees a clean (GB*S, H) slab.
    emb = (jnp.take(params['tok_emb'], input_ids, axis=0)
           + params['pos_emb'][:S][None, None, :, :]
           + jnp.take(params['type_emb'], token_type_ids, axis=0)
           ).astype(jnp.float32).reshape(GB * S, HIDDEN)           # (N, H)
    attn_bias = ((1.0 - attention_mask.astype(jnp.float32)) * NEG_INF
                 ).reshape(GB, S)                                  # (GB, S)

    z2 = lambda g: (0, 0)
    z3 = lambda g: (0, 0, 0)
    in_specs = [
        pl.BlockSpec((GB * S, HIDDEN), z2),                        # embeddings (rows flat)
        pl.BlockSpec((GB, S), z2),                                 # additive key mask
        pl.BlockSpec((2, HIDDEN), z2),                             # emb LN [gamma; beta]
        pl.BlockSpec((LAYERS, HIDDEN, 3 * HIDDEN), z3),            # wqkv (bf16, Q pre-scaled)
        pl.BlockSpec((LAYERS, 1, 3 * HIDDEN), z3),                 # bqkv
        pl.BlockSpec((LAYERS, HIDDEN, HIDDEN), z3),                # wo   (bf16)
        pl.BlockSpec((LAYERS, HIDDEN, FFN), z3),                   # w1   (bf16)
        pl.BlockSpec((LAYERS, 1, FFN), z3),                        # b1
        pl.BlockSpec((LAYERS, FFN, HIDDEN), z3),                   # w2   (bf16)
        pl.BlockSpec((LAYERS, 6, HIDDEN), z3),                     # [bo,ln1g,ln1b,b2,ln2g,ln2b]
        pl.BlockSpec((HIDDEN, HIDDEN), z2),                        # pool_w (bf16)
        pl.BlockSpec((1, HIDDEN), z2),                             # pool_b
    ]
    # NOTE: VMEM footprint is a few hundred KB at this toy config, so defaults
    # are fine.  At real BERT dims (H=768, FFN=3072, 12 layers) the stacked
    # resident-weight design must be replaced by per-layer weight streaming on
    # a trailing "arbitrary" grid axis (weights exceed even 128 MiB VMEM).
    pooled = pl.pallas_call(
        functools.partial(simcse_encoder_kernel, gb=GB),
        out_shape=jax.ShapeDtypeStruct((GB, HIDDEN), jnp.float32),
        grid=(1,),                                                 # branches folded into rows
        in_specs=in_specs,
        out_specs=pl.BlockSpec((GB, HIDDEN), z2),
        compiler_params=pltpu.CompilerParams(
            dimension_semantics=("arbitrary",)),
    )(emb, attn_bias, params['emb_ln'], params['wqkv'], params['bqkv'],
      params['wo'], params['w1'], params['b1'], params['w2'], params['vecs'],
      params['pool_w'], params['pool_b'])
    return pooled.reshape(G, B, HIDDEN)


bert_encode_batched_jit = jax.jit(bert_encode_batched)


# ------------------------- parameters ------------------------------------------
def init_params(key):
    keys = jax.random.split(key, 8)

    def nrm(k, shape, dtype=jnp.bfloat16):
        return (jax.random.normal(k, shape, jnp.float32) * 0.02).astype(dtype)

    vecs = jnp.zeros((LAYERS, 6, HIDDEN), jnp.float32)
    vecs = vecs.at[:, _LN1G, :].set(1.0).at[:, _LN2G, :].set(1.0)  # LN gammas = 1

    emb_ln = jnp.concatenate([jnp.ones((1, HIDDEN), jnp.float32),
                              jnp.zeros((1, HIDDEN), jnp.float32)], axis=0)

    # Fold the 1/sqrt(HEAD_DIM) attention scale into the Q columns of wqkv (and
    # its bias) once at init time — removes a (gb,S,S) multiply per head/layer.
    scale = 1.0 / (HEAD_DIM ** 0.5)
    wqkv = jax.random.normal(keys[3], (LAYERS, HIDDEN, 3 * HIDDEN), jnp.float32) * 0.02
    wqkv = wqkv.at[:, :, :HIDDEN].multiply(scale)
    bqkv = jnp.zeros((LAYERS, 1, 3 * HIDDEN), jnp.float32)
    bqkv = bqkv.at[:, :, :HIDDEN].multiply(scale)  # no-op for zero init; kept for clarity

    return {
        'tok_emb': nrm(keys[0], (VOCAB, HIDDEN), jnp.float32),
        'pos_emb': nrm(keys[1], (MAX_POS, HIDDEN), jnp.float32),
        'type_emb': nrm(keys[2], (TYPE_VOCAB, HIDDEN), jnp.float32),
        'emb_ln': emb_ln,
        'wqkv': wqkv.astype(jnp.bfloat16),
        'bqkv': bqkv,
        'wo': nrm(keys[4], (LAYERS, HIDDEN, HIDDEN)),
        'w1': nrm(keys[5], (LAYERS, HIDDEN, FFN)),
        'b1': jnp.zeros((LAYERS, 1, FFN), jnp.float32),
        'w2': nrm(keys[6], (LAYERS, FFN, HIDDEN)),
        'vecs': vecs,
        'pool_w': nrm(keys[7], (HIDDEN, HIDDEN)),
        'pool_b': jnp.zeros((1, HIDDEN), jnp.float32),
    }


# ------------------------- SimCSE forward ---------------------------------------
def simcse_forward(params, inputs, mode):
    names = (('anchor', 'positive', 'negative') if mode == 'train'
             else ('sentence_1', 'sentence_2'))
    # all branches share weights -> stack them and run ONE fused encoder call
    ids = jnp.stack([inputs[n]['source'] for n in names])          # (G, B, S)
    segs = jnp.stack([inputs[n]['segment_ids'] for n in names])
    mask = jnp.stack([inputs[n]['valid_length'] for n in names])
    pooled = bert_encode_batched_jit(params, ids, segs, mask)      # (G, B, H)
    return tuple(pooled[i] for i in range(len(names)))


# ---------------------------------- main ----------------------------------------
if __name__ == "__main__":
    key = jax.random.PRNGKey(0)
    pkey, dkey = jax.random.split(key)
    params = init_params(pkey)

    def make_branch(k):
        k1, k2 = jax.random.split(k)
        ids = jax.random.randint(k1, (BATCH, SEQ), 0, VOCAB, dtype=jnp.int32)
        segs = jnp.zeros((BATCH, SEQ), jnp.int32)
        # valid_length is used as the attention mask in the original forward.
        lengths = jax.random.randint(k2, (BATCH, 1), SEQ // 2, SEQ + 1)
        mask = (jnp.arange(SEQ)[None, :] < lengths).astype(jnp.int32)
        return {'source': ids, 'segment_ids': segs, 'valid_length': mask}

    ka, kp, kn = jax.random.split(dkey, 3)
    inputs = {'anchor': make_branch(ka),
              'positive': make_branch(kp),
              'negative': make_branch(kn)}

    anchor, positive, negative = simcse_forward(params, inputs, 'train')
    jax.block_until_ready((anchor, positive, negative))
    assert anchor.shape == (BATCH, HIDDEN)
    assert positive.shape == (BATCH, HIDDEN)
    assert negative.shape == (BATCH, HIDDEN)
    print("KERNEL_OK")
</pallas_src>

<mosaic_0001>
module attributes {stable_mosaic.version = 11 : i64} {
  func.func @simcse_encoder_kernel(%arg0: i32, %arg1: memref<48x32xf32, #tpu.memory_space<vmem>>, %arg2: memref<6x8xf32, #tpu.memory_space<vmem>>, %arg3: memref<2x32xf32, #tpu.memory_space<vmem>>, %arg4: memref<2x32x96xbf16, #tpu.memory_space<vmem>>, %arg5: memref<2x1x96xf32, #tpu.memory_space<vmem>>, %arg6: memref<2x32x32xbf16, #tpu.memory_space<vmem>>, %arg7: memref<2x32x64xbf16, #tpu.memory_space<vmem>>, %arg8: memref<2x1x64xf32, #tpu.memory_space<vmem>>, %arg9: memref<2x64x32xbf16, #tpu.memory_space<vmem>>, %arg10: memref<2x6x32xf32, #tpu.memory_space<vmem>>, %arg11: memref<32x32xbf16, #tpu.memory_space<vmem>>, %arg12: memref<1x32xf32, #tpu.memory_space<vmem>>, %arg13: memref<6x32xf32, #tpu.memory_space<vmem>>) attributes {dimension_semantics = [#tpu.dimension_semantics<arbitrary>], iteration_bounds = array<i64: 1>, scalar_prefetch = 0 : i64, scratch_operands = 0 : i64, tpu.core_type = #tpu.core_type<tc>, window_params = [{pipeline_mode = #tpu.pipeline_mode<synchronous>, transform_indices = @transform_0, window_bounds = array<i64: 48, 32>}, {pipeline_mode = #tpu.pipeline_mode<synchronous>, transform_indices = @transform_1, window_bounds = array<i64: 6, 8>}, {pipeline_mode = #tpu.pipeline_mode<synchronous>, transform_indices = @transform_2, window_bounds = array<i64: 2, 32>}, {pipeline_mode = #tpu.pipeline_mode<synchronous>, transform_indices = @transform_3, window_bounds = array<i64: 2, 32, 96>}, {pipeline_mode = #tpu.pipeline_mode<synchronous>, transform_indices = @transform_4, window_bounds = array<i64: 2, 1, 96>}, {pipeline_mode = #tpu.pipeline_mode<synchronous>, transform_indices = @transform_5, window_bounds = array<i64: 2, 32, 32>}, {pipeline_mode = #tpu.pipeline_mode<synchronous>, transform_indices = @transform_6, window_bounds = array<i64: 2, 32, 64>}, {pipeline_mode = #tpu.pipeline_mode<synchronous>, transform_indices = @transform_7, window_bounds = array<i64: 2, 1, 64>}, {pipeline_mode = #tpu.pipeline_mode<synchronous>, transform_indices = @transform_8, window_bounds = array<i64: 2, 64, 32>}, {pipeline_mode = #tpu.pipeline_mode<synchronous>, transform_indices = @transform_9, window_bounds = array<i64: 2, 6, 32>}, {pipeline_mode = #tpu.pipeline_mode<synchronous>, transform_indices = @transform_10, window_bounds = array<i64: 32, 32>}, {pipeline_mode = #tpu.pipeline_mode<synchronous>, transform_indices = @transform_11, window_bounds = array<i64: 1, 32>}, {pipeline_mode = #tpu.pipeline_mode<synchronous>, transform_indices = @transform_12, window_bounds = array<i64: 6, 32>}]} {
    %c0 = arith.constant 0 : index
    %c0_0 = arith.constant 0 : index
    %0 = vector.load %arg1[%c0, %c0_0] : memref<48x32xf32, #tpu.memory_space<vmem>>, vector<48x32xf32>
    %c0_1 = arith.constant 0 : index
    %c0_2 = arith.constant 0 : index
    %1 = vector.load %arg3[%c0_1, %c0_2] : memref<2x32xf32, #tpu.memory_space<vmem>>, vector<1x32xf32>
    %c1 = arith.constant 1 : index
    %c0_3 = arith.constant 0 : index
    %2 = vector.load %arg3[%c1, %c0_3] : memref<2x32xf32, #tpu.memory_space<vmem>>, vector<1x32xf32>
    %cst = arith.constant dense<0.000000e+00> : vector<48xf32>
    %3 = vector.multi_reduction <add>, %0, %cst [1] : vector<48x32xf32> to vector<48xf32>
    %4 = vector.shape_cast %3 : vector<48xf32> to vector<48x1xf32>
    %cst_4 = arith.constant 3.200000e+01 : f32
    %5 = vector.broadcast %cst_4 : f32 to vector<48x1xf32>
    %6 = arith.divf %4, %5 : vector<48x1xf32>
    %7 = vector.broadcast %6 : vector<48x1xf32> to vector<48x32xf32>
    %8 = arith.subf %0, %7 : vector<48x32xf32>
    %9 = arith.mulf %8, %8 : vector<48x32xf32>
    %cst_5 = arith.constant dense<0.000000e+00> : vector<48xf32>
    %10 = vector.multi_reduction <add>, %9, %cst_5 [1] : vector<48x32xf32> to vector<48xf32>
    %11 = vector.shape_cast %10 : vector<48xf32> to vector<48x1xf32>
    %cst_6 = arith.constant 3.200000e+01 : f32
    %12 = vector.broadcast %cst_6 : f32 to vector<48x1xf32>
    %13 = arith.divf %11, %12 : vector<48x1xf32>
    %14 = vector.broadcast %6 : vector<48x1xf32> to vector<48x32xf32>
    %15 = arith.subf %0, %14 : vector<48x32xf32>
    %cst_7 = arith.constant 9.99999996E-13 : f32
    %16 = vector.broadcast %cst_7 : f32 to vector<48x1xf32>
    %17 = arith.addf %13, %16 : vector<48x1xf32>
    %18 = math.rsqrt %17 : vector<48x1xf32>
    %19 = vector.broadcast %18 : vector<48x1xf32> to vector<48x32xf32>
    %20 = arith.mulf %15, %19 : vector<48x32xf32>
    %21 = vector.broadcast %1 : vector<1x32xf32> to vector<48x32xf32>
    %22 = arith.mulf %20, %21 : vector<48x32xf32>
    %23 = vector.broadcast %2 : vector<1x32xf32> to vector<48x32xf32>
    %24 = arith.addf %22, %23 : vector<48x32xf32>
    %c0_8 = arith.constant 0 : index
    %c0_9 = arith.constant 0 : index
    %25 = vector.load %arg2[%c0_8, %c0_9] : memref<6x8xf32, #tpu.memory_space<vmem>>, vector<6x8xf32>
    %c0_10 = arith.constant 0 : index
    %c0_11 = arith.constant 0 : index
    %c0_12 = arith.constant 0 : index
    %26 = vector.load %arg4[%c0_10, %c0_11, %c0_12] : memref<2x32x96xbf16, #tpu.memory_space<vmem>>, vector<1x32x96xbf16>
    %27 = vector.shape_cast %26 : vector<1x32x96xbf16> to vector<32x96xbf16>
    %c0_13 = arith.constant 0 : index
    %c0_14 = arith.constant 0 : index
    %c0_15 = arith.constant 0 : index
    %28 = vector.load %arg6[%c0_13, %c0_14, %c0_15] : memref<2x32x32xbf16, #tpu.memory_space<vmem>>, vector<1x32x32xbf16>
    %29 = vector.shape_cast %28 : vector<1x32x32xbf16> to vector<32x32xbf16>
    %c0_16 = arith.constant 0 : index
    %c0_17 = arith.constant 0 : index
    %c0_18 = arith.constant 0 : index
    %30 = vector.load %arg10[%c0_16, %c0_17, %c0_18] : memref<2x6x32xf32, #tpu.memory_space<vmem>>, vector<1x6x32xf32>
    %31 = vector.shape_cast %30 : vector<1x6x32xf32> to vector<6x32xf32>
    %32 = arith.truncf %24 : vector<48x32xf32> to vector<48x32xbf16>
    %cst_19 = arith.constant dense<0.000000e+00> : vector<48x96xf32>
    %33 = tpu.matmul %32, %27, %cst_19 {dimension_numbers = #tpu.dot_dimension_numbers<[1], [0], [0], [1], [0, 0, 1, 1], [], []>} : vector<48x32xbf16>, vector<32x96xbf16>, vector<48x96xf32> -> vector<48x96xf32>
    %c0_20 = arith.constant 0 : index
    %c0_21 = arith.constant 0 : index
    %c0_22 = arith.constant 0 : index
    %34 = vector.load %arg5[%c0_20, %c0_21, %c0_22] : memref<2x1x96xf32, #tpu.memory_space<vmem>>, vector<1x1x96xf32>
    %35 = vector.shape_cast %34 : vector<1x1x96xf32> to vector<1x96xf32>
    %36 = vector.broadcast %35 : vector<1x96xf32> to vector<48x96xf32>
    %37 = arith.addf %33, %36 : vector<48x96xf32>
    %38 = arith.truncf %37 : vector<48x96xf32> to vector<48x96xbf16>
    %39 = vector.shape_cast %38 : vector<48x96xbf16> to vector<6x8x96xbf16>
    %40 = vector.extract_strided_slice %39 {offsets = [0, 0, 0], sizes = [6, 8, 16], strides = [1, 1, 1]} : vector<6x8x96xbf16> to vector<6x8x16xbf16>
    %41 = vector.extract_strided_slice %39 {offsets = [0, 0, 32], sizes = [6, 8, 16], strides = [1, 1, 1]} : vector<6x8x96xbf16> to vector<6x8x16xbf16>
    %42 = vector.extract_strided_slice %39 {offsets = [0, 0, 64], sizes = [6, 8, 16], strides = [1, 1, 1]} : vector<6x8x96xbf16> to vector<6x8x16xbf16>
    "tpu.trace_start"() <{level = 10 : i32, message = "bqd,bkd->bqk"}> : () -> ()
    %cst_23 = arith.constant dense<0.000000e+00> : vector<6x8x8xf32>
    %43 = tpu.matmul %40, %41, %cst_23 {dimension_numbers = #tpu.dot_dimension_numbers<[2], [2], [1], [1], [0, 0, 0, 1, 1, 1], [0], [0]>} : vector<6x8x16xbf16>, vector<6x8x16xbf16>, vector<6x8x8xf32> -> vector<6x8x8xf32>
    "tpu.trace_stop"() : () -> ()
    %44 = vector.shape_cast %25 : vector<6x8xf32> to vector<6x1x8xf32>
    %45 = vector.broadcast %44 : vector<6x1x8xf32> to vector<6x8x8xf32>
    %46 = arith.addf %43, %45 : vector<6x8x8xf32>
    %cst_24 = arith.constant dense<0xFF800000> : vector<6x8xf32>
    %47 = vector.multi_reduction <maximumf>, %46, %cst_24 [2] : vector<6x8x8xf32> to vector<6x8xf32>
    %48 = vector.shape_cast %47 : vector<6x8xf32> to vector<6x8x1xf32>
    %49 = vector.broadcast %48 : vector<6x8x1xf32> to vector<6x8x8xf32>
    %50 = arith.subf %46, %49 : vector<6x8x8xf32>
    %51 = math.exp %50 : vector<6x8x8xf32>
    %cst_25 = arith.constant dense<0.000000e+00> : vector<6x8xf32>
    %52 = vector.multi_reduction <add>, %51, %cst_25 [2] : vector<6x8x8xf32> to vector<6x8xf32>
    %53 = vector.shape_cast %52 : vector<6x8xf32> to vector<6x8x1xf32>
    %54 = vector.broadcast %53 : vector<6x8x1xf32> to vector<6x8x8xf32>
    %55 = arith.divf %51, %54 : vector<6x8x8xf32>
    %56 = arith.truncf %55 : vector<6x8x8xf32> to vector<6x8x8xbf16>
    "tpu.trace_start"() <{level = 10 : i32, message = "bqk,bkd->bqd"}> : () -> ()
    %cst_26 = arith.constant dense<0.000000e+00> : vector<6x8x16xf32>
    %57 = tpu.matmul %56, %42, %cst_26 {dimension_numbers = #tpu.dot_dimension_numbers<[2], [1], [1], [2], [0, 0, 0, 1, 1, 2], [0], [0]>} : vector<6x8x8xbf16>, vector<6x8x16xbf16>, vector<6x8x16xf32> -> vector<6x8x16xf32>
    "tpu.trace_stop"() : () -> ()
    %58 = vector.extract_strided_slice %39 {offsets = [0, 0, 16], sizes = [6, 8, 16], strides = [1, 1, 1]} : vector<6x8x96xbf16> to vector<6x8x16xbf16>
    %59 = vector.extract_strided_slice %39 {offsets = [0, 0, 48], sizes = [6, 8, 16], strides = [1, 1, 1]} : vector<6x8x96xbf16> to vector<6x8x16xbf16>
    %60 = vector.extract_strided_slice %39 {offsets = [0, 0, 80], sizes = [6, 8, 16], strides = [1, 1, 1]} : vector<6x8x96xbf16> to vector<6x8x16xbf16>
    "tpu.trace_start"() <{level = 10 : i32, message = "bqd,bkd->bqk"}> : () -> ()
    %cst_27 = arith.constant dense<0.000000e+00> : vector<6x8x8xf32>
    %61 = tpu.matmul %58, %59, %cst_27 {dimension_numbers = #tpu.dot_dimension_numbers<[2], [2], [1], [1], [0, 0, 0, 1, 1, 1], [0], [0]>} : vector<6x8x16xbf16>, vector<6x8x16xbf16>, vector<6x8x8xf32> -> vector<6x8x8xf32>
    "tpu.trace_stop"() : () -> ()
    %62 = vector.shape_cast %25 : vector<6x8xf32> to vector<6x1x8xf32>
    %63 = vector.broadcast %62 : vector<6x1x8xf32> to vector<6x8x8xf32>
    %64 = arith.addf %61, %63 : vector<6x8x8xf32>
    %cst_28 = arith.constant dense<0xFF800000> : vector<6x8xf32>
    %65 = vector.multi_reduction <maximumf>, %64, %cst_28 [2] : vector<6x8x8xf32> to vector<6x8xf32>
    %66 = vector.shape_cast %65 : vector<6x8xf32> to vector<6x8x1xf32>
    %67 = vector.broadcast %66 : vector<6x8x1xf32> to vector<6x8x8xf32>
    %68 = arith.subf %64, %67 : vector<6x8x8xf32>
    %69 = math.exp %68 : vector<6x8x8xf32>
    %cst_29 = arith.constant dense<0.000000e+00> : vector<6x8xf32>
    %70 = vector.multi_reduction <add>, %69, %cst_29 [2] : vector<6x8x8xf32> to vector<6x8xf32>
    %71 = vector.shape_cast %70 : vector<6x8xf32> to vector<6x8x1xf32>
    %72 = vector.broadcast %71 : vector<6x8x1xf32> to vector<6x8x8xf32>
    %73 = arith.divf %69, %72 : vector<6x8x8xf32>
    %74 = arith.truncf %73 : vector<6x8x8xf32> to vector<6x8x8xbf16>
    "tpu.trace_start"() <{level = 10 : i32, message = "bqk,bkd->bqd"}> : () -> ()
    %cst_30 = arith.constant dense<0.000000e+00> : vector<6x8x16xf32>
    %75 = tpu.matmul %74, %60, %cst_30 {dimension_numbers = #tpu.dot_dimension_numbers<[2], [1], [1], [2], [0, 0, 0, 1, 1, 2], [0], [0]>} : vector<6x8x8xbf16>, vector<6x8x16xbf16>, vector<6x8x16xf32> -> vector<6x8x16xf32>
    "tpu.trace_stop"() : () -> ()
    %76 = tpu.concatenate %57, %75 in 2 : vector<6x8x16xf32>, vector<6x8x16xf32> -> vector<6x8x32xf32>
    %77 = vector.shape_cast %76 : vector<6x8x32xf32> to vector<48x32xf32>
    %78 = arith.truncf %77 : vector<48x32xf32> to vector<48x32xbf16>
    %cst_31 = arith.constant dense<0.000000e+00> : vector<48x32xf32>
    %79 = tpu.matmul %78, %29, %cst_31 {dimension_numbers = #tpu.dot_dimension_numbers<[1], [0], [0], [1], [0, 0, 1, 1], [], []>} : vector<48x32xbf16>, vector<32x32xbf16>, vector<48x32xf32> -> vector<48x32xf32>
    %80 = vector.extract_strided_slice %31 {offsets = [0, 0], sizes = [1, 32], strides = [1, 1]} : vector<6x32xf32> to vector<1x32xf32>
    %81 = vector.broadcast %80 : vector<1x32xf32> to vector<48x32xf32>
    %82 = arith.addf %79, %81 : vector<48x32xf32>
    %83 = arith.addf %24, %82 : vector<48x32xf32>
    %84 = vector.extract_strided_slice %31 {offsets = [1, 0], sizes = [1, 32], strides = [1, 1]} : vector<6x32xf32> to vector<1x32xf32>
    %85 = vector.extract_strided_slice %31 {offsets = [2, 0], sizes = [1, 32], strides = [1, 1]} : vector<6x32xf32> to vector<1x32xf32>
    %cst_32 = arith.constant dense<0.000000e+00> : vector<48xf32>
    %86 = vector.multi_reduction <add>, %83, %cst_32 [1] : vector<48x32xf32> to vector<48xf32>
    %87 = vector.shape_cast %86 : vector<48xf32> to vector<48x1xf32>
    %cst_33 = arith.constant 3.200000e+01 : f32
    %88 = vector.broadcast %cst_33 : f32 to vector<48x1xf32>
    %89 = arith.divf %87, %88 : vector<48x1xf32>
    %90 = vector.broadcast %89 : vector<48x1xf32> to vector<48x32xf32>
    %91 = arith.subf %83, %90 : vector<48x32xf32>
    %92 = arith.mulf %91, %91 : vector<48x32xf32>
    %cst_34 = arith.constant dense<0.000000e+00> : vector<48xf32>
    %93 = vector.multi_reduction <add>, %92, %cst_34 [1] : vector<48x32xf32> to vector<48xf32>
    %94 = vector.shape_cast %93 : vector<48xf32> to vector<48x1xf32>
    %cst_35 = arith.constant 3.200000e+01 : f32
    %95 = vector.broadcast %cst_35 : f32 to vector<48x1xf32>
    %96 = arith.divf %94, %95 : vector<48x1xf32>
    %97 = vector.broadcast %89 : vector<48x1xf32> to vector<48x32xf32>
    %98 = arith.subf %83, %97 : vector<48x32xf32>
    %cst_36 = arith.constant 9.99999996E-13 : f32
    %99 = vector.broadcast %cst_36 : f32 to vector<48x1xf32>
    %100 = arith.addf %96, %99 : vector<48x1xf32>
    %101 = math.rsqrt %100 : vector<48x1xf32>
    %102 = vector.broadcast %101 : vector<48x1xf32> to vector<48x32xf32>
    %103 = arith.mulf %98, %102 : vector<48x32xf32>
    %104 = vector.broadcast %84 : vector<1x32xf32> to vector<48x32xf32>
    %105 = arith.mulf %103, %104 : vector<48x32xf32>
    %106 = vector.broadcast %85 : vector<1x32xf32> to vector<48x32xf32>
    %107 = arith.addf %105, %106 : vector<48x32xf32>
    %108 = arith.truncf %107 : vector<48x32xf32> to vector<48x32xbf16>
    %c0_37 = arith.constant 0 : index
    %c0_38 = arith.constant 0 : index
    %c0_39 = arith.constant 0 : index
    %109 = vector.load %arg7[%c0_37, %c0_38, %c0_39] : memref<2x32x64xbf16, #tpu.memory_space<vmem>>, vector<1x32x64xbf16>
    %110 = vector.shape_cast %109 : vector<1x32x64xbf16> to vector<32x64xbf16>
    %cst_40 = arith.constant dense<0.000000e+00> : vector<48x64xf32>
    %111 = tpu.matmul %108, %110, %cst_40 {dimension_numbers = #tpu.dot_dimension_numbers<[1], [0], [0], [1], [0, 0, 1, 1], [], []>} : vector<48x32xbf16>, vector<32x64xbf16>, vector<48x64xf32> -> vector<48x64xf32>
    %c0_41 = arith.constant 0 : index
    %c0_42 = arith.constant 0 : index
    %c0_43 = arith.constant 0 : index
    %112 = vector.load %arg8[%c0_41, %c0_42, %c0_43] : memref<2x1x64xf32, #tpu.memory_space<vmem>>, vector<1x1x64xf32>
    %113 = vector.shape_cast %112 : vector<1x1x64xf32> to vector<1x64xf32>
    %114 = vector.broadcast %113 : vector<1x64xf32> to vector<48x64xf32>
    %115 = arith.addf %111, %114 : vector<48x64xf32>
    %116 = arith.mulf %115, %115 : vector<48x64xf32>
    %117 = arith.mulf %115, %116 : vector<48x64xf32>
    %cst_44 = arith.constant 4.471500e-02 : f32
    %118 = vector.broadcast %cst_44 : f32 to vector<48x64xf32>
    %119 = arith.mulf %118, %117 : vector<48x64xf32>
    %120 = arith.addf %115, %119 : vector<48x64xf32>
    %cst_45 = arith.constant 0.797884583 : f32
    %121 = vector.broadcast %cst_45 : f32 to vector<48x64xf32>
    %122 = arith.mulf %121, %120 : vector<48x64xf32>
    %123 = math.tanh %122 : vector<48x64xf32>
    %cst_46 = arith.constant 1.000000e+00 : f32
    %124 = vector.broadcast %cst_46 : f32 to vector<48x64xf32>
    %125 = arith.addf %124, %123 : vector<48x64xf32>
    %cst_47 = arith.constant 5.000000e-01 : f32
    %126 = vector.broadcast %cst_47 : f32 to vector<48x64xf32>
    %127 = arith.mulf %126, %125 : vector<48x64xf32>
    %128 = arith.mulf %115, %127 : vector<48x64xf32>
    %129 = arith.truncf %128 : vector<48x64xf32> to vector<48x64xbf16>
    %c0_48 = arith.constant 0 : index
    %c0_49 = arith.constant 0 : index
    %c0_50 = arith.constant 0 : index
    %130 = vector.load %arg9[%c0_48, %c0_49, %c0_50] : memref<2x64x32xbf16, #tpu.memory_space<vmem>>, vector<1x64x32xbf16>
    %131 = vector.shape_cast %130 : vector<1x64x32xbf16> to vector<64x32xbf16>
    %cst_51 = arith.constant dense<0.000000e+00> : vector<48x32xf32>
    %132 = tpu.matmul %129, %131, %cst_51 {dimension_numbers = #tpu.dot_dimension_numbers<[1], [0], [0], [1], [0, 0, 1, 1], [], []>} : vector<48x64xbf16>, vector<64x32xbf16>, vector<48x32xf32> -> vector<48x32xf32>
    %133 = vector.extract_strided_slice %31 {offsets = [3, 0], sizes = [1, 32], strides = [1, 1]} : vector<6x32xf32> to vector<1x32xf32>
    %134 = vector.broadcast %133 : vector<1x32xf32> to vector<48x32xf32>
    %135 = arith.addf %132, %134 : vector<48x32xf32>
    %136 = arith.addf %107, %135 : vector<48x32xf32>
    %137 = vector.extract_strided_slice %31 {offsets = [4, 0], sizes = [1, 32], strides = [1, 1]} : vector<6x32xf32> to vector<1x32xf32>
    %138 = vector.extract_strided_slice %31 {offsets = [5, 0], sizes = [1, 32], strides = [1, 1]} : vector<6x32xf32> to vector<1x32xf32>
    %cst_52 = arith.constant dense<0.000000e+00> : vector<48xf32>
    %139 = vector.multi_reduction <add>, %136, %cst_52 [1] : vector<48x32xf32> to vector<48xf32>
    %140 = vector.shape_cast %139 : vector<48xf32> to vector<48x1xf32>
    %cst_53 = arith.constant 3.200000e+01 : f32
    %141 = vector.broadcast %cst_53 : f32 to vector<48x1xf32>
    %142 = arith.divf %140, %141 : vector<48x1xf32>
    %143 = vector.broadcast %142 : vector<48x1xf32> to vector<48x32xf32>
    %144 = arith.subf %136, %143 : vector<48x32xf32>
    %145 = arith.mulf %144, %144 : vector<48x32xf32>
    %cst_54 = arith.constant dense<0.000000e+00> : vector<48xf32>
    %146 = vector.multi_reduction <add>, %145, %cst_54 [1] : vector<48x32xf32> to vector<48xf32>
    %147 = vector.shape_cast %146 : vector<48xf32> to vector<48x1xf32>
    %cst_55 = arith.constant 3.200000e+01 : f32
    %148 = vector.broadcast %cst_55 : f32 to vector<48x1xf32>
    %149 = arith.divf %147, %148 : vector<48x1xf32>
    %150 = vector.broadcast %142 : vector<48x1xf32> to vector<48x32xf32>
    %151 = arith.subf %136, %150 : vector<48x32xf32>
    %cst_56 = arith.constant 9.99999996E-13 : f32
    %152 = vector.broadcast %cst_56 : f32 to vector<48x1xf32>
    %153 = arith.addf %149, %152 : vector<48x1xf32>
    %154 = math.rsqrt %153 : vector<48x1xf32>
    %155 = vector.broadcast %154 : vector<48x1xf32> to vector<48x32xf32>
    %156 = arith.mulf %151, %155 : vector<48x32xf32>
    %157 = vector.broadcast %137 : vector<1x32xf32> to vector<48x32xf32>
    %158 = arith.mulf %156, %157 : vector<48x32xf32>
    %159 = vector.broadcast %138 : vector<1x32xf32> to vector<48x32xf32>
    %160 = arith.addf %158, %159 : vector<48x32xf32>
    %c1_57 = arith.constant 1 : index
    %c0_58 = arith.constant 0 : index
    %c0_59 = arith.constant 0 : index
    %161 = vector.load %arg4[%c1_57, %c0_58, %c0_59] : memref<2x32x96xbf16, #tpu.memory_space<vmem>>, vector<1x32x96xbf16>
    %162 = vector.shape_cast %161 : vector<1x32x96xbf16> to vector<32x96xbf16>
    %c1_60 = arith.constant 1 : index
    %c0_61 = arith.constant 0 : index
    %c0_62 = arith.constant 0 : index
    %163 = vector.load %arg6[%c1_60, %c0_61, %c0_62] : memref<2x32x32xbf16, #tpu.memory_space<vmem>>, vector<1x32x32xbf16>
    %164 = vector.shape_cast %163 : vector<1x32x32xbf16> to vector<32x32xbf16>
    %c1_63 = arith.constant 1 : index
    %c0_64 = arith.constant 0 : index
    %c0_65 = arith.constant 0 : index
    %165 = vector.load %arg10[%c1_63, %c0_64, %c0_65] : memref<2x6x32xf32, #tpu.memory_space<vmem>>, vector<1x6x32xf32>
    %166 = vector.shape_cast %165 : vector<1x6x32xf32> to vector<6x32xf32>
    %167 = arith.truncf %160 : vector<48x32xf32> to vector<48x32xbf16>
    %cst_66 = arith.constant dense<0.000000e+00> : vector<48x96xf32>
    %168 = tpu.matmul %167, %162, %cst_66 {dimension_numbers = #tpu.dot_dimension_numbers<[1], [0], [0], [1], [0, 0, 1, 1], [], []>} : vector<48x32xbf16>, vector<32x96xbf16>, vector<48x96xf32> -> vector<48x96xf32>
    %c1_67 = arith.constant 1 : index
    %c0_68 = arith.constant 0 : index
    %c0_69 = arith.constant 0 : index
    %169 = vector.load %arg5[%c1_67, %c0_68, %c0_69] : memref<2x1x96xf32, #tpu.memory_space<vmem>>, vector<1x1x96xf32>
    %170 = vector.shape_cast %169 : vector<1x1x96xf32> to vector<1x96xf32>
    %171 = vector.broadcast %170 : vector<1x96xf32> to vector<48x96xf32>
    %172 = arith.addf %168, %171 : vector<48x96xf32>
    %173 = arith.truncf %172 : vector<48x96xf32> to vector<48x96xbf16>
    %174 = vector.shape_cast %173 : vector<48x96xbf16> to vector<6x8x96xbf16>
    %175 = vector.extract_strided_slice %174 {offsets = [0, 0, 0], sizes = [6, 8, 16], strides = [1, 1, 1]} : vector<6x8x96xbf16> to vector<6x8x16xbf16>
    %176 = vector.extract_strided_slice %174 {offsets = [0, 0, 32], sizes = [6, 8, 16], strides = [1, 1, 1]} : vector<6x8x96xbf16> to vector<6x8x16xbf16>
    %177 = vector.extract_strided_slice %174 {offsets = [0, 0, 64], sizes = [6, 8, 16], strides = [1, 1, 1]} : vector<6x8x96xbf16> to vector<6x8x16xbf16>
    "tpu.trace_start"() <{level = 10 : i32, message = "bqd,bkd->bqk"}> : () -> ()
    %cst_70 = arith.constant dense<0.000000e+00> : vector<6x8x8xf32>
    %178 = tpu.matmul %175, %176, %cst_70 {dimension_numbers = #tpu.dot_dimension_numbers<[2], [2], [1], [1], [0, 0, 0, 1, 1, 1], [0], [0]>} : vector<6x8x16xbf16>, vector<6x8x16xbf16>, vector<6x8x8xf32> -> vector<6x8x8xf32>
    "tpu.trace_stop"() : () -> ()
    %179 = vector.shape_cast %25 : vector<6x8xf32> to vector<6x1x8xf32>
    %180 = vector.broadcast %179 : vector<6x1x8xf32> to vector<6x8x8xf32>
    %181 = arith.addf %178, %180 : vector<6x8x8xf32>
    %cst_71 = arith.constant dense<0xFF800000> : vector<6x8xf32>
    %182 = vector.multi_reduction <maximumf>, %181, %cst_71 [2] : vector<6x8x8xf32> to vector<6x8xf32>
    %183 = vector.shape_cast %182 : vector<6x8xf32> to vector<6x8x1xf32>
    %184 = vector.broadcast %183 : vector<6x8x1xf32> to vector<6x8x8xf32>
    %185 = arith.subf %181, %184 : vector<6x8x8xf32>
    %186 = math.exp %185 : vector<6x8x8xf32>
    %cst_72 = arith.constant dense<0.000000e+00> : vector<6x8xf32>
    %187 = vector.multi_reduction <add>, %186, %cst_72 [2] : vector<6x8x8xf32> to vector<6x8xf32>
    %188 = vector.shape_cast %187 : vector<6x8xf32> to vector<6x8x1xf32>
    %189 = vector.broadcast %188 : vector<6x8x1xf32> to vector<6x8x8xf32>
    %190 = arith.divf %186, %189 : vector<6x8x8xf32>
    %191 = arith.truncf %190 : vector<6x8x8xf32> to vector<6x8x8xbf16>
    "tpu.trace_start"() <{level = 10 : i32, message = "bqk,bkd->bqd"}> : () -> ()
    %cst_73 = arith.constant dense<0.000000e+00> : vector<6x8x16xf32>
    %192 = tpu.matmul %191, %177, %cst_73 {dimension_numbers = #tpu.dot_dimension_numbers<[2], [1], [1], [2], [0, 0, 0, 1, 1, 2], [0], [0]>} : vector<6x8x8xbf16>, vector<6x8x16xbf16>, vector<6x8x16xf32> -> vector<6x8x16xf32>
    "tpu.trace_stop"() : () -> ()
    %193 = vector.extract_strided_slice %174 {offsets = [0, 0, 16], sizes = [6, 8, 16], strides = [1, 1, 1]} : vector<6x8x96xbf16> to vector<6x8x16xbf16>
    %194 = vector.extract_strided_slice %174 {offsets = [0, 0, 48], sizes = [6, 8, 16], strides = [1, 1, 1]} : vector<6x8x96xbf16> to vector<6x8x16xbf16>
    %195 = vector.extract_strided_slice %174 {offsets = [0, 0, 80], sizes = [6, 8, 16], strides = [1, 1, 1]} : vector<6x8x96xbf16> to vector<6x8x16xbf16>
    "tpu.trace_start"() <{level = 10 : i32, message = "bqd,bkd->bqk"}> : () -> ()
    %cst_74 = arith.constant dense<0.000000e+00> : vector<6x8x8xf32>
    %196 = tpu.matmul %193, %194, %cst_74 {dimension_numbers = #tpu.dot_dimension_numbers<[2], [2], [1], [1], [0, 0, 0, 1, 1, 1], [0], [0]>} : vector<6x8x16xbf16>, vector<6x8x16xbf16>, vector<6x8x8xf32> -> vector<6x8x8xf32>
    "tpu.trace_stop"() : () -> ()
    %197 = vector.shape_cast %25 : vector<6x8xf32> to vector<6x1x8xf32>
    %198 = vector.broadcast %197 : vector<6x1x8xf32> to vector<6x8x8xf32>
    %199 = arith.addf %196, %198 : vector<6x8x8xf32>
    %cst_75 = arith.constant dense<0xFF800000> : vector<6x8xf32>
    %200 = vector.multi_reduction <maximumf>, %199, %cst_75 [2] : vector<6x8x8xf32> to vector<6x8xf32>
    %201 = vector.shape_cast %200 : vector<6x8xf32> to vector<6x8x1xf32>
    %202 = vector.broadcast %201 : vector<6x8x1xf32> to vector<6x8x8xf32>
    %203 = arith.subf %199, %202 : vector<6x8x8xf32>
    %204 = math.exp %203 : vector<6x8x8xf32>
    %cst_76 = arith.constant dense<0.000000e+00> : vector<6x8xf32>
    %205 = vector.multi_reduction <add>, %204, %cst_76 [2] : vector<6x8x8xf32> to vector<6x8xf32>
    %206 = vector.shape_cast %205 : vector<6x8xf32> to vector<6x8x1xf32>
    %207 = vector.broadcast %206 : vector<6x8x1xf32> to vector<6x8x8xf32>
    %208 = arith.divf %204, %207 : vector<6x8x8xf32>
    %209 = arith.truncf %208 : vector<6x8x8xf32> to vector<6x8x8xbf16>
    "tpu.trace_start"() <{level = 10 : i32, message = "bqk,bkd->bqd"}> : () -> ()
    %cst_77 = arith.constant dense<0.000000e+00> : vector<6x8x16xf32>
    %210 = tpu.matmul %209, %195, %cst_77 {dimension_numbers = #tpu.dot_dimension_numbers<[2], [1], [1], [2], [0, 0, 0, 1, 1, 2], [0], [0]>} : vector<6x8x8xbf16>, vector<6x8x16xbf16>, vector<6x8x16xf32> -> vector<6x8x16xf32>
    "tpu.trace_stop"() : () -> ()
    %211 = tpu.concatenate %192, %210 in 2 : vector<6x8x16xf32>, vector<6x8x16xf32> -> vector<6x8x32xf32>
    %212 = vector.shape_cast %211 : vector<6x8x32xf32> to vector<48x32xf32>
    %213 = arith.truncf %212 : vector<48x32xf32> to vector<48x32xbf16>
    %cst_78 = arith.constant dense<0.000000e+00> : vector<48x32xf32>
    %214 = tpu.matmul %213, %164, %cst_78 {dimension_numbers = #tpu.dot_dimension_numbers<[1], [0], [0], [1], [0, 0, 1, 1], [], []>} : vector<48x32xbf16>, vector<32x32xbf16>, vector<48x32xf32> -> vector<48x32xf32>
    %215 = vector.extract_strided_slice %166 {offsets = [0, 0], sizes = [1, 32], strides = [1, 1]} : vector<6x32xf32> to vector<1x32xf32>
    %216 = vector.broadcast %215 : vector<1x32xf32> to vector<48x32xf32>
    %217 = arith.addf %214, %216 : vector<48x32xf32>
    %218 = arith.addf %160, %217 : vector<48x32xf32>
    %219 = vector.extract_strided_slice %166 {offsets = [1, 0], sizes = [1, 32], strides = [1, 1]} : vector<6x32xf32> to vector<1x32xf32>
    %220 = vector.extract_strided_slice %166 {offsets = [2, 0], sizes = [1, 32], strides = [1, 1]} : vector<6x32xf32> to vector<1x32xf32>
    %cst_79 = arith.constant dense<0.000000e+00> : vector<48xf32>
    %221 = vector.multi_reduction <add>, %218, %cst_79 [1] : vector<48x32xf32> to vector<48xf32>
    %222 = vector.shape_cast %221 : vector<48xf32> to vector<48x1xf32>
    %cst_80 = arith.constant 3.200000e+01 : f32
    %223 = vector.broadcast %cst_80 : f32 to vector<48x1xf32>
    %224 = arith.divf %222, %223 : vector<48x1xf32>
    %225 = vector.broadcast %224 : vector<48x1xf32> to vector<48x32xf32>
    %226 = arith.subf %218, %225 : vector<48x32xf32>
    %227 = arith.mulf %226, %226 : vector<48x32xf32>
    %cst_81 = arith.constant dense<0.000000e+00> : vector<48xf32>
    %228 = vector.multi_reduction <add>, %227, %cst_81 [1] : vector<48x32xf32> to vector<48xf32>
    %229 = vector.shape_cast %228 : vector<48xf32> to vector<48x1xf32>
    %cst_82 = arith.constant 3.200000e+01 : f32
    %230 = vector.broadcast %cst_82 : f32 to vector<48x1xf32>
    %231 = arith.divf %229, %230 : vector<48x1xf32>
    %232 = vector.broadcast %224 : vector<48x1xf32> to vector<48x32xf32>
    %233 = arith.subf %218, %232 : vector<48x32xf32>
    %cst_83 = arith.constant 9.99999996E-13 : f32
    %234 = vector.broadcast %cst_83 : f32 to vector<48x1xf32>
    %235 = arith.addf %231, %234 : vector<48x1xf32>
    %236 = math.rsqrt %235 : vector<48x1xf32>
    %237 = vector.broadcast %236 : vector<48x1xf32> to vector<48x32xf32>
    %238 = arith.mulf %233, %237 : vector<48x32xf32>
    %239 = vector.broadcast %219 : vector<1x32xf32> to vector<48x32xf32>
    %240 = arith.mulf %238, %239 : vector<48x32xf32>
    %241 = vector.broadcast %220 : vector<1x32xf32> to vector<48x32xf32>
    %242 = arith.addf %240, %241 : vector<48x32xf32>
    %243 = arith.truncf %242 : vector<48x32xf32> to vector<48x32xbf16>
    %c1_84 = arith.constant 1 : index
    %c0_85 = arith.constant 0 : index
    %c0_86 = arith.constant 0 : index
    %244 = vector.load %arg7[%c1_84, %c0_85, %c0_86] : memref<2x32x64xbf16, #tpu.memory_space<vmem>>, vector<1x32x64xbf16>
    %245 = vector.shape_cast %244 : vector<1x32x64xbf16> to vector<32x64xbf16>
    %cst_87 = arith.constant dense<0.000000e+00> : vector<48x64xf32>
    %246 = tpu.matmul %243, %245, %cst_87 {dimension_numbers = #tpu.dot_dimension_numbers<[1], [0], [0], [1], [0, 0, 1, 1], [], []>} : vector<48x32xbf16>, vector<32x64xbf16>, vector<48x64xf32> -> vector<48x64xf32>
    %c1_88 = arith.constant 1 : index
    %c0_89 = arith.constant 0 : index
    %c0_90 = arith.constant 0 : index
    %247 = vector.load %arg8[%c1_88, %c0_89, %c0_90] : memref<2x1x64xf32, #tpu.memory_space<vmem>>, vector<1x1x64xf32>
    %248 = vector.shape_cast %247 : vector<1x1x64xf32> to vector<1x64xf32>
    %249 = vector.broadcast %248 : vector<1x64xf32> to vector<48x64xf32>
    %250 = arith.addf %246, %249 : vector<48x64xf32>
    %251 = arith.mulf %250, %250 : vector<48x64xf32>
    %252 = arith.mulf %250, %251 : vector<48x64xf32>
    %cst_91 = arith.constant 4.471500e-02 : f32
    %253 = vector.broadcast %cst_91 : f32 to vector<48x64xf32>
    %254 = arith.mulf %253, %252 : vector<48x64xf32>
    %255 = arith.addf %250, %254 : vector<48x64xf32>
    %cst_92 = arith.constant 0.797884583 : f32
    %256 = vector.broadcast %cst_92 : f32 to vector<48x64xf32>
    %257 = arith.mulf %256, %255 : vector<48x64xf32>
    %258 = math.tanh %257 : vector<48x64xf32>
    %cst_93 = arith.constant 1.000000e+00 : f32
    %259 = vector.broadcast %cst_93 : f32 to vector<48x64xf32>
    %260 = arith.addf %259, %258 : vector<48x64xf32>
    %cst_94 = arith.constant 5.000000e-01 : f32
    %261 = vector.broadcast %cst_94 : f32 to vector<48x64xf32>
    %262 = arith.mulf %261, %260 : vector<48x64xf32>
    %263 = arith.mulf %250, %262 : vector<48x64xf32>
    %264 = arith.truncf %263 : vector<48x64xf32> to vector<48x64xbf16>
    %c1_95 = arith.constant 1 : index
    %c0_96 = arith.constant 0 : index
    %c0_97 = arith.constant 0 : index
    %265 = vector.load %arg9[%c1_95, %c0_96, %c0_97] : memref<2x64x32xbf16, #tpu.memory_space<vmem>>, vector<1x64x32xbf16>
    %266 = vector.shape_cast %265 : vector<1x64x32xbf16> to vector<64x32xbf16>
    %cst_98 = arith.constant dense<0.000000e+00> : vector<48x32xf32>
    %267 = tpu.matmul %264, %266, %cst_98 {dimension_numbers = #tpu.dot_dimension_numbers<[1], [0], [0], [1], [0, 0, 1, 1], [], []>} : vector<48x64xbf16>, vector<64x32xbf16>, vector<48x32xf32> -> vector<48x32xf32>
    %268 = vector.extract_strided_slice %166 {offsets = [3, 0], sizes = [1, 32], strides = [1, 1]} : vector<6x32xf32> to vector<1x32xf32>
    %269 = vector.broadcast %268 : vector<1x32xf32> to vector<48x32xf32>
    %270 = arith.addf %267, %269 : vector<48x32xf32>
    %271 = arith.addf %242, %270 : vector<48x32xf32>
    %272 = vector.extract_strided_slice %166 {offsets = [4, 0], sizes = [1, 32], strides = [1, 1]} : vector<6x32xf32> to vector<1x32xf32>
    %273 = vector.extract_strided_slice %166 {offsets = [5, 0], sizes = [1, 32], strides = [1, 1]} : vector<6x32xf32> to vector<1x32xf32>
    %cst_99 = arith.constant dense<0.000000e+00> : vector<48xf32>
    %274 = vector.multi_reduction <add>, %271, %cst_99 [1] : vector<48x32xf32> to vector<48xf32>
    %275 = vector.shape_cast %274 : vector<48xf32> to vector<48x1xf32>
    %cst_100 = arith.constant 3.200000e+01 : f32
    %276 = vector.broadcast %cst_100 : f32 to vector<48x1xf32>
    %277 = arith.divf %275, %276 : vector<48x1xf32>
    %278 = vector.broadcast %277 : vector<48x1xf32> to vector<48x32xf32>
    %279 = arith.subf %271, %278 : vector<48x32xf32>
    %280 = arith.mulf %279, %279 : vector<48x32xf32>
    %cst_101 = arith.constant dense<0.000000e+00> : vector<48xf32>
    %281 = vector.multi_reduction <add>, %280, %cst_101 [1] : vector<48x32xf32> to vector<48xf32>
    %282 = vector.shape_cast %281 : vector<48xf32> to vector<48x1xf32>
    %cst_102 = arith.constant 3.200000e+01 : f32
    %283 = vector.broadcast %cst_102 : f32 to vector<48x1xf32>
    %284 = arith.divf %282, %283 : vector<48x1xf32>
    %285 = vector.broadcast %277 : vector<48x1xf32> to vector<48x32xf32>
    %286 = arith.subf %271, %285 : vector<48x32xf32>
    %cst_103 = arith.constant 9.99999996E-13 : f32
    %287 = vector.broadcast %cst_103 : f32 to vector<48x1xf32>
    %288 = arith.addf %284, %287 : vector<48x1xf32>
    %289 = math.rsqrt %288 : vector<48x1xf32>
    %290 = vector.broadcast %289 : vector<48x1xf32> to vector<48x32xf32>
    %291 = arith.mulf %286, %290 : vector<48x32xf32>
    %292 = vector.broadcast %272 : vector<1x32xf32> to vector<48x32xf32>
    %293 = arith.mulf %291, %292 : vector<48x32xf32>
    %294 = vector.broadcast %273 : vector<1x32xf32> to vector<48x32xf32>
    %295 = arith.addf %293, %294 : vector<48x32xf32>
    %296 = vector.shape_cast %295 : vector<48x32xf32> to vector<6x8x32xf32>
    %297 = vector.extract_strided_slice %296 {offsets = [0, 0, 0], sizes = [6, 1, 32], strides = [1, 1, 1]} : vector<6x8x32xf32> to vector<6x1x32xf32>
    %298 = vector.shape_cast %297 : vector<6x1x32xf32> to vector<6x32xf32>
    %299 = arith.truncf %298 : vector<6x32xf32> to vector<6x32xbf16>
    %c0_104 = arith.constant 0 : index
    %c0_105 = arith.constant 0 : index
    %300 = vector.load %arg11[%c0_104, %c0_105] : memref<32x32xbf16, #tpu.memory_space<vmem>>, vector<32x32xbf16>
    %cst_106 = arith.constant dense<0.000000e+00> : vector<6x32xf32>
    %301 = tpu.matmul %299, %300, %cst_106 {dimension_numbers = #tpu.dot_dimension_numbers<[1], [0], [0], [1], [0, 0, 1, 1], [], []>} : vector<6x32xbf16>, vector<32x32xbf16>, vector<6x32xf32> -> vector<6x32xf32>
    %c0_107 = arith.constant 0 : index
    %c0_108 = arith.constant 0 : index
    %302 = vector.load %arg12[%c0_107, %c0_108] : memref<1x32xf32, #tpu.memory_space<vmem>>, vector<1x32xf32>
    %303 = vector.broadcast %302 : vector<1x32xf32> to vector<6x32xf32>
    %304 = arith.addf %301, %303 : vector<6x32xf32>
    %305 = math.tanh %304 : vector<6x32xf32>
    %c0_109 = arith.constant 0 : index
    %c0_110 = arith.constant 0 : index
    %306 = vector.load %arg13[%c0_109, %c0_110] : memref<6x32xf32, #tpu.memory_space<vmem>>, vector<6x32xf32>
    tpu.vector_store %arg13[%c0_109, %c0_110], %305 {strides = array<i32>} : memref<6x32xf32, #tpu.memory_space<vmem>>, vector<6x32xf32>,
    return
  }
  func.func @transform_0(%arg0: i32) -> (i32, i32) {
    %c0_i32 = arith.constant 0 : i32
    %c0_i32_0 = arith.constant 0 : i32
    %c0_i32_1 = arith.constant 0 : i32
    return %c0_i32, %c0_i32_0 : i32, i32
  }
  func.func @transform_1(%arg0: i32) -> (i32, i32) {
    %c0_i32 = arith.constant 0 : i32
    %c0_i32_0 = arith.constant 0 : i32
    %c0_i32_1 = arith.constant 0 : i32
    return %c0_i32, %c0_i32_0 : i32, i32
  }
  func.func @transform_2(%arg0: i32) -> (i32, i32) {
    %c0_i32 = arith.constant 0 : i32
    %c0_i32_0 = arith.constant 0 : i32
    %c0_i32_1 = arith.constant 0 : i32
    return %c0_i32, %c0_i32_0 : i32, i32
  }
  func.func @transform_3(%arg0: i32) -> (i32, i32, i32) {
    %c0_i32 = arith.constant 0 : i32
    %c0_i32_0 = arith.constant 0 : i32
    %c0_i32_1 = arith.constant 0 : i32
    %c0_i32_2 = arith.constant 0 : i32
    return %c0_i32, %c0_i32_0, %c0_i32_1 : i32, i32, i32
  }
  func.func @transform_4(%arg0: i32) -> (i32, i32, i32) {
    %c0_i32 = arith.constant 0 : i32
    %c0_i32_0 = arith.constant 0 : i32
    %c0_i32_1 = arith.constant 0 : i32
    %c0_i32_2 = arith.constant 0 : i32
    return %c0_i32, %c0_i32_0, %c0_i32_1 : i32, i32, i32
  }
  func.func @transform_5(%arg0: i32) -> (i32, i32, i32) {
    %c0_i32 = arith.constant 0 : i32
    %c0_i32_0 = arith.constant 0 : i32
    %c0_i32_1 = arith.constant 0 : i32
    %c0_i32_2 = arith.constant 0 : i32
    return %c0_i32, %c0_i32_0, %c0_i32_1 : i32, i32, i32
  }
  func.func @transform_6(%arg0: i32) -> (i32, i32, i32) {
    %c0_i32 = arith.constant 0 : i32
    %c0_i32_0 = arith.constant 0 : i32
    %c0_i32_1 = arith.constant 0 : i32
    %c0_i32_2 = arith.constant 0 : i32
    return %c0_i32, %c0_i32_0, %c0_i32_1 : i32, i32, i32
  }
  func.func @transform_7(%arg0: i32) -> (i32, i32, i32) {
    %c0_i32 = arith.constant 0 : i32
    %c0_i32_0 = arith.constant 0 : i32
    %c0_i32_1 = arith.constant 0 : i32
    %c0_i32_2 = arith.constant 0 : i32
    return %c0_i32, %c0_i32_0, %c0_i32_1 : i32, i32, i32
  }
  func.func @transform_8(%arg0: i32) -> (i32, i32, i32) {
    %c0_i32 = arith.constant 0 : i32
    %c0_i32_0 = arith.constant 0 : i32
    %c0_i32_1 = arith.constant 0 : i32
    %c0_i32_2 = arith.constant 0 : i32
    return %c0_i32, %c0_i32_0, %c0_i32_1 : i32, i32, i32
  }
  func.func @transform_9(%arg0: i32) -> (i32, i32, i32) {
    %c0_i32 = arith.constant 0 : i32
    %c0_i32_0 = arith.constant 0 : i32
    %c0_i32_1 = arith.constant 0 : i32
    %c0_i32_2 = arith.constant 0 : i32
    return %c0_i32, %c0_i32_0, %c0_i32_1 : i32, i32, i32
  }
  func.func @transform_10(%arg0: i32) -> (i32, i32) {
    %c0_i32 = arith.constant 0 : i32
    %c0_i32_0 = arith.constant 0 : i32
    %c0_i32_1 = arith.constant 0 : i32
    return %c0_i32, %c0_i32_0 : i32, i32
  }
  func.func @transform_11(%arg0: i32) -> (i32, i32) {
    %c0_i32 = arith.constant 0 : i32
    %c0_i32_0 = arith.constant 0 : i32
    %c0_i32_1 = arith.constant 0 : i32
    return %c0_i32, %c0_i32_0 : i32, i32
  }
  func.func @transform_12(%arg0: i32) -> (i32, i32) {
    %c0_i32 = arith.constant 0 : i32
    %c0_i32_0 = arith.constant 0 : i32
    %c0_i32_1 = arith.constant 0 : i32
    return %c0_i32, %c0_i32_0 : i32, i32
  }
}

</mosaic_0001>

<bundles_post_ra>
// kernel: bert_encode_batched.1
= control target key start
LH: loop header
LB: loop body
LE: loop exit
PB: predicated region body
PF: predicated region fallthrough
CT: control target
= control target key end

     0   :  { %vm50_vm0 = vcmask 261120   ;;  %v5309_v42 = vmov 0.0   ;;  %vm5310_vm1 = vmmov 0   ;;  %s5311_s23 = smov 96   ;;  %vm346_vm2 = vcmask 130048   ;;  %s5314_s26 = smov 80   ;;  %s6422_s0 = inlined_call_operand.vmem [shape: f32[48,32], index: 0, kind: input, shape index: {}]   ;;  %s6423_s3 = inlined_call_operand.vmem [shape: bf16[2,32,96], index: 3, kind: input, shape index: {}]   ;;  %s6424_s2 = inlined_call_operand.vmem [shape: f32[2,32], index: 2, kind: input, shape index: {}]   ;;  %s6425_s4 = inlined_call_operand.vmem [shape: f32[2,1,96], index: 4, kind: input, shape index: {}]   ;;  %s6426_s1 = inlined_call_operand.vmem [shape: f32[6,8], index: 1, kind: input, shape index: {}]   ;;  %s6427_s5 = inlined_call_operand.vmem [shape: bf16[2,32,32], index: 5, kind: input, shape index: {}]   ;;  %s6428_s9 = inlined_call_operand.vmem [shape: f32[2,6,32], index: 9, kind: input, shape index: {}]   ;;  %s6429_s6 = inlined_call_operand.vmem [shape: bf16[2,32,64], index: 6, kind: input, shape index: {}]   ;;  %s6430_s8 = inlined_call_operand.vmem [shape: bf16[2,64,32], index: 8, kind: input, shape index: {}]   ;;  %s6431_s7 = inlined_call_operand.vmem [shape: f32[2,1,64], index: 7, kind: input, shape index: {}]   ;;  %s6432_s10 = inlined_call_operand.vmem [shape: bf16[32,32], index: 10, kind: input, shape index: {}]   ;;  %s6433_s11 = inlined_call_operand.vmem [shape: f32[1,32], index: 11, kind: input, shape index: {}]   ;;  %s6434_s12 = inlined_call_operand.vmem [shape: f32[6,32], index: 12, kind: output, shape index: {}]  }
   0x1   :  { %v42_v0 = vld [vmem:[%s6422_s0] sm:$0xff]  ;;  %v44_v1 = vld [vmem:[%s6422_s0 + $0x10] sm:$0xff]  ;;  %v43_v2 = vld [vmem:[%s6422_s0 + $0x8] sm:$0xff]  ;;  %4633 = vmatprep.subr.bf16.mxu0 %v5309_v42  ;;  %4637 = vmatprep.mubr.msk.bf16.mxu0 %vm5310_vm1, %v5309_v42  ;;  %vm633_vm3 = vcmask 64512   ;;  %vm711_vm4 = vcmask 1043456   ;;  %s5315_s27 = smov 112  }
   0x2   :  { %v51_v3 = vsel %vm50_vm0, %v42_v0, 0.0  ;;  %v57_v4 = vsel %vm50_vm0, %v44_v1, 0.0  ;;  %v45_v5 = vld [vmem:[%s6422_s0 + $0x18] sm:$0xff]  ;;  %v54_v6 = vsel %vm50_vm0, %v43_v2, 0.0  ;;  %v46_v8 = vld [vmem:[%s6422_s0 + $0x20] sm:$0xff]  ;;  %v47_v9 = vld [vmem:[%s6422_s0 + $0x28] sm:$0xff]  ;;  %4649 = vmatprep.subr.bf16.mxu1 %v5309_v42  ;;  %4651 = vmatprep.mubr.msk.bf16.mxu1 %vm5310_vm1, %v5309_v42 }
   0x3   :  { %52 = vadd.xlane.f32.xlu0 %v51_v3  ;;  %58 = vadd.xlane.f32.xlu1 %v57_v4  ;;  %v60_v7 = vsel %vm50_vm0, %v45_v5, 0.0  ;;  %v63_v10 = vsel %vm50_vm0, %v46_v8, 0.0  ;;  %v66_v11 = vsel %vm50_vm0, %v47_v9, 0.0  ;;  %v5104_v43 = vld [vmem:[%s6423_s3] sm:$0xff]   ;;  %v5105_v44 = vld [vmem:[%s6423_s3 + $0x8] sm:$0xff]   ;;  %s5316_s28 = smov 48  }
   0x4   :  { %4634 = vmatpush3.bf16.msra.mxu0 %v5104_v43  ;;  %s5317_s0 = smov 16   ;;  %vm2059_vm5 = vcmask 523264   ;;  %vm4264_vm6 = vcmask 1041409   ;;  %vm4267_vm7 = vcmask 1042434   ;;  %vm4270_vm8 = vcmask 1043459  }
   0x5   :  { %4635 = vmatprep.subr.bf16.mxu0 %v5309_v42  ;;  %vm4273_vm9 = vcmask 1044484   ;;  %vm4276_vm10 = vcmask 1045509   ;;  %vm4335_vm11 = vcmask 259072  }
   0x7   :  { %55 = vadd.xlane.f32.xlu0 %v54_v6  ;;  %61 = vadd.xlane.f32.xlu1 %v60_v7  ;;  %v4342_v6 = vld [vmem:[%s6424_s2 + $0x1] ss:$0 sm:$0xff] }
   0x8   :  { %4636 = vmatpush3.bf16.msra.mxu0 %v5105_v44 }
   0x9   :  { %4667 = vmatprep.subr.bf16.mxu0 %v5309_v42 }
   0xb   :  { %64 = vadd.xlane.f32.xlu0 %v63_v10  ;;  %67 = vadd.xlane.f32.xlu1 %v66_v11 }
  0x90   :  { %v53_v12 = vpop.xlane.xlu0 %52  ;;  %v59_v13 = vpop.xlane.xlu1 %58 }
  0x91   :  { %v70_v14 = vmul.f32 0.03125, %v53_v12  ;;  %v72_v15 = vmul.f32 0.03125, %v59_v13 }
  0x93   :  { %v5407_v16 = vsub.f32 %v42_v0, %v70_v14  ;;  %v5409_v17 = vsub.f32 %v44_v1, %v72_v15  ;;  %v4341_v1 = vld [vmem:[%s6424_s2] ss:$0 sm:$0xff] }
  0x94   :  { %v56_v18 = vpop.xlane.xlu0 %55  ;;  %v62_v19 = vpop.xlane.xlu1 %61 }
  0x95   :  { %v71_v20 = vmul.f32 0.03125, %v56_v18  ;;  %v73_v21 = vmul.f32 0.03125, %v62_v19  ;;  %v82_v22 = vmul.f32 %v5407_v16, %v5407_v16  ;;  %v84_v23 = vmul.f32 %v5409_v17, %v5409_v17 }
  0x97   :  { %v5415_v24 = vsub.f32 %v43_v2, %v71_v20  ;;  %v5417_v25 = vsub.f32 %v45_v5, %v73_v21  ;;  %v88_v26 = vsel %vm50_vm0, %v82_v22, 0.0  ;;  %v94_v29 = vsel %vm50_vm0, %v84_v23, 0.0 }
  0x98   :  { %89 = vadd.xlane.f32.xlu0 %v88_v26  ;;  %v65_v27 = vpop.xlane.xlu0 %64  ;;  %v68_v28 = vpop.xlane.xlu1 %67 }
  0x99   :  { %v74_v30 = vmul.f32 0.03125, %v65_v27  ;;  %v75_v31 = vmul.f32 0.03125, %v68_v28  ;;  %v83_v32 = vmul.f32 %v5415_v24, %v5415_v24  ;;  %v85_v33 = vmul.f32 %v5417_v25, %v5417_v25  ;;  %v4343_v28 = vld [vmem:[%s6425_s4] ss:$0 sm:$0xff] }
  0x9b   :  { %v5425_v34 = vsub.f32 %v46_v8, %v74_v30  ;;  %v5427_v35 = vsub.f32 %v47_v9, %v75_v31  ;;  %v91_v36 = vsel %vm50_vm0, %v83_v32, 0.0  ;;  %v97_v37 = vsel %vm50_vm0, %v85_v33, 0.0 }
  0x9c   :  { %95 = vadd.xlane.f32.xlu0 %v94_v29  ;;  %92 = vadd.xlane.f32.xlu1 %v91_v36 }
  0x9d   :  { %v86_v38 = vmul.f32 %v5425_v34, %v5425_v34  ;;  %v87_v39 = vmul.f32 %v5427_v35, %v5427_v35 }
  0x9f   :  { %v100_v40 = vsel %vm50_vm0, %v86_v38, 0.0  ;;  %v103_v41 = vsel %vm50_vm0, %v87_v39, 0.0 }
  0xa0   :  { %98 = vadd.xlane.f32.xlu1 %v97_v37  ;;  %101 = vadd.xlane.f32.xlu0 %v100_v40 }
  0xa4   :  { %104 = vadd.xlane.f32.xlu1 %v103_v41 }
 0x125   :  { %v90_v45 = vpop.xlane.xlu0 %89 }
 0x126   :  { %v106_v46 = vmul.f32 0.03125, %v90_v45 }
 0x128   :  { %v112_v47 = vadd.f32 1e-12, %v106_v46 }
 0x129   :  { %v93_v48 = vpop.xlane.xlu1 %92  ;;  %v96_v49 = vpop.xlane.xlu0 %95 }
 0x12a   :  { %5127 = vrsqrt.f32 %v112_v47  ;;  %v107_v50 = vmul.f32 0.03125, %v93_v48  ;;  %v108_v51 = vmul.f32 0.03125, %v96_v49 }
 0x12c   :  { %v113_v52 = vadd.f32 1e-12, %v107_v50  ;;  %v114_v53 = vadd.f32 1e-12, %v108_v51 }
 0x12d   :  { %v99_v54 = vpop.xlane.xlu1 %98  ;;  %v102_v55 = vpop.xlane.xlu0 %101 }
 0x12e   :  { %5129 = vrsqrt.f32 %v113_v52  ;;  %v109_v56 = vmul.f32 0.03125, %v99_v54  ;;  %v110_v58 = vmul.f32 0.03125, %v102_v55 }
 0x12f   :  { %5131 = vrsqrt.f32 %v114_v53 }
 0x130   :  { %v115_v57 = vadd.f32 1e-12, %v109_v56  ;;  %v116_v62 = vadd.f32 1e-12, %v110_v58 }
 0x131   :  { %v105_v59 = vpop.xlane.xlu1 %104 }
 0x132   :  { %5133 = vrsqrt.f32 %v115_v57  ;;  %v111_v60 = vmul.f32 0.03125, %v105_v59 }
 0x134   :  { %v5128_v61 = vpop.eup %5127  ;;  %v117_v63 = vadd.f32 1e-12, %v111_v60 }
 0x135   :  { %v124_v0 = vmul.f32 %v5128_v61, %v5407_v16 }
 0x136   :  { %5135 = vrsqrt.f32 %v117_v63 }
 0x137   :  { %5137 = vrsqrt.f32 %v116_v62  ;;  %v134_v4 = vmul.f32 %v4341_v1, %v124_v0 }
 0x138   :  { %v5130_v2 = vpop.eup %5129 }
 0x139   :  { %v125_v3 = vmul.f32 %v5130_v2, %v5415_v24  ;;  %v5132_v5 = vpop.eup %5131  ;;  %v5459_v9 = vadd.f32 %v4342_v6, %v134_v4  ;;  %v5312_v2 = vmov 1966171168   ;;  %v271_v4 = vlaneseq }
 0x13a   :  { %v126_v11 = vmul.f32 %v5132_v5, %v5409_v17 }
 0x13b   :  { %v135_v7 = vmul.f32 %v4341_v1, %v125_v3  ;;  %v269_v3 = vunpack.c.l.s4 %v5312_v2 }
 0x13c   :  { %v5134_v8 = vpop.eup %5133  ;;  %v136_v16 = vmul.f32 %v4341_v1, %v126_v11 }
 0x13d   :  { %v5461_v10 = vadd.f32 %v4342_v6, %v135_v7  ;;  %v127_v12 = vmul.f32 %v5134_v8, %v5417_v25  ;;  %v270_v5 = vunpack.c.0.s8 %v269_v3  ;;  %v150_v8 = vld [vmem:[%s6426_s1] sm:$0x3f]  ;;  %s5313_s1 = smov 64  }
 0x13e   :  { %v5473_v21 = vadd.f32 %v4342_v6, %v136_v16 }
 0x13f   :  { %v160_v13 = vpack.c.bf16 %v5461_v10, %v5459_v9  ;;  %v137_v14 = vmul.f32 %v4341_v1, %v127_v12 }
 0x140   :  { %v5136_v15 = vpop.eup %5135 }
 0x141   :  { %4638 = vmatmul.mubr.msk.bf16.vlgmr.msra.gmra.mrb[0].mxu0 %vm50_vm0, %v160_v13  ;;  %v5138_v18 = vpop.eup %5137  ;;  %v5470_v19 = vadd.f32 %v4342_v6, %v137_v14  ;;  %v129_v20 = vmul.f32 %v5136_v15, %v5427_v35 }
 0x142   :  { %4641 = vmatprep.mubr.msk.bf16.mxu0 %vm5310_vm1, %v5309_v42  ;;  %v128_v17 = vmul.f32 %v5138_v18, %v5425_v34  ;;  %v267_v18 = vcombine.high %v150_v8, %v150_v8 }
 0x143   :  { %v161_v22 = vpack.c.bf16 %v5470_v19, %v5473_v21  ;;  %v139_v23 = vmul.f32 %v4341_v1, %v129_v20 }
 0x144   :  { %v138_v24 = vmul.f32 %v4341_v1, %v128_v17 }
 0x145   :  { %v5481_v25 = vadd.f32 %v4342_v6, %v139_v23 }
 0x146   :  { %v5483_v26 = vadd.f32 %v4342_v6, %v138_v24  ;;  %v5553_v6 = vshrl.u32 %v271_v4, 7 }
 0x148   :  { %v162_v27 = vpack.c.bf16 %v5481_v25, %v5483_v26  ;;  %v273_v7 = vsub.s32 %v270_v5, %v5553_v6  ;;  %v5560_v13 = vsub.s32 0, %v5553_v6 }
 0x149   :  { %4642 = vmatmul.mubr.msk.bf16.gmra.mrb[4].mxu0 %vm50_vm0, %v161_v22 }
 0x14a   :  { %4645 = vmatprep.mubr.msk.bf16.mxu0 %vm5310_vm1, %v5309_v42  ;;  %v274_v11 = vrot.slane %v150_v8, %v273_v7 }
 0x14c   :  { %v290_v12 = vrot.slane %v274_v11, %v273_v7  ;;  %v282_v15 = vcombine.high %v274_v11, %v274_v11 }
 0x14e   :  { %v5563_v14 = vrot.slane %v290_v12, %v5560_v13  ;;  %v304_v22 = vrot.slane %v282_v15, %v273_v7 }
 0x151   :  { %4646 = vmatmul.mubr.msk.bf16.gmra.mrb[8].mxu0 %vm50_vm0, %v162_v27 }
 0x152   :  { %4669 = vmatprep.mubr.msk.bf16.mxu0 %vm5310_vm1, %v5309_v42 }
 0x214   :  { %v225_v29 = vpop.f32.mrb[0].mxu0 }
 0x215   :  { %v226_v30 = vadd.f32 %v4343_v28, %v225_v29  ;;  %v4639_v31 = vpop.f32.mrb[1].mxu0  ;;  %v313_v29 = vcombine.high %v304_v22, %v304_v22 }
 0x216   :  { %v228_v32 = vpop.f32.mrb[2].mxu0 }
 0x217   :  { %v5493_v33 = vpack.c.bf16 %v226_v30, %v226_v30  ;;  %v229_v34 = vadd.f32 %v4343_v28, %v228_v32  ;;  %v4640_v35 = vpop.f32.mrb[3].mxu0  ;;  %v281_v30 = vrot.slane %v267_v18, %v273_v7 }
 0x218   :  { %v5572_v35 = vrot.slane %v313_v29, %v5560_v13 }
 0x219   :  { %v5495_v36 = vpack.c.bf16 %v229_v34, %v229_v34  ;;  %344 = vrot.lane.b32.xlu0 %v5493_v33, %s5311_s23 }
 0x21b   :  { %393 = vrot.lane.b32.xlu1 %v5495_v36, %s5311_s23 }
 0x21c   :  { %v233_v37 = vpop.f32.mrb[4].mxu0 }
 0x21d   :  { %v234_v38 = vadd.f32 %v4343_v28, %v233_v37  ;;  %v4643_v39 = vpop.f32.mrb[5].mxu0  ;;  %v312_v37 = vcombine.high %v290_v12, %v290_v12 }
 0x21e   :  { %v236_v40 = vpop.f32.mrb[6].mxu0 }
 0x21f   :  { %v5501_v41 = vpack.c.bf16 %v234_v38, %v234_v38  ;;  %v237_v43 = vadd.f32 %v4343_v28, %v236_v40  ;;  %v4644_v44 = vpop.f32.mrb[7].mxu0  ;;  %v283_v38 = vcombine.high %v281_v30, %v281_v30 }
 0x221   :  { %441 = vrot.lane.b32.xlu1 %v5501_v41, %s5311_s23  ;;  %v5505_v45 = vpack.c.bf16 %v237_v43, %v237_v43 }
 0x224   :  { %v241_v46 = vpop.f32.mrb[8].mxu0 }
 0x225   :  { %v242_v47 = vadd.f32 %v4343_v28, %v241_v46  ;;  %489 = vrot.lane.b32.xlu1 %v5505_v45, %s5311_s23  ;;  %v4647_v48 = vpop.f32.mrb[9].mxu0 }
 0x226   :  { %v244_v49 = vpop.f32.mrb[10].mxu0  ;;  %v5577_v48 = vrot.slane %v312_v37, %v5560_v13 }
 0x227   :  { %v5509_v50 = vpack.c.bf16 %v242_v47, %v242_v47  ;;  %v245_v51 = vadd.f32 %v4343_v28, %v244_v49  ;;  %v4648_v52 = vpop.f32.mrb[11].mxu0  ;;  %v5568_v28 = vrot.slane %v304_v22, %v5560_v13  ;;  %v311_v49 = vrot.slane %v283_v38, %v273_v7 }
 0x229   :  { %v5511_v53 = vpack.c.bf16 %v245_v51, %v245_v51  ;;  %537 = vrot.lane.b32.xlu0 %v5509_v50, %s5311_s23 }
 0x22b   :  { %585 = vrot.lane.b32.xlu1 %v5511_v53, %s5311_s23 }
 0x28b   :  { %v345_v54 = vpop.permute.xlu0 %344 }
 0x28c   :  { %v351_v55 = vsel %vm346_vm2, %v345_v54, 0 }
 0x28d   :  { %4650 = vmatpush3.bf16.xpose.msra.mxu1 %v351_v55  ;;  %v394_v56 = vpop.permute.xlu1 %393 }
 0x28e   :  { %4655 = vmatprep.subr.bf16.mxu1 %v5309_v42  ;;  %v399_v58 = vsel %vm346_vm2, %v394_v56, 0 }
 0x293   :  { %v442_v57 = vpop.permute.xlu1 %441 }
 0x294   :  { %4652 = vmatmul.mubr.msk.bf16.vlgmr.msra.gmra.mrb[0].mxu1 %vm346_vm2, %v5493_v33  ;;  %v447_v61 = vsel %vm346_vm2, %v442_v57, 0 }
 0x295   :  { %4656 = vmatpush3.bf16.xpose.msra.mxu1 %v399_v58  ;;  %4657 = vmatprep.mubr.msk.bf16.mxu1 %vm5310_vm1, %v5309_v42  ;;  %v5582_v58 = vrot.slane %v311_v49, %v5560_v13 }
 0x296   :  { %4661 = vmatprep.subr.bf16.mxu1 %v5309_v42 }
 0x297   :  { %v490_v59 = vpop.permute.xlu1 %489 }
 0x298   :  { %v495_v60 = vsel %vm346_vm2, %v490_v59, 0  ;;  %v297_v59 = vrot.slane %v281_v30, %v273_v7 }
 0x299   :  { %4668 = vmatpush3.bf16.xpose.msra.mxu0 %v495_v60 }
 0x29a   :  { %4679 = vmatprep.subr.bf16.mxu0 %v5309_v42  ;;  %v5587_v2 = vrot.slane %v297_v59, %v5560_v13 }
 0x29b   :  { %v538_v0 = vpop.permute.xlu0 %537 }
 0x29c   :  { %4658 = vmatmul.mubr.msk.bf16.vlgmr.msra.gmra.mrb[4].mxu1 %vm346_vm2, %v5495_v36  ;;  %v543_v1 = vsel %vm346_vm2, %v538_v0, 0 }
 0x29d   :  { %v586_v62 = vpop.permute.xlu1 %585  ;;  %4662 = vmatpush3.bf16.xpose.msra.mxu1 %v447_v61  ;;  %4663 = vmatprep.mubr.msk.bf16.mxu1 %vm5310_vm1, %v5309_v42 }
 0x29e   :  { %4673 = vmatprep.subr.bf16.mxu1 %v5309_v42  ;;  %v591_v63 = vsel %vm346_vm2, %v586_v62, 0 }
 0x2a0   :  { %4670 = vmatmul.mubr.msk.bf16.vlgmr.msra.gmra.mrb[12].mxu0 %vm346_vm2, %v5505_v45 }
 0x2a1   :  { %4680 = vmatpush3.bf16.xpose.msra.mxu0 %v591_v63  ;;  %4681 = vmatprep.mubr.msk.bf16.mxu0 %vm5310_vm1, %v5309_v42 }
 0x2a2   :  { %4691 = vmatprep.subr.bf16.mxu0 %v5309_v42 }
 0x2a4   :  { %4664 = vmatmul.mubr.msk.bf16.vlgmr.msra.gmra.mrb[8].mxu1 %vm346_vm2, %v5501_v41 }
 0x2a5   :  { %4674 = vmatpush3.bf16.xpose.msra.mxu1 %v543_v1  ;;  %4675 = vmatprep.mubr.msk.bf16.mxu1 %vm5310_vm1, %v5309_v42 }
 0x2a6   :  { %4685 = vmatprep.subr.bf16.mxu1 %v5309_v42 }
 0x2a8   :  { %4682 = vmatmul.mubr.msk.bf16.vlgmr.msra.gmra.mrb[16].mxu0 %vm346_vm2, %v5511_v53 }
 0x2a9   :  { %4693 = vmatprep.mubr.msk.bf16.mxu0 %vm5310_vm1, %v5309_v42 }
 0x2ac   :  { %4676 = vmatmul.mubr.msk.bf16.vlgmr.msra.gmra.mrb[12].mxu1 %vm346_vm2, %v5509_v50 }
 0x2ad   :  { %4687 = vmatprep.mubr.msk.bf16.mxu1 %vm5310_vm1, %v5309_v42 }
 0x367   :  { %v387_v16 = vpop.f32.mrb[0].mxu1 }
 0x368   :  { %v388_v20 = vadd.f32 %v387_v16, %v5563_v14  ;;  %v4653_v17 = vpop.f32.mrb[1].mxu1 }
 0x369   :  { %v390_v23 = vpop.f32.mrb[2].mxu1 }
 0x36a   :  { %v4654_v24 = vpop.f32.mrb[3].mxu1  ;;  %v634_v27 = vsel %vm633_vm3, %v388_v20, -inf }
 0x36b   :  { %635 = vmax.xlane.f32.xlu0 %v634_v27 }
 0x36f   :  { %v435_v31 = vpop.f32.mrb[4].mxu1 }
 0x370   :  { %v436_v32 = vadd.f32 %v435_v31, %v5568_v28  ;;  %v4659_v34 = vpop.f32.mrb[5].mxu1 }
 0x371   :  { %v438_v39 = vpop.f32.mrb[6].mxu1 }
 0x372   :  { %v4660_v40 = vpop.f32.mrb[7].mxu1  ;;  %v637_v43 = vsel %vm633_vm3, %v436_v32, -inf }
 0x373   :  { %v531_v44 = vpop.f32.mrb[12].mxu0  ;;  %638 = vmax.xlane.f32.xlu1 %v637_v43 }
 0x374   :  { %v532_v46 = vadd.f32 %v531_v44, %v5572_v35  ;;  %v4671_v47 = vpop.f32.mrb[13].mxu0 }
 0x375   :  { %v534_v51 = vpop.f32.mrb[14].mxu0 }
 0x376   :  { %v4672_v52 = vpop.f32.mrb[15].mxu0  ;;  %v643_v54 = vsel %vm633_vm3, %v532_v46, -inf }
 0x377   :  { %644 = vmax.xlane.f32.xlu0 %v643_v54  ;;  %v483_v55 = vpop.f32.mrb[8].mxu1 }
 0x378   :  { %v484_v56 = vadd.f32 %v483_v55, %v5577_v48  ;;  %v4665_v57 = vpop.f32.mrb[9].mxu1 }
 0x379   :  { %v486_v60 = vpop.f32.mrb[10].mxu1 }
 0x37a   :  { %v4666_v61 = vpop.f32.mrb[11].mxu1  ;;  %v640_v62 = vsel %vm633_vm3, %v484_v56, -inf }
 0x37b   :  { %v627_v63 = vpop.f32.mrb[16].mxu0  ;;  %641 = vmax.xlane.f32.xlu0 %v640_v62 }
 0x37c   :  { %v628_v0 = vadd.f32 %v627_v63, %v5582_v58  ;;  %v4683_v1 = vpop.f32.mrb[17].mxu0 }
 0x37d   :  { %v630_v3 = vpop.f32.mrb[18].mxu0 }
 0x37e   :  { %v4684_v4 = vpop.f32.mrb[19].mxu0  ;;  %v649_v5 = vsel %vm633_vm3, %v628_v0, -inf }
 0x37f   :  { %650 = vmax.xlane.f32.xlu1 %v649_v5  ;;  %v579_v8 = vpop.f32.mrb[12].mxu1 }
 0x380   :  { %v580_v7 = vadd.f32 %v579_v8, %v5587_v2  ;;  %v4677_v11 = vpop.f32.mrb[13].mxu1 }
 0x381   :  { %v582_v12 = vpop.f32.mrb[14].mxu1 }
 0x382   :  { %v4678_v15 = vpop.f32.mrb[15].mxu1  ;;  %v646_v16 = vsel %vm633_vm3, %v580_v7, -inf }
 0x383   :  { %647 = vmax.xlane.f32.xlu0 %v646_v16 }
 0x390   :  { %755 = vrot.lane.b32.xlu1 %v5495_v36, %s5313_s1 }
 0x394   :  { %803 = vrot.lane.b32.xlu1 %v5501_v41, %s5313_s1 }
 0x398   :  { %851 = vrot.lane.b32.xlu1 %v5505_v45, %s5313_s1 }
 0x399   :  { %706 = vrot.lane.b32.xlu0 %v5493_v33, %s5313_s1 }
 0x3f8   :  { %v636_v18 = vpop.xlane.xlu0 %635 }
 0x3f9   :  { %v652_v17 = vsub.f32 %v388_v20, %v636_v18 }
 0x3fb   :  { %v658_v22 = vmul.f32 1.442695, %v652_v17 }
 0x3fd   :  { %5139 = vpow2.f32 %v658_v22 }
 0x400   :  { %v639_v23 = vpop.xlane.xlu1 %638 }
 0x401   :  { %v653_v24 = vsub.f32 %v436_v32, %v639_v23 }
 0x403   :  { %v660_v27 = vmul.f32 1.442695, %v653_v24 }
 0x404   :  { %v645_v29 = vpop.xlane.xlu0 %644 }
 0x405   :  { %5141 = vpow2.f32 %v660_v27  ;;  %v655_v30 = vsub.f32 %v532_v46, %v645_v29 }
 0x407   :  { %v5600_v31 = vpop.eup %5139  ;;  %v664_v34 = vmul.f32 1.442695, %v655_v30 }
 0x408   :  { %v642_v37 = vpop.xlane.xlu0 %641  ;;  %v670_v38 = vsel %vm633_vm3, %v5600_v31, 0.0 }
 0x409   :  { %5143 = vpow2.f32 %v664_v34  ;;  %v654_v39 = vsub.f32 %v484_v56, %v642_v37  ;;  %671 = vadd.xlane.f32.xlu0 %v670_v38 }
 0x40b   :  { %v662_v40 = vmul.f32 1.442695, %v654_v39 }
 0x40c   :  { %v651_v20 = vpop.xlane.xlu1 %650 }
 0x40d   :  { %5145 = vpow2.f32 %v662_v40  ;;  %v657_v57 = vsub.f32 %v628_v0, %v651_v20 }
 0x40f   :  { %v5604_v43 = vpop.eup %5141  ;;  %v668_v59 = vmul.f32 1.442695, %v657_v57 }
 0x410   :  { %v756_v32 = vpop.permute.xlu1 %755  ;;  %v648_v44 = vpop.xlane.xlu0 %647  ;;  %v673_v46 = vsel %vm633_vm3, %v5604_v43, 0.0 }
 0x411   :  { %v761_v47 = vsel %vm711_vm4, %v756_v32, 0  ;;  %674 = vadd.xlane.f32.xlu1 %v673_v46  ;;  %v656_v60 = vsub.f32 %v580_v7, %v648_v44  ;;  %5147 = vpow2.f32 %v668_v59 }
 0x412   :  { %4692 = vmatpush3.bf16.msra.mxu0 %v761_v47 }
 0x413   :  { %v5609_v49 = vpop.eup %5143  ;;  %4703 = vmatprep.subr.bf16.mxu0 %v5309_v42  ;;  %v666_v61 = vmul.f32 1.442695, %v656_v60 }
 0x414   :  { %v707_v51 = vpop.permute.xlu0 %706  ;;  %v679_v52 = vsel %vm633_vm3, %v5609_v49, 0.0  ;;  %v804_v0 = vpop.permute.xlu1 %803 }
 0x415   :  { %v713_v54 = vsel %vm711_vm4, %v707_v51, 0  ;;  %680 = vadd.xlane.f32.xlu1 %v679_v52  ;;  %5149 = vpow2.f32 %v666_v61  ;;  %v809_v16 = vsel %vm711_vm4, %v804_v0, 0 }
 0x416   :  { %4686 = vmatpush3.bf16.msra.mxu1 %v713_v54 }
 0x417   :  { %v5146_v55 = vpop.eup %5145  ;;  %4697 = vmatprep.subr.bf16.mxu1 %v5309_v42 }
 0x418   :  { %v676_v56 = vsel %vm633_vm3, %v5146_v55, 0.0  ;;  %v852_v5 = vpop.permute.xlu1 %851 }
 0x419   :  { %677 = vadd.xlane.f32.xlu0 %v676_v56  ;;  %v857_v27 = vsel %vm711_vm4, %v852_v5, 0 }
 0x41b   :  { %v5621_v62 = vpop.eup %5147 }
 0x41c   :  { %v685_v63 = vsel %vm633_vm3, %v5621_v62, 0.0 }
 0x41f   :  { %v5625_v1 = vpop.eup %5149 }
 0x420   :  { %v682_v3 = vsel %vm633_vm3, %v5625_v1, 0.0 }
 0x426   :  { %947 = vrot.lane.b32.xlu1 %v5511_v53, %s5313_s1 }
 0x42f   :  { %899 = vrot.lane.b32.xlu0 %v5509_v50, %s5313_s1 }
 0x44a   :  { %686 = vadd.xlane.f32.xlu1 %v685_v63 }
 0x44e   :  { %683 = vadd.xlane.f32.xlu0 %v682_v3 }
 0x45b   :  { %1047 = vrot.lane.b32.xlu1 %v5495_v36, %s5314_s26 }
 0x45f   :  { %1045 = vrot.lane.b32.xlu1 %v5495_v36, %s5315_s27 }
 0x463   :  { %1147 = vrot.lane.b32.xlu1 %v5505_v45, %s5314_s26 }
 0x464   :  { %997 = vrot.lane.b32.xlu0 %v5493_v33, %s5314_s26 }
 0x467   :  { %1145 = vrot.lane.b32.xlu1 %v5505_v45, %s5315_s27 }
 0x468   :  { %995 = vrot.lane.b32.xlu0 %v5493_v33, %s5315_s27 }
 0x46b   :  { %1247 = vrot.lane.b32.xlu1 %v5511_v53, %s5314_s26 }
 0x46c   :  { %1097 = vrot.lane.b32.xlu0 %v5501_v41, %s5314_s26 }
 0x46f   :  { %1245 = vrot.lane.b32.xlu1 %v5511_v53, %s5315_s27 }
 0x470   :  { %1095 = vrot.lane.b32.xlu0 %v5501_v41, %s5315_s27 }
 0x474   :  { %1197 = vrot.lane.b32.xlu0 %v5509_v50, %s5314_s26 }
 0x478   :  { %1195 = vrot.lane.b32.xlu0 %v5509_v50, %s5315_s27 }
 0x496   :  { %v672_v4 = vpop.xlane.xlu0 %671 }
 0x497   :  { %5151 = vrcp.f32 %v672_v4 }
 0x49e   :  { %v675_v8 = vpop.xlane.xlu1 %674 }
 0x49f   :  { %5153 = vrcp.f32 %v675_v8 }
 0x4a1   :  { %v5152_v7 = vpop.eup %5151 }
 0x4a2   :  { %v681_v11 = vpop.xlane.xlu1 %680  ;;  %v689_v12 = vmul.f32 %v5152_v7, %v5600_v31 }
 0x4a3   :  { %5155 = vrcp.f32 %v681_v11 }
 0x4a4   :  { %v700_v15 = vpack.c.bf16 %v689_v12, %v689_v12 }
 0x4a6   :  { %4688 = vmatmul.mubr.msk.bf16.vlgmr.msra.gmra.mrb[16].mxu1 %vm633_vm3, %v700_v15  ;;  %v678_v18 = vpop.xlane.xlu0 %677  ;;  %v948_v34 = vpop.permute.xlu1 %947 }
 0x4a7   :  { %4698 = vmatpush3.bf16.msra.mxu1 %v809_v16  ;;  %5157 = vrcp.f32 %v678_v18  ;;  %4699 = vmatprep.mubr.msk.bf16.mxu1 %vm5310_vm1, %v5309_v42  ;;  %v953_v40 = vsel %vm711_vm4, %v948_v34, 0 }
 0x4a8   :  { %4709 = vmatprep.subr.bf16.mxu1 %v5309_v42 }
 0x4a9   :  { %v5154_v17 = vpop.eup %5153 }
 0x4aa   :  { %v691_v22 = vmul.f32 %v5154_v17, %v5604_v43  ;;  %v900_v37 = vpop.permute.xlu0 %899 }
 0x4ab   :  { %v905_v20 = vsel %vm711_vm4, %v900_v37, 0 }
 0x4ac   :  { %v701_v23 = vpack.c.bf16 %v691_v22, %v691_v22 }
 0x4ad   :  { %v5156_v24 = vpop.eup %5155 }
 0x4ae   :  { %4694 = vmatmul.mubr.msk.bf16.vlgmr.msra.gmra.mrb[20].mxu0 %vm633_vm3, %v701_v23  ;;  %v695_v29 = vmul.f32 %v5156_v24, %v5609_v49 }
 0x4af   :  { %4704 = vmatpush3.bf16.msra.mxu0 %v857_v27  ;;  %4705 = vmatprep.mubr.msk.bf16.mxu0 %vm5310_vm1, %v5309_v42 }
 0x4b0   :  { %4715 = vmatprep.subr.bf16.mxu0 %v5309_v42  ;;  %v703_v39 = vpack.c.bf16 %v695_v29, %v695_v29 }
 0x4b1   :  { %v5158_v30 = vpop.eup %5157 }
 0x4b2   :  { %v693_v31 = vmul.f32 %v5158_v30, %v5146_v55 }
 0x4b4   :  { %v702_v38 = vpack.c.bf16 %v693_v31, %v693_v31 }
 0x4b6   :  { %4700 = vmatmul.mubr.msk.bf16.vlgmr.msra.gmra.mrb[20].mxu1 %vm633_vm3, %v702_v38  ;;  %4706 = vmatmul.mubr.msk.bf16.vlgmr.msra.gmra.mrb[24].mxu0 %vm633_vm3, %v703_v39 }
 0x4b7   :  { %4710 = vmatpush3.bf16.msra.mxu1 %v905_v20  ;;  %4716 = vmatpush3.bf16.msra.mxu0 %v953_v40 }
 0x4b8   :  { %4717 = vmatprep.mubr.msk.bf16.mxu0 %vm5310_vm1, %v5309_v42  ;;  %4727 = vmatprep.subr.bf16.mxu0 %v5309_v42 }
 0x4b9   :  { %4711 = vmatprep.mubr.msk.bf16.mxu1 %vm5310_vm1, %v5309_v42  ;;  %4721 = vmatprep.subr.bf16.mxu1 %v5309_v42 }
 0x4d7   :  { %v687_v43 = vpop.xlane.xlu1 %686 }
 0x4d8   :  { %5159 = vrcp.f32 %v687_v43 }
 0x4db   :  { %v684_v32 = vpop.xlane.xlu0 %683  ;;  %v1048_v44 = vpop.permute.xlu1 %1047 }
 0x4dc   :  { %5161 = vrcp.f32 %v684_v32  ;;  %v1053_v56 = vsel %vm346_vm2, %v1048_v44, 0 }
 0x4df   :  { %v998_v46 = vpop.permute.xlu0 %997  ;;  %v1046_v49 = vpop.permute.xlu1 %1045 }
 0x4e0   :  { %v1003_v61 = vsel %vm346_vm2, %v998_v46, 0 }
 0x4e2   :  { %v5160_v47 = vpop.eup %5159 }
 0x4e3   :  { %v699_v51 = vmul.f32 %v5160_v47, %v5621_v62  ;;  %v996_v55 = vpop.permute.xlu0 %995  ;;  %v1148_v59 = vpop.permute.xlu1 %1147 }
 0x4e5   :  { %v705_v52 = vpack.c.bf16 %v699_v51, %v699_v51 }
 0x4e6   :  { %v5162_v54 = vpop.eup %5161 }
 0x4e7   :  { %4718 = vmatmul.mubr.msk.bf16.vlgmr.msra.gmra.mrb[28].mxu0 %vm633_vm3, %v705_v52  ;;  %v697_v57 = vmul.f32 %v5162_v54, %v5625_v1  ;;  %v1098_v62 = vpop.permute.xlu0 %1097  ;;  %v1146_v63 = vpop.permute.xlu1 %1145  ;;  %v1153_v1 = vsel %vm346_vm2, %v1148_v59, 0 }
 0x4e8   :  { %4728 = vmatpush3.bf16.xpose.msra.mxu0 %v1053_v56  ;;  %4729 = vmatprep.mubr.msk.bf16.mxu0 %vm5310_vm1, %v5309_v42  ;;  %v1103_v0 = vsel %vm346_vm2, %v1098_v62, 0 }
 0x4e9   :  { %v704_v60 = vpack.c.bf16 %v697_v57, %v697_v57  ;;  %4739 = vmatprep.subr.bf16.mxu0 %v5309_v42 }
 0x4eb   :  { %4712 = vmatmul.mubr.msk.bf16.vlgmr.msra.gmra.mrb[24].mxu1 %vm633_vm3, %v704_v60  ;;  %v1096_v3 = vpop.permute.xlu0 %1095  ;;  %v1248_v4 = vpop.permute.xlu1 %1247 }
 0x4ec   :  { %4722 = vmatpush3.bf16.xpose.msra.mxu1 %v1003_v61  ;;  %4723 = vmatprep.mubr.msk.bf16.mxu1 %vm5310_vm1, %v5309_v42  ;;  %v1253_v5 = vsel %vm346_vm2, %v1248_v4, 0 }
 0x4ed   :  { %4733 = vmatprep.subr.bf16.mxu1 %v5309_v42 }
 0x4ef   :  { %4730 = vmatmul.mubr.msk.bf16.vlgmr.msra.gmra.mrb[32].mxu0 %vm346_vm2, %v1046_v49  ;;  %v1198_v8 = vpop.permute.xlu0 %1197  ;;  %v1246_v11 = vpop.permute.xlu1 %1245 }
 0x4f0   :  { %4740 = vmatpush3.bf16.xpose.msra.mxu0 %v1153_v1  ;;  %4741 = vmatprep.mubr.msk.bf16.mxu0 %vm5310_vm1, %v5309_v42  ;;  %v1203_v7 = vsel %vm346_vm2, %v1198_v8, 0 }
 0x4f1   :  { %4751 = vmatprep.subr.bf16.mxu0 %v5309_v42 }
 0x4f3   :  { %4724 = vmatmul.mubr.msk.bf16.vlgmr.msra.gmra.mrb[28].mxu1 %vm346_vm2, %v996_v55  ;;  %v1196_v12 = vpop.permute.xlu0 %1195 }
 0x4f4   :  { %4734 = vmatpush3.bf16.xpose.msra.mxu1 %v1103_v0  ;;  %4735 = vmatprep.mubr.msk.bf16.mxu1 %vm5310_vm1, %v5309_v42 }
 0x4f5   :  { %4745 = vmatprep.subr.bf16.mxu1 %v5309_v42 }
 0x4f7   :  { %4742 = vmatmul.mubr.msk.bf16.vlgmr.msra.gmra.mrb[36].mxu0 %vm346_vm2, %v1146_v63 }
 0x4f8   :  { %4752 = vmatpush3.bf16.xpose.msra.mxu0 %v1253_v5  ;;  %4753 = vmatprep.mubr.msk.bf16.mxu0 %vm5310_vm1, %v5309_v42 }
 0x4f9   :  { %4763 = vmatprep.subr.bf16.mxu0 %v5309_v42 }
 0x4fb   :  { %4736 = vmatmul.mubr.msk.bf16.vlgmr.msra.gmra.mrb[32].mxu1 %vm346_vm2, %v1096_v3 }
 0x4fc   :  { %4746 = vmatpush3.bf16.xpose.msra.mxu1 %v1203_v7  ;;  %4747 = vmatprep.mubr.msk.bf16.mxu1 %vm5310_vm1, %v5309_v42 }
 0x4fd   :  { %4757 = vmatprep.subr.bf16.mxu1 %v5309_v42 }
 0x4ff   :  { %4754 = vmatmul.mubr.msk.bf16.vlgmr.msra.gmra.mrb[40].mxu0 %vm346_vm2, %v1246_v11 }
 0x500   :  { %4765 = vmatprep.mubr.msk.bf16.mxu0 %vm5310_vm1, %v5309_v42 }
 0x503   :  { %4748 = vmatmul.mubr.msk.bf16.vlgmr.msra.gmra.mrb[36].mxu1 %vm346_vm2, %v1196_v12 }
 0x504   :  { %4759 = vmatprep.mubr.msk.bf16.mxu1 %vm5310_vm1, %v5309_v42 }
 0x579   :  { %v5714_v15 = vpop.f32.mrb[16].mxu1 }
 0x57a   :  { %v4689_v16 = vpop.f32.mrb[17].mxu1 }
 0x57b   :  { %v752_v18 = vpop.f32.mrb[18].mxu1 }
 0x57c   :  { %v4690_v17 = vpop.f32.mrb[19].mxu1 }
 0x581   :  { %v5716_v22 = vpop.f32.mrb[20].mxu0 }
 0x582   :  { %v4695_v23 = vpop.f32.mrb[21].mxu0 }
 0x583   :  { %v800_v24 = vpop.f32.mrb[22].mxu0 }
 0x584   :  { %v4696_v27 = vpop.f32.mrb[23].mxu0 }
 0x589   :  { %v5718_v29 = vpop.f32.mrb[20].mxu1  ;;  %v5720_v30 = vpop.f32.mrb[24].mxu0 }
 0x58a   :  { %v4701_v31 = vpop.f32.mrb[21].mxu1  ;;  %v4707_v34 = vpop.f32.mrb[25].mxu0 }
 0x58b   :  { %v848_v37 = vpop.f32.mrb[22].mxu1  ;;  %v896_v38 = vpop.f32.mrb[26].mxu0 }
 0x58c   :  { %v4702_v39 = vpop.f32.mrb[23].mxu1  ;;  %v4708_v40 = vpop.f32.mrb[27].mxu0 }
 0x5ba   :  { %v5722_v20 = vpop.f32.mrb[28].mxu0 }
 0x5bb   :  { %v4719_v43 = vpop.f32.mrb[29].mxu0 }
 0x5bc   :  { %v992_v32 = vpop.f32.mrb[30].mxu0 }
 0x5bd   :  { %v4720_v44 = vpop.f32.mrb[31].mxu0 }
 0x5be   :  { %v5724_v46 = vpop.f32.mrb[24].mxu1 }
 0x5bf   :  { %v4713_v47 = vpop.f32.mrb[25].mxu1 }
 0x5c0   :  { %v944_v49 = vpop.f32.mrb[26].mxu1 }
 0x5c1   :  { %v4714_v51 = vpop.f32.mrb[27].mxu1 }
 0x5c2   :  { %v1089_v52 = vpop.f32.mrb[32].mxu0 }
 0x5c3   :  { %v1090_v54 = vadd.f32 %v1089_v52, %v5568_v28  ;;  %v4731_v55 = vpop.f32.mrb[33].mxu0 }
 0x5c4   :  { %v1092_v56 = vpop.f32.mrb[34].mxu0 }
 0x5c5   :  { %v4732_v57 = vpop.f32.mrb[35].mxu0  ;;  %v1298_v59 = vsel %vm633_vm3, %v1090_v54, -inf }
 0x5c6   :  { %1299 = vmax.xlane.f32.xlu1 %v1298_v59  ;;  %v1039_v60 = vpop.f32.mrb[28].mxu1 }
 0x5c7   :  { %v1040_v61 = vadd.f32 %v1039_v60, %v5563_v14  ;;  %v4725_v62 = vpop.f32.mrb[29].mxu1 }
 0x5c8   :  { %v1042_v63 = vpop.f32.mrb[30].mxu1 }
 0x5c9   :  { %v4726_v1 = vpop.f32.mrb[31].mxu1  ;;  %v1295_v3 = vsel %vm633_vm3, %v1040_v61, -inf }
 0x5ca   :  { %v1189_v0 = vpop.f32.mrb[36].mxu0  ;;  %1296 = vmax.xlane.f32.xlu0 %v1295_v3 }
 0x5cb   :  { %v4743_v4 = vpop.f32.mrb[37].mxu0  ;;  %v1190_v18 = vadd.f32 %v1189_v0, %v5572_v35 }
 0x5cc   :  { %v1192_v5 = vpop.f32.mrb[38].mxu0 }
 0x5cd   :  { %v4744_v8 = vpop.f32.mrb[39].mxu0  ;;  %v1304_v39 = vsel %vm633_vm3, %v1190_v18, -inf }
 0x5ce   :  { %v1139_v7 = vpop.f32.mrb[32].mxu1 }
 0x5cf   :  { %v5731_v11 = vadd.f32 %v1139_v7, %v5577_v48  ;;  %v4737_v12 = vpop.f32.mrb[33].mxu1 }
 0x5d0   :  { %v1142_v16 = vpop.f32.mrb[34].mxu1 }
 0x5d1   :  { %v4738_v17 = vpop.f32.mrb[35].mxu1  ;;  %v1301_v23 = vsel %vm633_vm3, %v5731_v11, -inf }
 0x5d2   :  { %v1289_v24 = vpop.f32.mrb[40].mxu0  ;;  %1302 = vmax.xlane.f32.xlu0 %v1301_v23 }
 0x5d3   :  { %v1290_v27 = vadd.f32 %v1289_v24, %v5582_v58  ;;  %v4755_v31 = vpop.f32.mrb[41].mxu0 }
 0x5d4   :  { %v1292_v34 = vpop.f32.mrb[42].mxu0 }
 0x5d5   :  { %v4756_v37 = vpop.f32.mrb[43].mxu0  ;;  %v1310_v38 = vsel %vm633_vm3, %v1290_v27, -inf }
 0x5d6   :  { %1311 = vmax.xlane.f32.xlu1 %v1310_v38  ;;  %1305 = vmax.xlane.f32.xlu0 %v1304_v39  ;;  %v1239_v40 = vpop.f32.mrb[36].mxu1 }
 0x5d7   :  { %v1240_v43 = vadd.f32 %v1239_v40, %v5587_v2  ;;  %v4749_v32 = vpop.f32.mrb[37].mxu1 }
 0x5d8   :  { %v1242_v44 = vpop.f32.mrb[38].mxu1 }
 0x5d9   :  { %v4750_v47 = vpop.f32.mrb[39].mxu1  ;;  %v1307_v49 = vsel %vm633_vm3, %v1240_v43, -inf }
 0x5da   :  { %1308 = vmax.xlane.f32.xlu0 %v1307_v49 }
 0x5e7   :  { %1415 = vrot.lane.b32.xlu1 %v5495_v36, %s5316_s28 }
 0x5eb   :  { %1463 = vrot.lane.b32.xlu1 %v5501_v41, %s5316_s28 }
 0x5ef   :  { %1511 = vrot.lane.b32.xlu1 %v5505_v45, %s5316_s28 }
 0x653   :  { %v1300_v51 = vpop.xlane.xlu1 %1299 }
 0x654   :  { %v1314_v52 = vsub.f32 %v1090_v54, %v1300_v51 }
 0x656   :  { %v1321_v55 = vmul.f32 1.442695, %v1314_v52 }
 0x657   :  { %v1297_v56 = vpop.xlane.xlu0 %1296 }
 0x658   :  { %5163 = vpow2.f32 %v1321_v55  ;;  %v1313_v57 = vsub.f32 %v1040_v61, %v1297_v56 }
 0x65a   :  { %v1319_v59 = vmul.f32 1.442695, %v1313_v57 }
 0x65c   :  { %5165 = vpow2.f32 %v1319_v59 }
 0x65f   :  { %v1303_v60 = vpop.xlane.xlu0 %1302 }
 0x662   :  { %v5164_v62 = vpop.eup %5163 }
 0x663   :  { %v1312_v63 = vpop.xlane.xlu1 %1311  ;;  %v1306_v1 = vpop.xlane.xlu0 %1305  ;;  %v1334_v36 = vsel %vm633_vm3, %v5164_v62, 0.0 }
 0x664   :  { %v1318_v3 = vsub.f32 %v1290_v27, %v1312_v63  ;;  %v1316_v0 = vsub.f32 %v1190_v18, %v1306_v1  ;;  %1335 = vadd.xlane.f32.xlu1 %v1334_v36  ;;  %v1315_v18 = vsub.f32 %v5731_v11, %v1303_v60 }
 0x666   :  { %v5166_v41 = vpop.eup %5165  ;;  %v1325_v4 = vmul.f32 1.442695, %v1316_v0  ;;  %v1329_v45 = vmul.f32 1.442695, %v1318_v3  ;;  %v1323_v23 = vmul.f32 1.442695, %v1315_v18 }
 0x667   :  { %v1416_v5 = vpop.permute.xlu1 %1415  ;;  %v1331_v54 = vsel %vm633_vm3, %v5166_v41, 0.0  ;;  %v1309_v17 = vpop.xlane.xlu0 %1308  ;;  %v5107_v18 = vld [vmem:[%s6427_s5] sm:$0xff]  }
 0x668   :  { %v1421_v8 = vsel %vm711_vm4, %v1416_v5, 0  ;;  %1332 = vadd.xlane.f32.xlu0 %v1331_v54  ;;  %5167 = vpow2.f32 %v1325_v4  ;;  %v1317_v24 = vsub.f32 %v1240_v43, %v1309_v17  ;;  %v5108_v17 = vld [vmem:[%s6427_s5 + $0x8] sm:$0xff]  }
 0x669   :  { %4764 = vmatpush3.bf16.msra.mxu0 %v1421_v8  ;;  %5169 = vpow2.f32 %v1329_v45 }
 0x66a   :  { %4775 = vmatprep.subr.bf16.mxu0 %v5309_v42  ;;  %5171 = vpow2.f32 %v1323_v23  ;;  %v1327_v27 = vmul.f32 1.442695, %v1317_v24 }
 0x66c   :  { %5173 = vpow2.f32 %v1327_v27 }
 0x672   :  { %v5168_v61 = vpop.eup %5167 }
 0x673   :  { %v1340_v7 = vsel %vm633_vm3, %v5168_v61, 0.0  ;;  %v5170_v12 = vpop.eup %5169 }
 0x674   :  { %1341 = vadd.xlane.f32.xlu1 %v1340_v7  ;;  %v1346_v16 = vsel %vm633_vm3, %v5170_v12, 0.0  ;;  %v5172_v31 = vpop.eup %5171 }
 0x675   :  { %v1337_v34 = vsel %vm633_vm3, %v5172_v31, 0.0 }
 0x676   :  { %v5174_v37 = vpop.eup %5173 }
 0x677   :  { %v1343_v38 = vsel %vm633_vm3, %v5174_v37, 0.0 }
 0x678   :  { %1347 = vadd.xlane.f32.xlu1 %v1346_v16 }
 0x67e   :  { %1367 = vrot.lane.b32.xlu0 %v5493_v33, %s5316_s28  ;;  %v1464_v33 = vpop.permute.xlu1 %1463 }
 0x67f   :  { %v1469_v56 = vsel %vm711_vm4, %v1464_v33, 0 }
 0x682   :  { %v1512_v11 = vpop.permute.xlu1 %1511 }
 0x683   :  { %v1517_v51 = vsel %vm711_vm4, %v1512_v11, 0 }
 0x689   :  { %1607 = vrot.lane.b32.xlu1 %v5511_v53, %s5316_s28 }
 0x69d   :  { %1338 = vadd.xlane.f32.xlu0 %v1337_v34 }
 0x6a1   :  { %1344 = vadd.xlane.f32.xlu0 %v1343_v38 }
 0x6b7   :  { %1559 = vrot.lane.b32.xlu0 %v5509_v50, %s5316_s28 }
 0x6f1   :  { %v1336_v39 = vpop.xlane.xlu1 %1335 }
 0x6f2   :  { %5175 = vrcp.f32 %v1336_v39 }
 0x6f5   :  { %v1333_v53 = vpop.xlane.xlu0 %1332 }
 0x6f6   :  { %5177 = vrcp.f32 %v1333_v53 }
 0x6f9   :  { %v1368_v40 = vpop.permute.xlu0 %1367 }
 0x6fa   :  { %v1373_v43 = vsel %vm711_vm4, %v1368_v40, 0 }
 0x6fb   :  { %4758 = vmatpush3.bf16.msra.mxu1 %v1373_v43 }
 0x6fc   :  { %v5176_v32 = vpop.eup %5175  ;;  %4769 = vmatprep.subr.bf16.mxu1 %v5309_v42 }
 0x6fd   :  { %v1352_v44 = vmul.f32 %v5176_v32, %v5164_v62 }
 0x6ff   :  { %v1362_v47 = vpack.c.bf16 %v1352_v44, %v1352_v44 }
 0x700   :  { %v5178_v49 = vpop.eup %5177 }
 0x701   :  { %4766 = vmatmul.mubr.msk.bf16.vlgmr.msra.gmra.mrb[44].mxu0 %vm633_vm3, %v1362_v47  ;;  %v1350_v50 = vmul.f32 %v5178_v49, %v5166_v41  ;;  %v1342_v52 = vpop.xlane.xlu1 %1341 }
 0x702   :  { %4776 = vmatpush3.bf16.msra.mxu0 %v1517_v51  ;;  %4777 = vmatprep.mubr.msk.bf16.mxu0 %vm5310_vm1, %v5309_v42  ;;  %5179 = vrcp.f32 %v1342_v52 }
 0x703   :  { %v1361_v55 = vpack.c.bf16 %v1350_v50, %v1350_v50  ;;  %4787 = vmatprep.subr.bf16.mxu0 %v5309_v42 }
 0x705   :  { %4760 = vmatmul.mubr.msk.bf16.vlgmr.msra.gmra.mrb[40].mxu1 %vm633_vm3, %v1361_v55  ;;  %v1348_v57 = vpop.xlane.xlu1 %1347 }
 0x706   :  { %4770 = vmatpush3.bf16.msra.mxu1 %v1469_v56  ;;  %4771 = vmatprep.mubr.msk.bf16.mxu1 %vm5310_vm1, %v5309_v42  ;;  %5181 = vrcp.f32 %v1348_v57 }
 0x707   :  { %4781 = vmatprep.subr.bf16.mxu1 %v5309_v42 }
 0x709   :  { %v1608_v62 = vpop.permute.xlu1 %1607 }
 0x70a   :  { %v1613_v36 = vsel %vm711_vm4, %v1608_v62, 0 }
 0x70c   :  { %v5180_v59 = vpop.eup %5179 }
 0x70d   :  { %v1356_v60 = vmul.f32 %v5180_v59, %v5168_v61 }
 0x70f   :  { %v1364_v63 = vpack.c.bf16 %v1356_v60, %v1356_v60 }
 0x710   :  { %v5182_v1 = vpop.eup %5181 }
 0x711   :  { %4778 = vmatmul.mubr.msk.bf16.vlgmr.msra.gmra.mrb[48].mxu0 %vm633_vm3, %v1364_v63  ;;  %v1360_v3 = vmul.f32 %v5182_v1, %v5170_v12 }
 0x712   :  { %4788 = vmatpush3.bf16.msra.mxu0 %v1613_v36  ;;  %4789 = vmatprep.mubr.msk.bf16.mxu0 %vm5310_vm1, %v5309_v42 }
 0x713   :  { %4809 = vmatprep.subr.bf16.mxu0 %v5309_v42  ;;  %v1366_v0 = vpack.c.bf16 %v1360_v3, %v1360_v3 }
 0x719   :  { %4790 = vmatmul.mubr.msk.bf16.vlgmr.msra.gmra.mrb[52].mxu0 %vm633_vm3, %v1366_v0 }
 0x71a   :  { %4813 = vmatprep.mubr.msk.bf16.mxu0 %vm5310_vm1, %v5309_v42 }
 0x72a   :  { %v1339_v41 = vpop.xlane.xlu0 %1338 }
 0x72b   :  { %5183 = vrcp.f32 %v1339_v41 }
 0x72e   :  { %v1345_v4 = vpop.xlane.xlu0 %1344 }
 0x72f   :  { %5185 = vrcp.f32 %v1345_v4 }
 0x732   :  { %v1560_v54 = vpop.permute.xlu0 %1559 }
 0x733   :  { %v1565_v7 = vsel %vm711_vm4, %v1560_v54, 0 }
 0x735   :  { %v5184_v45 = vpop.eup %5183 }
 0x736   :  { %v1354_v5 = vmul.f32 %v5184_v45, %v5172_v31 }
 0x738   :  { %v1363_v8 = vpack.c.bf16 %v1354_v5, %v1354_v5 }
 0x739   :  { %v5186_v61 = vpop.eup %5185 }
 0x73a   :  { %4772 = vmatmul.mubr.msk.bf16.vlgmr.msra.gmra.mrb[44].mxu1 %vm633_vm3, %v1363_v8  ;;  %v1358_v12 = vmul.f32 %v5186_v61, %v5174_v37 }
 0x73b   :  { %4782 = vmatpush3.bf16.msra.mxu1 %v1565_v7  ;;  %4783 = vmatprep.mubr.msk.bf16.mxu1 %vm5310_vm1, %v5309_v42 }
 0x73c   :  { %4793 = vmatprep.subr.bf16.mxu1 %v5309_v42  ;;  %v1365_v16 = vpack.c.bf16 %v1358_v12, %v1358_v12 }
 0x742   :  { %4784 = vmatmul.mubr.msk.bf16.vlgmr.msra.gmra.mrb[48].mxu1 %vm633_vm3, %v1365_v16 }
 0x743   :  { %4797 = vmatprep.mubr.msk.bf16.mxu1 %vm5310_vm1, %v5309_v42  ;;  %4794 = vmatpush3.bf16.msra.mxu1 %v5107_v18 }
 0x744   :  { %4795 = vmatprep.subr.bf16.mxu1 %v5309_v42 }
 0x747   :  { %4796 = vmatpush3.bf16.msra.mxu1 %v5108_v17 }
 0x748   :  { %4825 = vmatprep.subr.bf16.mxu1 %v5309_v42 }
 0x7d4   :  { %v1457_v23 = vpop.f32.mrb[44].mxu0 }
 0x7d5   :  { %v4767_v24 = vpop.f32.mrb[45].mxu0 }
 0x7d6   :  { %v1460_v27 = vpop.f32.mrb[46].mxu0 }
 0x7d7   :  { %v4768_v31 = vpop.f32.mrb[47].mxu0 }
 0x7d8   :  { %v1409_v34 = vpop.f32.mrb[40].mxu1 }
 0x7d9   :  { %v5074_v37 = vpack.i.bf16 %v1457_v23, %v1409_v34  ;;  %v4761_v38 = vpop.f32.mrb[41].mxu1 }
 0x7da   :  { %v1412_v33 = vpop.f32.mrb[42].mxu1 }
 0x7db   :  { %5075 = vrot.lane.b32.xlu0 %v5074_v37, %s5317_s0  ;;  %v4762_v11 = vpop.f32.mrb[43].mxu1 }
 0x7e4   :  { %v1553_v39 = vpop.f32.mrb[48].mxu0 }
 0x7e5   :  { %v4779_v53 = vpop.f32.mrb[49].mxu0 }
 0x7e6   :  { %v1556_v40 = vpop.f32.mrb[50].mxu0 }
 0x7e7   :  { %v4780_v43 = vpop.f32.mrb[51].mxu0 }
 0x7ec   :  { %v1649_v32 = vpop.f32.mrb[52].mxu0 }
 0x7ed   :  { %v4791_v44 = vpop.f32.mrb[53].mxu0 }
 0x7ee   :  { %v1652_v47 = vpop.f32.mrb[54].mxu0 }
 0x7ef   :  { %v4792_v49 = vpop.f32.mrb[55].mxu0 }
 0x80d   :  { %v1505_v51 = vpop.f32.mrb[44].mxu1 }
 0x80e   :  { %v5079_v50 = vpack.i.bf16 %v1553_v39, %v1505_v51  ;;  %v4773_v52 = vpop.f32.mrb[45].mxu1 }
 0x80f   :  { %v1508_v55 = vpop.f32.mrb[46].mxu1 }
 0x810   :  { %5080 = vrot.lane.b32.xlu1 %v5079_v50, %s5317_s0  ;;  %v4774_v56 = vpop.f32.mrb[47].mxu1 }
 0x815   :  { %v1601_v57 = vpop.f32.mrb[48].mxu1 }
 0x816   :  { %v5084_v59 = vpack.i.bf16 %v1649_v32, %v1601_v57  ;;  %v4785_v60 = vpop.f32.mrb[49].mxu1 }
 0x817   :  { %v1604_v62 = vpop.f32.mrb[50].mxu1 }
 0x818   :  { %5085 = vrot.lane.b32.xlu0 %v5084_v59, %s5317_s0  ;;  %v4786_v63 = vpop.f32.mrb[51].mxu1 }
 0x84d   :  { %v5076_v1 = vpop.permute.xlu0 %5075 }
 0x84e   :  { %v5078_v36 = vunpack.i.h.bf16 %v5076_v1  ;;  %v5077_v3 = vunpack.i.l.bf16 %v5076_v1 }
 0x850   :  { %v1680_v0 = vsel %vm346_vm2, %v5716_v22, %v5078_v36  ;;  %v1679_v41 = vsel %vm346_vm2, %v5714_v15, %v5077_v3 }
 0x851   :  { %v1685_v4 = vpack.c.bf16 %v1680_v0, %v1679_v41 }
 0x853   :  { %4798 = vmatmul.mubr.msk.bf16.vlgmr.msra.gmra.mrb[52].mxu1 %vm50_vm0, %v1685_v4 }
 0x854   :  { %4801 = vmatprep.mubr.msk.bf16.mxu1 %vm5310_vm1, %v5309_v42 }
 0x882   :  { %v5081_v45 = vpop.permute.xlu1 %5080 }
 0x883   :  { %v5083_v5 = vunpack.i.h.bf16 %v5081_v45  ;;  %v5082_v54 = vunpack.i.l.bf16 %v5081_v45  ;;  %v5110_v45 = vld [vmem:[%s6429_s6 + $0x8] sm:$0xff]  }
 0x885   :  { %v1682_v8 = vsel %vm346_vm2, %v5720_v30, %v5083_v5  ;;  %v1681_v61 = vsel %vm346_vm2, %v5718_v29, %v5082_v54  ;;  %v5825_v29 = vld [vmem:[%s6428_s9] sm:$0x3f] }
 0x886   :  { %v1686_v7 = vpack.c.bf16 %v1682_v8, %v1681_v61  ;;  %v1691_v30 = vrot.slane %v5825_v29, %v5560_v13 }
 0x888   :  { %4802 = vmatmul.mubr.msk.bf16.gmra.mrb[56].mxu1 %vm50_vm0, %v1686_v7 }
 0x889   :  { %4805 = vmatprep.mubr.msk.bf16.mxu1 %vm5310_vm1, %v5309_v42 }
 0x88a   :  { %v5086_v15 = vpop.permute.xlu0 %5085 }
 0x88b   :  { %v5088_v22 = vunpack.i.h.bf16 %v5086_v15  ;;  %v5087_v12 = vunpack.i.l.bf16 %v5086_v15 }
 0x88d   :  { %v1684_v16 = vsel %vm346_vm2, %v5722_v20, %v5088_v22  ;;  %v1683_v18 = vsel %vm346_vm2, %v5724_v46, %v5087_v12 }
 0x88e   :  { %v1687_v17 = vpack.c.bf16 %v1684_v16, %v1683_v18 }
 0x890   :  { %4806 = vmatmul.mubr.msk.bf16.gmra.mrb[60].mxu1 %vm50_vm0, %v1687_v17 }
 0x891   :  { %4833 = vmatprep.mubr.msk.bf16.mxu1 %vm5310_vm1, %v5309_v42 }
 0x926   :  { %v1747_v23 = vpop.f32.mrb[52].mxu1 }
 0x927   :  { %v1748_v24 = vadd.f32 %v1747_v23, %v1691_v30  ;;  %v4799_v20 = vpop.f32.mrb[53].mxu1 }
 0x928   :  { %v1750_v27 = vpop.f32.mrb[54].mxu1 }
 0x929   :  { %v1751_v31 = vadd.f32 %v1750_v27, %v1691_v30  ;;  %v4800_v46 = vpop.f32.mrb[55].mxu1  ;;  %v1770_v34 = vadd.f32 %v1748_v24, %v5459_v9 }
 0x92b   :  { %v1776_v37 = vsel %vm50_vm0, %v1770_v34, 0.0  ;;  %v1771_v38 = vadd.f32 %v1751_v31, %v5461_v10 }
 0x92c   :  { %1777 = vadd.xlane.f32.xlu1 %v1776_v37 }
 0x92d   :  { %v1779_v33 = vsel %vm50_vm0, %v1771_v38, 0.0 }
 0x92e   :  { %1780 = vadd.xlane.f32.xlu0 %v1779_v33 }
 0x95b   :  { %v1755_v11 = vpop.f32.mrb[56].mxu1 }
 0x95c   :  { %v1756_v39 = vadd.f32 %v1755_v11, %v1691_v30  ;;  %v4803_v53 = vpop.f32.mrb[57].mxu1 }
 0x95d   :  { %v1758_v40 = vpop.f32.mrb[58].mxu1 }
 0x95e   :  { %v1759_v43 = vadd.f32 %v1758_v40, %v1691_v30  ;;  %v4804_v32 = vpop.f32.mrb[59].mxu1  ;;  %v1772_v44 = vadd.f32 %v1756_v39, %v5473_v21 }
 0x960   :  { %v1782_v47 = vsel %vm50_vm0, %v1772_v44, 0.0  ;;  %v1773_v9 = vadd.f32 %v1759_v43, %v5470_v19  ;;  %v1856_v43 = vsub.s32 1, %v5553_v6 }
 0x961   :  { %1783 = vadd.xlane.f32.xlu0 %v1782_v47 }
 0x962   :  { %v1785_v50 = vsel %vm50_vm0, %v1773_v9, 0.0  ;;  %v1857_v32 = vrot.slane %v5825_v29, %v1856_v43 }
 0x963   :  { %v1763_v49 = vpop.f32.mrb[60].mxu1 }
 0x964   :  { %v1764_v51 = vadd.f32 %v1763_v49, %v1691_v30  ;;  %v4807_v10 = vpop.f32.mrb[61].mxu1 }
 0x965   :  { %1786 = vadd.xlane.f32.xlu0 %v1785_v50  ;;  %v1766_v52 = vpop.f32.mrb[62].mxu1 }
 0x966   :  { %v1767_v55 = vadd.f32 %v1766_v52, %v1691_v30  ;;  %v4808_v56 = vpop.f32.mrb[63].mxu1  ;;  %v1774_v57 = vadd.f32 %v1764_v51, %v5483_v26 }
 0x968   :  { %v1788_v59 = vsel %vm50_vm0, %v1774_v57, 0.0  ;;  %v1775_v21 = vadd.f32 %v1767_v55, %v5481_v25  ;;  %v5109_v25 = vld [vmem:[%s6429_s6] sm:$0xff]  }
 0x969   :  { %1789 = vadd.xlane.f32.xlu1 %v1788_v59  ;;  %4810 = vmatpush3.bf16.msra.mxu0 %v5109_v25 }
 0x96a   :  { %v1791_v60 = vsel %vm50_vm0, %v1775_v21, 0.0  ;;  %4811 = vmatprep.subr.bf16.mxu0 %v5309_v42 }
 0x96b   :  { %1792 = vadd.xlane.f32.xlu0 %v1791_v60 }
 0x96d   :  { %4812 = vmatpush3.bf16.msra.mxu0 %v5110_v45 }
 0x96e   :  { %4845 = vmatprep.subr.bf16.mxu0 %v5309_v42 }
 0x9b9   :  { %v1778_v19 = vpop.xlane.xlu1 %1777 }
 0x9ba   :  { %v1794_v62 = vmul.f32 0.03125, %v1778_v19 }
 0x9bb   :  { %v1781_v63 = vpop.xlane.xlu0 %1780 }
 0x9bc   :  { %v1800_v1 = vsub.f32 %v1770_v34, %v1794_v62  ;;  %v1795_v36 = vmul.f32 0.03125, %v1781_v63 }
 0x9be   :  { %v1801_v3 = vsub.f32 %v1771_v38, %v1795_v36  ;;  %v1806_v0 = vmul.f32 %v1800_v1, %v1800_v1 }
 0x9c0   :  { %v1812_v41 = vsel %vm50_vm0, %v1806_v0, 0.0  ;;  %v1807_v4 = vmul.f32 %v1801_v3, %v1801_v3 }
 0x9c1   :  { %1813 = vadd.xlane.f32.xlu1 %v1812_v41 }
 0x9c2   :  { %v1815_v26 = vsel %vm50_vm0, %v1807_v4, 0.0 }
 0x9c3   :  { %1816 = vadd.xlane.f32.xlu0 %v1815_v26 }
 0x9ee   :  { %v1784_v5 = vpop.xlane.xlu0 %1783 }
 0x9ef   :  { %v1796_v54 = vmul.f32 0.03125, %v1784_v5 }
 0x9f1   :  { %v1802_v8 = vsub.f32 %v1772_v44, %v1796_v54  ;;  %v1866_v44 = vsub.s32 2, %v5553_v6 }
 0x9f2   :  { %v1787_v61 = vpop.xlane.xlu0 %1786 }
 0x9f3   :  { %v1797_v7 = vmul.f32 0.03125, %v1787_v61  ;;  %v1808_v15 = vmul.f32 %v1802_v8, %v1802_v8  ;;  %v1867_v50 = vrot.slane %v5825_v29, %v1866_v44 }
 0x9f5   :  { %v1803_v22 = vsub.f32 %v1773_v9, %v1797_v7  ;;  %v1818_v12 = vsel %vm50_vm0, %v1808_v15, 0.0 }
 0x9f6   :  { %1819 = vadd.xlane.f32.xlu1 %v1818_v12  ;;  %v1790_v16 = vpop.xlane.xlu1 %1789 }
 0x9f7   :  { %v1798_v18 = vmul.f32 0.03125, %v1790_v16  ;;  %v1809_v17 = vmul.f32 %v1803_v22, %v1803_v22 }
 0x9f8   :  { %v1793_v30 = vpop.xlane.xlu0 %1792 }
 0x9f9   :  { %v1804_v23 = vsub.f32 %v1774_v57, %v1798_v18  ;;  %v1799_v24 = vmul.f32 0.03125, %v1793_v30  ;;  %v1821_v20 = vsel %vm50_vm0, %v1809_v17, 0.0 }
 0x9fa   :  { %1822 = vadd.xlane.f32.xlu0 %v1821_v20 }
 0x9fb   :  { %v1805_v27 = vsub.f32 %v1775_v21, %v1799_v24  ;;  %v1810_v31 = vmul.f32 %v1804_v23, %v1804_v23 }
 0x9fd   :  { %v1824_v46 = vsel %vm50_vm0, %v1810_v31, 0.0  ;;  %v1811_v34 = vmul.f32 %v1805_v27, %v1805_v27  ;;  %v5112_v31 = vld [vmem:[%s6430_s8 + $0x8] sm:$0xff]  }
 0x9fe   :  { %1825 = vadd.xlane.f32.xlu1 %v1824_v46  ;;  %v5113_v46 = vld [vmem:[%s6430_s8 + $0x10] sm:$0xff]  }
 0x9ff   :  { %v1827_v37 = vsel %vm50_vm0, %v1811_v34, 0.0  ;;  %v5114_v34 = vld [vmem:[%s6430_s8 + $0x18] sm:$0xff]  }
 0xa00   :  { %1828 = vadd.xlane.f32.xlu0 %v1827_v37  ;;  %v4384_v37 = vld [vmem:[%s6431_s7] ss:$0 sm:$0xff] }
 0xa4e   :  { %v1814_v38 = vpop.xlane.xlu1 %1813 }
 0xa4f   :  { %v1830_v33 = vmul.f32 0.03125, %v1814_v38 }
 0xa50   :  { %v1817_v11 = vpop.xlane.xlu0 %1816 }
 0xa51   :  { %v1836_v39 = vadd.f32 1e-12, %v1830_v33  ;;  %v1831_v53 = vmul.f32 0.03125, %v1817_v11 }
 0xa53   :  { %5187 = vrsqrt.f32 %v1836_v39  ;;  %v1837_v40 = vadd.f32 1e-12, %v1831_v53 }
 0xa55   :  { %5189 = vrsqrt.f32 %v1837_v40 }
 0xa5d   :  { %v5188_v47 = vpop.eup %5187 }
 0xa5e   :  { %v1848_v9 = vmul.f32 %v5188_v47, %v1800_v1 }
 0xa5f   :  { %v5190_v49 = vpop.eup %5189 }
 0xa60   :  { %v1858_v51 = vmul.f32 %v1857_v32, %v1848_v9  ;;  %v1849_v10 = vmul.f32 %v5190_v49, %v1801_v3 }
 0xa62   :  { %v1859_v52 = vmul.f32 %v1857_v32, %v1849_v10  ;;  %v5863_v55 = vadd.f32 %v1867_v50, %v1858_v51 }
 0xa64   :  { %v5865_v56 = vadd.f32 %v1867_v50, %v1859_v52 }
 0xa66   :  { %v1874_v57 = vpack.c.bf16 %v5865_v56, %v5863_v55 }
 0xa68   :  { %4814 = vmatmul.mubr.msk.bf16.vlgmr.msra.gmra.mrb[56].mxu0 %vm50_vm0, %v1874_v57 }
 0xa69   :  { %4817 = vmatprep.mubr.msk.bf16.mxu0 %vm5310_vm1, %v5309_v42 }
 0xa83   :  { %v1820_v59 = vpop.xlane.xlu1 %1819 }
 0xa84   :  { %v1832_v21 = vmul.f32 0.03125, %v1820_v59 }
 0xa86   :  { %v1838_v60 = vadd.f32 1e-12, %v1832_v21 }
 0xa87   :  { %v1823_v19 = vpop.xlane.xlu0 %1822 }
 0xa88   :  { %5191 = vrsqrt.f32 %v1838_v60  ;;  %v1833_v62 = vmul.f32 0.03125, %v1823_v19 }
 0xa8a   :  { %v1839_v63 = vadd.f32 1e-12, %v1833_v62 }
 0xa8b   :  { %v1826_v1 = vpop.xlane.xlu1 %1825 }
 0xa8c   :  { %5193 = vrsqrt.f32 %v1839_v63  ;;  %v1834_v36 = vmul.f32 0.03125, %v1826_v1 }
 0xa8d   :  { %v1829_v3 = vpop.xlane.xlu0 %1828 }
 0xa8e   :  { %v1840_v0 = vadd.f32 1e-12, %v1834_v36  ;;  %v1835_v41 = vmul.f32 0.03125, %v1829_v3 }
 0xa90   :  { %5195 = vrsqrt.f32 %v1840_v0  ;;  %v1841_v4 = vadd.f32 1e-12, %v1835_v41 }
 0xa92   :  { %v5192_v26 = vpop.eup %5191  ;;  %5197 = vrsqrt.f32 %v1841_v4 }
 0xa93   :  { %v1850_v25 = vmul.f32 %v5192_v26, %v1802_v8 }
 0xa95   :  { %v1860_v54 = vmul.f32 %v1857_v32, %v1850_v25 }
 0xa96   :  { %v5194_v45 = vpop.eup %5193 }
 0xa97   :  { %v1851_v5 = vmul.f32 %v5194_v45, %v1803_v22  ;;  %v5872_v12 = vadd.f32 %v1867_v50, %v1860_v54 }
 0xa99   :  { %v1861_v61 = vmul.f32 %v1857_v32, %v1851_v5 }
 0xa9a   :  { %v5196_v7 = vpop.eup %5195 }
 0xa9b   :  { %v1852_v15 = vmul.f32 %v5196_v7, %v1804_v23  ;;  %v5874_v16 = vadd.f32 %v1867_v50, %v1861_v61 }
 0xa9c   :  { %v5198_v18 = vpop.eup %5197 }
 0xa9d   :  { %v1853_v17 = vmul.f32 %v5198_v18, %v1805_v27  ;;  %v1875_v30 = vpack.c.bf16 %v5874_v16, %v5872_v12  ;;  %v1862_v24 = vmul.f32 %v1857_v32, %v1852_v15  ;;  %v5111_v27 = vld [vmem:[%s6430_s8] sm:$0xff]  }
 0xa9e   :  { %4826 = vmatpush3.bf16.msra.mxu1 %v5111_v27 }
 0xa9f   :  { %4818 = vmatmul.mubr.msk.bf16.gmra.mrb[60].mxu0 %vm50_vm0, %v1875_v30  ;;  %v1863_v20 = vmul.f32 %v1857_v32, %v1853_v17  ;;  %v5879_v8 = vadd.f32 %v1867_v50, %v1862_v24  ;;  %4827 = vmatprep.subr.bf16.mxu1 %v5309_v42 }
 0xaa0   :  { %4821 = vmatprep.mubr.msk.bf16.mxu0 %vm5310_vm1, %v5309_v42 }
 0xaa1   :  { %v5883_v22 = vadd.f32 %v1867_v50, %v1863_v20 }
 0xaa2   :  { %4828 = vmatpush3.bf16.msra.mxu1 %v5112_v31 }
 0xaa3   :  { %v1876_v23 = vpack.c.bf16 %v5883_v22, %v5879_v8  ;;  %4829 = vmatprep.subr.bf16.mxu1 %v5309_v42 }
 0xaa6   :  { %4830 = vmatpush3.bf16.msra.mxu1 %v5113_v46 }
 0xaa7   :  { %4822 = vmatmul.mubr.msk.bf16.gmra.mrb[64].mxu0 %vm50_vm0, %v1876_v23  ;;  %4831 = vmatprep.subr.bf16.mxu1 %v5309_v42 }
 0xaa8   :  { %4849 = vmatprep.mubr.msk.bf16.mxu0 %vm5310_vm1, %v5309_v42 }
 0xaaa   :  { %4832 = vmatpush3.bf16.msra.mxu1 %v5114_v34 }
 0xaab   :  { %4861 = vmatprep.subr.bf16.mxu1 %v5309_v42 }
 0xb3b   :  { %v1943_v38 = vpop.f32.mrb[56].mxu0 }
 0xb3c   :  { %v1944_v33 = vadd.f32 %v4384_v37, %v1943_v38  ;;  %v4815_v11 = vpop.f32.mrb[57].mxu0 }
 0xb3d   :  { %v1946_v39 = vpop.f32.mrb[58].mxu0 }
 0xb3e   :  { %v1966_v53 = vmul.f32 %v1944_v33, %v1944_v33  ;;  %v1947_v40 = vadd.f32 %v4384_v37, %v1946_v39  ;;  %v4816_v32 = vpop.f32.mrb[59].mxu0 }
 0xb40   :  { %v1972_v47 = vmul.f32 %v1966_v53, %v1944_v33  ;;  %v1967_v9 = vmul.f32 %v1947_v40, %v1947_v40 }
 0xb42   :  { %v1978_v49 = vmul.f32 0.044715, %v1972_v47  ;;  %v1973_v51 = vmul.f32 %v1967_v9, %v1947_v40 }
 0xb44   :  { %v1984_v10 = vadd.f32 %v1978_v49, %v1944_v33  ;;  %v1979_v50 = vmul.f32 0.044715, %v1973_v51 }
 0xb46   :  { %v1990_v52 = vmul.f32 0.7978846, %v1984_v10  ;;  %v1985_v57 = vadd.f32 %v1979_v50, %v1947_v40 }
 0xb48   :  { %5199 = vtanh.f32 %v1990_v52  ;;  %v1991_v59 = vmul.f32 0.7978846, %v1985_v57 }
 0xb4a   :  { %5201 = vtanh.f32 %v1991_v59 }
 0xb52   :  { %v5200_v21 = vpop.eup %5199 }
 0xb53   :  { %v2002_v60 = vadd.f32 1.0, %v5200_v21 }
 0xb54   :  { %v5202_v19 = vpop.eup %5201 }
 0xb55   :  { %v2008_v62 = vmul.f32 0.5, %v2002_v60  ;;  %v2003_v63 = vadd.f32 1.0, %v5202_v19 }
 0xb57   :  { %v2009_v1 = vmul.f32 0.5, %v2003_v63  ;;  %v2014_v36 = vmul.f32 %v2008_v62, %v1944_v33 }
 0xb59   :  { %v2015_v3 = vmul.f32 %v2009_v1, %v1947_v40 }
 0xb5b   :  { %v2020_v0 = vpack.c.bf16 %v2015_v3, %v2014_v36 }
 0xb5d   :  { %4834 = vmatmul.mubr.msk.bf16.vlgmr.msra.gmra.mrb[64].mxu1 %vm2059_vm5, %v2020_v0 }
 0xb5e   :  { %4837 = vmatprep.mubr.msk.bf16.mxu1 %vm5310_vm1, %v5309_v42 }
 0xb72   :  { %v1951_v41 = vpop.f32.mrb[60].mxu0 }
 0xb73   :  { %v1952_v4 = vadd.f32 %v4384_v37, %v1951_v41  ;;  %v4819_v26 = vpop.f32.mrb[61].mxu0 }
 0xb74   :  { %v1954_v25 = vpop.f32.mrb[62].mxu0 }
 0xb75   :  { %v1968_v45 = vmul.f32 %v1952_v4, %v1952_v4  ;;  %v1955_v5 = vadd.f32 %v4384_v37, %v1954_v25  ;;  %v4820_v54 = vpop.f32.mrb[63].mxu0 }
 0xb77   :  { %v1974_v61 = vmul.f32 %v1968_v45, %v1952_v4  ;;  %v1969_v7 = vmul.f32 %v1955_v5, %v1955_v5 }
 0xb79   :  { %v1980_v15 = vmul.f32 0.044715, %v1974_v61  ;;  %v1975_v18 = vmul.f32 %v1969_v7, %v1955_v5 }
 0xb7a   :  { %v1959_v17 = vpop.f32.mrb[64].mxu0 }
 0xb7b   :  { %v1986_v30 = vadd.f32 %v1980_v15, %v1952_v4  ;;  %v1981_v24 = vmul.f32 0.044715, %v1975_v18  ;;  %v1960_v20 = vadd.f32 %v4384_v37, %v1959_v17  ;;  %v4823_v23 = vpop.f32.mrb[65].mxu0 }
 0xb7c   :  { %v1962_v27 = vpop.f32.mrb[66].mxu0 }
 0xb7d   :  { %v1992_v31 = vmul.f32 0.7978846, %v1986_v30  ;;  %v1987_v46 = vadd.f32 %v1981_v24, %v1955_v5  ;;  %v1970_v34 = vmul.f32 %v1960_v20, %v1960_v20  ;;  %v1963_v38 = vadd.f32 %v4384_v37, %v1962_v27  ;;  %v4824_v33 = vpop.f32.mrb[67].mxu0 }
 0xb7f   :  { %5203 = vtanh.f32 %v1992_v31  ;;  %v1993_v11 = vmul.f32 0.7978846, %v1987_v46  ;;  %v1976_v39 = vmul.f32 %v1970_v34, %v1960_v20  ;;  %v1971_v53 = vmul.f32 %v1963_v38, %v1963_v38 }
 0xb81   :  { %5205 = vtanh.f32 %v1993_v11  ;;  %v1982_v40 = vmul.f32 0.044715, %v1976_v39  ;;  %v1977_v32 = vmul.f32 %v1971_v53, %v1963_v38 }
 0xb83   :  { %v1988_v47 = vadd.f32 %v1982_v40, %v1960_v20  ;;  %v1983_v9 = vmul.f32 0.044715, %v1977_v32 }
 0xb85   :  { %v1994_v49 = vmul.f32 0.7978846, %v1988_v47  ;;  %v1989_v51 = vadd.f32 %v1983_v9, %v1963_v38 }
 0xb87   :  { %5207 = vtanh.f32 %v1994_v49  ;;  %v1995_v10 = vmul.f32 0.7978846, %v1989_v51 }
 0xb89   :  { %v5204_v50 = vpop.eup %5203  ;;  %5209 = vtanh.f32 %v1995_v10 }
 0xb8a   :  { %v2004_v52 = vadd.f32 1.0, %v5204_v50 }
 0xb8b   :  { %v5206_v57 = vpop.eup %5205 }
 0xb8c   :  { %v2010_v59 = vmul.f32 0.5, %v2004_v52  ;;  %v2005_v37 = vadd.f32 1.0, %v5206_v57 }
 0xb8e   :  { %v2011_v21 = vmul.f32 0.5, %v2005_v37  ;;  %v2016_v60 = vmul.f32 %v2010_v59, %v1952_v4  ;;  %v2033_v4 = vsub.s32 3, %v5553_v6 }
 0xb90   :  { %v2017_v19 = vmul.f32 %v2011_v21, %v1955_v5  ;;  %v2034_v5 = vrot.slane %v5825_v29, %v2033_v4 }
 0xb91   :  { %v5208_v62 = vpop.eup %5207 }
 0xb92   :  { %v2006_v63 = vadd.f32 1.0, %v5208_v62  ;;  %v2021_v1 = vpack.c.bf16 %v2017_v19, %v2016_v60 }
 0xb93   :  { %v5210_v36 = vpop.eup %5209 }
 0xb94   :  { %v2012_v3 = vmul.f32 0.5, %v2006_v63  ;;  %v2007_v0 = vadd.f32 1.0, %v5210_v36  ;;  %4838 = vmatmul.mubr.msk.bf16.gmra.mrb[68].mxu1 %vm2059_vm5, %v2021_v1  ;;  %v5116_v63 = vld [vmem:[%s6423_s3 + $0x18] sm:$0xff]  }
 0xb95   :  { %4841 = vmatprep.mubr.msk.bf16.mxu1 %vm5310_vm1, %v5309_v42 }
 0xb96   :  { %v2013_v41 = vmul.f32 0.5, %v2007_v0  ;;  %v2018_v26 = vmul.f32 %v2012_v3, %v1960_v20 }
 0xb98   :  { %v2019_v25 = vmul.f32 %v2013_v41, %v1963_v38 }
 0xb9a   :  { %v2022_v45 = vpack.c.bf16 %v2019_v25, %v2018_v26 }
 0xb9c   :  { %4842 = vmatmul.mubr.msk.bf16.gmra.mrb[72].mxu1 %vm2059_vm5, %v2022_v45 }
 0xb9d   :  { %4863 = vmatprep.mubr.msk.bf16.mxu1 %vm5310_vm1, %v5309_v42 }
 0xc30   :  { %v2103_v54 = vpop.f32.mrb[64].mxu1 }
 0xc31   :  { %v2104_v61 = vadd.f32 %v2103_v54, %v2034_v5  ;;  %v4835_v7 = vpop.f32.mrb[65].mxu1 }
 0xc32   :  { %v2106_v15 = vpop.f32.mrb[66].mxu1 }
 0xc33   :  { %v2107_v18 = vadd.f32 %v2106_v15, %v2034_v5  ;;  %v4836_v17 = vpop.f32.mrb[67].mxu1  ;;  %v2126_v30 = vadd.f32 %v2104_v61, %v5863_v55 }
 0xc35   :  { %v2132_v24 = vsel %vm50_vm0, %v2126_v30, 0.0  ;;  %v2127_v20 = vadd.f32 %v2107_v18, %v5865_v56 }
 0xc36   :  { %2133 = vadd.xlane.f32.xlu1 %v2132_v24 }
 0xc37   :  { %v2135_v23 = vsel %vm50_vm0, %v2127_v20, 0.0 }
 0xc38   :  { %2136 = vadd.xlane.f32.xlu0 %v2135_v23 }
 0xc67   :  { %v2111_v27 = vpop.f32.mrb[68].mxu1 }
 0xc68   :  { %v2112_v31 = vadd.f32 %v2111_v27, %v2034_v5  ;;  %v4839_v46 = vpop.f32.mrb[69].mxu1 }
 0xc69   :  { %v2114_v34 = vpop.f32.mrb[70].mxu1 }
 0xc6a   :  { %v2115_v38 = vadd.f32 %v2114_v34, %v2034_v5  ;;  %v4840_v33 = vpop.f32.mrb[71].mxu1  ;;  %v2128_v11 = vadd.f32 %v2112_v31, %v5872_v12 }
 0xc6c   :  { %v2138_v39 = vsel %vm50_vm0, %v2128_v11, 0.0  ;;  %v2129_v55 = vadd.f32 %v2115_v38, %v5874_v16 }
 0xc6d   :  { %2139 = vadd.xlane.f32.xlu1 %v2138_v39  ;;  %v2212_v39 = vsub.s32 4, %v5553_v6 }
 0xc6e   :  { %v2141_v53 = vsel %vm50_vm0, %v2129_v55, 0.0 }
 0xc6f   :  { %2142 = vadd.xlane.f32.xlu0 %v2141_v53  ;;  %v2119_v56 = vpop.f32.mrb[72].mxu1  ;;  %v2222_v53 = vsub.s32 5, %v5553_v6 }
 0xc70   :  { %v2120_v40 = vadd.f32 %v2119_v56, %v2034_v5  ;;  %v4843_v32 = vpop.f32.mrb[73].mxu1 }
 0xc71   :  { %v2122_v47 = vpop.f32.mrb[74].mxu1 }
 0xc72   :  { %v2123_v9 = vadd.f32 %v2122_v47, %v2034_v5  ;;  %v4844_v49 = vpop.f32.mrb[75].mxu1  ;;  %v2130_v51 = vadd.f32 %v2120_v40, %v5879_v8  ;;  %v2223_v47 = vrot.slane %v5825_v29, %v2222_v53 }
 0xc74   :  { %v2144_v10 = vsel %vm50_vm0, %v2130_v51, 0.0  ;;  %v2131_v12 = vadd.f32 %v2123_v9, %v5883_v22  ;;  %v5115_v22 = vld [vmem:[%s6423_s3 + $0x10] sm:$0xff]  }
 0xc75   :  { %2145 = vadd.xlane.f32.xlu1 %v2144_v10  ;;  %4846 = vmatpush3.bf16.msra.mxu0 %v5115_v22 }
 0xc76   :  { %v2147_v50 = vsel %vm50_vm0, %v2131_v12, 0.0  ;;  %4847 = vmatprep.subr.bf16.mxu0 %v5309_v42 }
 0xc77   :  { %2148 = vadd.xlane.f32.xlu0 %v2147_v50 }
 0xc79   :  { %4848 = vmatpush3.bf16.msra.mxu0 %v5116_v63 }
 0xc7a   :  { %4867 = vmatprep.subr.bf16.mxu0 %v5309_v42 }
 0xcc3   :  { %v2134_v16 = vpop.xlane.xlu1 %2133 }
 0xcc4   :  { %v2150_v52 = vmul.f32 0.03125, %v2134_v16 }
 0xcc5   :  { %v2137_v57 = vpop.xlane.xlu0 %2136 }
 0xcc6   :  { %v2156_v59 = vsub.f32 %v2126_v30, %v2150_v52  ;;  %v2151_v37 = vmul.f32 0.03125, %v2137_v57 }
 0xcc8   :  { %v2157_v21 = vsub.f32 %v2127_v20, %v2151_v37  ;;  %v2162_v60 = vmul.f32 %v2156_v59, %v2156_v59 }
 0xcca   :  { %v2168_v19 = vsel %vm50_vm0, %v2162_v60, 0.0  ;;  %v2163_v62 = vmul.f32 %v2157_v21, %v2157_v21 }
 0xccb   :  { %2169 = vadd.xlane.f32.xlu1 %v2168_v19 }
 0xccc   :  { %v2171_v8 = vsel %vm50_vm0, %v2163_v62, 0.0 }
 0xccd   :  { %2172 = vadd.xlane.f32.xlu0 %v2171_v8 }
 0xcfa   :  { %v2140_v1 = vpop.xlane.xlu1 %2139 }
 0xcfb   :  { %v2152_v36 = vmul.f32 0.03125, %v2140_v1 }
 0xcfc   :  { %v2143_v3 = vpop.xlane.xlu0 %2142 }
 0xcfd   :  { %v2158_v0 = vsub.f32 %v2128_v11, %v2152_v36  ;;  %v2153_v41 = vmul.f32 0.03125, %v2143_v3 }
 0xcff   :  { %v2159_v26 = vsub.f32 %v2129_v55, %v2153_v41  ;;  %v2164_v25 = vmul.f32 %v2158_v0, %v2158_v0  ;;  %v2213_v55 = vrot.slane %v5825_v29, %v2212_v39 }
 0xd01   :  { %v2174_v45 = vsel %vm50_vm0, %v2164_v25, 0.0  ;;  %v2165_v5 = vmul.f32 %v2159_v26, %v2159_v26 }
 0xd02   :  { %2175 = vadd.xlane.f32.xlu1 %v2174_v45  ;;  %v2146_v54 = vpop.xlane.xlu1 %2145 }
 0xd03   :  { %v2154_v61 = vmul.f32 0.03125, %v2146_v54  ;;  %v2177_v7 = vsel %vm50_vm0, %v2165_v5, 0.0 }
 0xd04   :  { %2178 = vadd.xlane.f32.xlu0 %v2177_v7  ;;  %v2149_v15 = vpop.xlane.xlu0 %2148 }
 0xd05   :  { %v2160_v18 = vsub.f32 %v2130_v51, %v2154_v61  ;;  %v2155_v17 = vmul.f32 0.03125, %v2149_v15 }
 0xd07   :  { %v2161_v30 = vsub.f32 %v2131_v12, %v2155_v17  ;;  %v2166_v24 = vmul.f32 %v2160_v18, %v2160_v18 }
 0xd09   :  { %v2180_v20 = vsel %vm50_vm0, %v2166_v24, 0.0  ;;  %v2167_v23 = vmul.f32 %v2161_v30, %v2161_v30 }
 0xd0a   :  { %2181 = vadd.xlane.f32.xlu1 %v2180_v20 }
 0xd0b   :  { %v2183_v27 = vsel %vm50_vm0, %v2167_v23, 0.0 }
 0xd0c   :  { %2184 = vadd.xlane.f32.xlu0 %v2183_v27 }
 0xd58   :  { %v2170_v31 = vpop.xlane.xlu1 %2169 }
 0xd59   :  { %v2186_v46 = vmul.f32 0.03125, %v2170_v31 }
 0xd5a   :  { %v2173_v34 = vpop.xlane.xlu0 %2172 }
 0xd5b   :  { %v2192_v38 = vadd.f32 1e-12, %v2186_v46  ;;  %v2187_v33 = vmul.f32 0.03125, %v2173_v34 }
 0xd5d   :  { %5211 = vrsqrt.f32 %v2192_v38  ;;  %v2193_v11 = vadd.f32 1e-12, %v2187_v33 }
 0xd5f   :  { %5213 = vrsqrt.f32 %v2193_v11 }
 0xd67   :  { %v5212_v56 = vpop.eup %5211 }
 0xd68   :  { %v2204_v40 = vmul.f32 %v5212_v56, %v2156_v59 }
 0xd69   :  { %v5214_v32 = vpop.eup %5213 }
 0xd6a   :  { %v2214_v9 = vmul.f32 %v2213_v55, %v2204_v40  ;;  %v2205_v49 = vmul.f32 %v5214_v32, %v2157_v21 }
 0xd6c   :  { %v2215_v51 = vmul.f32 %v2213_v55, %v2205_v49  ;;  %v5956_v10 = vadd.f32 %v2223_v47, %v2214_v9 }
 0xd6e   :  { %v5958_v12 = vadd.f32 %v2223_v47, %v2215_v51 }
 0xd70   :  { %v2242_v50 = vpack.c.bf16 %v5958_v12, %v5956_v10 }
 0xd72   :  { %4850 = vmatmul.mubr.msk.bf16.vlgmr.msra.gmra.mrb[68].mxu0 %vm50_vm0, %v2242_v50 }
 0xd73   :  { %4853 = vmatprep.mubr.msk.bf16.mxu0 %vm5310_vm1, %v5309_v42 }
 0xd8f   :  { %v2176_v16 = vpop.xlane.xlu1 %2175 }
 0xd90   :  { %v2188_v52 = vmul.f32 0.03125, %v2176_v16 }
 0xd91   :  { %v2179_v57 = vpop.xlane.xlu0 %2178 }
 0xd92   :  { %v2194_v59 = vadd.f32 1e-12, %v2188_v52  ;;  %v2189_v29 = vmul.f32 0.03125, %v2179_v57 }
 0xd94   :  { %5215 = vrsqrt.f32 %v2194_v59  ;;  %v2195_v37 = vadd.f32 1e-12, %v2189_v29 }
 0xd96   :  { %5217 = vrsqrt.f32 %v2195_v37 }
 0xd97   :  { %v2182_v21 = vpop.xlane.xlu1 %2181 }
 0xd98   :  { %v2190_v60 = vmul.f32 0.03125, %v2182_v21 }
 0xd99   :  { %v2185_v19 = vpop.xlane.xlu0 %2184 }
 0xd9a   :  { %v2196_v62 = vadd.f32 1e-12, %v2190_v60  ;;  %v2191_v8 = vmul.f32 0.03125, %v2185_v19 }
 0xd9c   :  { %5219 = vrsqrt.f32 %v2196_v62  ;;  %v2197_v22 = vadd.f32 1e-12, %v2191_v8 }
 0xd9e   :  { %v5216_v63 = vpop.eup %5215  ;;  %5221 = vrsqrt.f32 %v2197_v22 }
 0xd9f   :  { %v2206_v1 = vmul.f32 %v5216_v63, %v2158_v0 }
 0xda0   :  { %v5218_v36 = vpop.eup %5217 }
 0xda1   :  { %v2207_v3 = vmul.f32 %v5218_v36, %v2159_v26  ;;  %v2216_v41 = vmul.f32 %v2213_v55, %v2206_v1 }
 0xda3   :  { %v2217_v25 = vmul.f32 %v2213_v55, %v2207_v3  ;;  %v5965_v45 = vadd.f32 %v2223_v47, %v2216_v41 }
 0xda5   :  { %v5967_v5 = vadd.f32 %v2223_v47, %v2217_v25 }
 0xda6   :  { %v5220_v54 = vpop.eup %5219 }
 0xda7   :  { %v2208_v61 = vmul.f32 %v5220_v54, %v2160_v18  ;;  %v2243_v7 = vpack.c.bf16 %v5967_v5, %v5965_v45  ;;  %v4407_v18 = vld [vmem:[%s6425_s4 + $0x1] ss:$0 sm:$0xff] }
 0xda8   :  { %v5222_v15 = vpop.eup %5221 }
 0xda9   :  { %v2209_v17 = vmul.f32 %v5222_v15, %v2161_v30  ;;  %4854 = vmatmul.mubr.msk.bf16.gmra.mrb[72].mxu0 %vm50_vm0, %v2243_v7  ;;  %v2218_v24 = vmul.f32 %v2213_v55, %v2208_v61 }
 0xdaa   :  { %4857 = vmatprep.mubr.msk.bf16.mxu0 %vm5310_vm1, %v5309_v42 }
 0xdab   :  { %v2219_v0 = vmul.f32 %v2213_v55, %v2209_v17  ;;  %v5974_v26 = vadd.f32 %v2223_v47, %v2218_v24 }
 0xdad   :  { %v5976_v20 = vadd.f32 %v2223_v47, %v2219_v0 }
 0xdaf   :  { %v2244_v23 = vpack.c.bf16 %v5976_v20, %v5974_v26 }
 0xdb1   :  { %4858 = vmatmul.mubr.msk.bf16.gmra.mrb[76].mxu0 %vm50_vm0, %v2244_v23 }
 0xdb2   :  { %4869 = vmatprep.mubr.msk.bf16.mxu0 %vm5310_vm1, %v5309_v42 }
 0xe45   :  { %v2308_v30 = vpop.f32.mrb[68].mxu0 }
 0xe46   :  { %v2309_v27 = vadd.f32 %v4407_v18, %v2308_v30  ;;  %v4851_v31 = vpop.f32.mrb[69].mxu0 }
 0xe47   :  { %v2311_v46 = vpop.f32.mrb[70].mxu0 }
 0xe48   :  { %v5986_v34 = vpack.c.bf16 %v2309_v27, %v2309_v27  ;;  %v2312_v38 = vadd.f32 %v4407_v18, %v2311_v46  ;;  %v4852_v33 = vpop.f32.mrb[71].mxu0 }
 0xe4a   :  { %v5988_v11 = vpack.c.bf16 %v2312_v38, %v2312_v38  ;;  %2349 = vrot.lane.b32.xlu1 %v5986_v34, %s5311_s23 }
 0xe4c   :  { %2397 = vrot.lane.b32.xlu0 %v5988_v11, %s5311_s23 }
 0xe7c   :  { %v2316_v55 = vpop.f32.mrb[72].mxu0 }
 0xe7d   :  { %v2317_v56 = vadd.f32 %v4407_v18, %v2316_v55  ;;  %v4855_v40 = vpop.f32.mrb[73].mxu0 }
 0xe7e   :  { %v2319_v32 = vpop.f32.mrb[74].mxu0 }
 0xe7f   :  { %v5994_v47 = vpack.c.bf16 %v2317_v56, %v2317_v56  ;;  %v2320_v9 = vadd.f32 %v4407_v18, %v2319_v32  ;;  %v4856_v49 = vpop.f32.mrb[75].mxu0 }
 0xe81   :  { %2445 = vrot.lane.b32.xlu1 %v5994_v47, %s5311_s23  ;;  %v5998_v51 = vpack.c.bf16 %v2320_v9, %v2320_v9 }
 0xe84   :  { %v2324_v50 = vpop.f32.mrb[76].mxu0 }
 0xe85   :  { %v2325_v16 = vadd.f32 %v4407_v18, %v2324_v50  ;;  %2493 = vrot.lane.b32.xlu1 %v5998_v51, %s5311_s23  ;;  %v4859_v52 = vpop.f32.mrb[77].mxu0 }
 0xe86   :  { %v2327_v57 = vpop.f32.mrb[78].mxu0 }
 0xe87   :  { %v6002_v59 = vpack.c.bf16 %v2325_v16, %v2325_v16  ;;  %v2328_v29 = vadd.f32 %v4407_v18, %v2327_v57  ;;  %v4860_v37 = vpop.f32.mrb[79].mxu0 }
 0xe89   :  { %v6004_v21 = vpack.c.bf16 %v2328_v29, %v2328_v29  ;;  %2541 = vrot.lane.b32.xlu1 %v6002_v59, %s5311_s23 }
 0xe8b   :  { %2589 = vrot.lane.b32.xlu0 %v6004_v21, %s5311_s23 }
 0xe8d   :  { %2709 = vrot.lane.b32.xlu1 %v5986_v34, %s5313_s1 }
 0xebc   :  { %v2350_v60 = vpop.permute.xlu1 %2349 }
 0xebd   :  { %v2355_v19 = vsel %vm346_vm2, %v2350_v60, 0 }
 0xebe   :  { %4862 = vmatpush3.bf16.xpose.msra.mxu1 %v2355_v19  ;;  %v2398_v62 = vpop.permute.xlu0 %2397 }
 0xebf   :  { %v2403_v8 = vsel %vm346_vm2, %v2398_v62, 0  ;;  %4873 = vmatprep.subr.bf16.mxu1 %v5309_v42 }
 0xec0   :  { %4868 = vmatpush3.bf16.xpose.msra.mxu0 %v2403_v8 }
 0xec1   :  { %4879 = vmatprep.subr.bf16.mxu0 %v5309_v42 }
 0xec5   :  { %4864 = vmatmul.mubr.msk.bf16.vlgmr.msra.gmra.mrb[76].mxu1 %vm346_vm2, %v5986_v34 }
 0xec6   :  { %4875 = vmatprep.mubr.msk.bf16.mxu1 %vm5310_vm1, %v5309_v42 }
 0xec7   :  { %4870 = vmatmul.mubr.msk.bf16.vlgmr.msra.gmra.mrb[80].mxu0 %vm346_vm2, %v5988_v11 }
 0xec8   :  { %4881 = vmatprep.mubr.msk.bf16.mxu0 %vm5310_vm1, %v5309_v42 }
 0xef3   :  { %v2446_v22 = vpop.permute.xlu1 %2445 }
 0xef4   :  { %v2451_v63 = vsel %vm346_vm2, %v2446_v22, 0 }
 0xef5   :  { %4874 = vmatpush3.bf16.xpose.msra.mxu1 %v2451_v63 }
 0xef6   :  { %4885 = vmatprep.subr.bf16.mxu1 %v5309_v42 }
 0xef7   :  { %v2494_v1 = vpop.permute.xlu1 %2493 }
 0xef8   :  { %v2499_v36 = vsel %vm346_vm2, %v2494_v1, 0 }
 0xef9   :  { %4880 = vmatpush3.bf16.xpose.msra.mxu0 %v2499_v36 }
 0xefa   :  { %4891 = vmatprep.subr.bf16.mxu0 %v5309_v42 }
 0xefb   :  { %v2542_v3 = vpop.permute.xlu1 %2541 }
 0xefc   :  { %v2547_v41 = vsel %vm346_vm2, %v2542_v3, 0  ;;  %4876 = vmatmul.mubr.msk.bf16.vlgmr.msra.gmra.mrb[80].mxu1 %vm346_vm2, %v5994_v47 }
 0xefd   :  { %4886 = vmatpush3.bf16.xpose.msra.mxu1 %v2547_v41  ;;  %v2590_v25 = vpop.permute.xlu0 %2589  ;;  %4887 = vmatprep.mubr.msk.bf16.mxu1 %vm5310_vm1, %v5309_v42 }
 0xefe   :  { %4897 = vmatprep.subr.bf16.mxu1 %v5309_v42  ;;  %v2595_v54 = vsel %vm346_vm2, %v2590_v25, 0 }
 0xeff   :  { %v2710_v61 = vpop.permute.xlu1 %2709 }
 0xf00   :  { %4882 = vmatmul.mubr.msk.bf16.vlgmr.msra.gmra.mrb[84].mxu0 %vm346_vm2, %v5998_v51  ;;  %v2715_v7 = vsel %vm711_vm4, %v2710_v61, 0 }
 0xf01   :  { %4892 = vmatpush3.bf16.xpose.msra.mxu0 %v2595_v54  ;;  %4893 = vmatprep.mubr.msk.bf16.mxu0 %vm5310_vm1, %v5309_v42 }
 0xf02   :  { %4903 = vmatprep.subr.bf16.mxu0 %v5309_v42 }
 0xf04   :  { %4888 = vmatmul.mubr.msk.bf16.vlgmr.msra.gmra.mrb[84].mxu1 %vm346_vm2, %v6002_v59 }
 0xf05   :  { %4898 = vmatpush3.bf16.msra.mxu1 %v2715_v7  ;;  %4899 = vmatprep.mubr.msk.bf16.mxu1 %vm5310_vm1, %v5309_v42 }
 0xf06   :  { %4909 = vmatprep.subr.bf16.mxu1 %v5309_v42 }
 0xf08   :  { %4894 = vmatmul.mubr.msk.bf16.vlgmr.msra.gmra.mrb[88].mxu0 %vm346_vm2, %v6004_v21 }
 0xf09   :  { %4905 = vmatprep.mubr.msk.bf16.mxu0 %vm5310_vm1, %v5309_v42 }
 0xf98   :  { %v2391_v15 = vpop.f32.mrb[76].mxu1 }
 0xf99   :  { %v2392_v17 = vadd.f32 %v2391_v15, %v5563_v14  ;;  %v4865_v24 = vpop.f32.mrb[77].mxu1 }
 0xf9a   :  { %v2394_v0 = vpop.f32.mrb[78].mxu1  ;;  %v2439_v23 = vpop.f32.mrb[80].mxu0 }
 0xf9b   :  { %v2440_v18 = vadd.f32 %v2439_v23, %v5568_v28  ;;  %v4866_v30 = vpop.f32.mrb[79].mxu1  ;;  %v4871_v27 = vpop.f32.mrb[81].mxu0  ;;  %v2637_v31 = vsel %vm633_vm3, %v2392_v17, -inf }
 0xf9c   :  { %v2442_v46 = vpop.f32.mrb[82].mxu0  ;;  %2638 = vmax.xlane.f32.xlu1 %v2637_v31 }
 0xf9d   :  { %v4872_v38 = vpop.f32.mrb[83].mxu0  ;;  %v2640_v33 = vsel %vm633_vm3, %v2440_v18, -inf }
 0xf9e   :  { %2641 = vmax.xlane.f32.xlu0 %v2640_v33 }
 0xfcf   :  { %v2487_v55 = vpop.f32.mrb[80].mxu1 }
 0xfd0   :  { %v2488_v56 = vadd.f32 %v2487_v55, %v5577_v48  ;;  %v4877_v40 = vpop.f32.mrb[81].mxu1 }
 0xfd1   :  { %v2490_v32 = vpop.f32.mrb[82].mxu1 }
 0xfd2   :  { %v4878_v9 = vpop.f32.mrb[83].mxu1  ;;  %v2643_v49 = vsel %vm633_vm3, %v2488_v56, -inf }
 0xfd3   :  { %v2535_v50 = vpop.f32.mrb[84].mxu0  ;;  %2644 = vmax.xlane.f32.xlu0 %v2643_v49 }
 0xfd4   :  { %v2536_v16 = vadd.f32 %v2535_v50, %v5572_v35  ;;  %v4883_v52 = vpop.f32.mrb[85].mxu0 }
 0xfd5   :  { %v2538_v57 = vpop.f32.mrb[86].mxu0 }
 0xfd6   :  { %v4884_v29 = vpop.f32.mrb[87].mxu0  ;;  %v2646_v37 = vsel %vm633_vm3, %v2536_v16, -inf }
 0xfd7   :  { %2647 = vmax.xlane.f32.xlu0 %v2646_v37  ;;  %v2583_v60 = vpop.f32.mrb[84].mxu1 }
 0xfd8   :  { %v2584_v19 = vadd.f32 %v2583_v60, %v5587_v2  ;;  %v4889_v62 = vpop.f32.mrb[85].mxu1 }
 0xfd9   :  { %v2586_v8 = vpop.f32.mrb[86].mxu1 }
 0xfda   :  { %v4890_v22 = vpop.f32.mrb[87].mxu1  ;;  %v2649_v63 = vsel %vm633_vm3, %v2584_v19, -inf }
 0xfdb   :  { %v2631_v1 = vpop.f32.mrb[88].mxu0  ;;  %2650 = vmax.xlane.f32.xlu1 %v2649_v63 }
 0xfdc   :  { %v2632_v36 = vadd.f32 %v2631_v1, %v5582_v58  ;;  %v4895_v3 = vpop.f32.mrb[89].mxu0 }
 0xfdd   :  { %v2634_v41 = vpop.f32.mrb[90].mxu0 }
 0xfde   :  { %v4896_v25 = vpop.f32.mrb[91].mxu0  ;;  %v2652_v54 = vsel %vm633_vm3, %v2632_v36, -inf }
 0xfdf   :  { %2653 = vmax.xlane.f32.xlu0 %v2652_v54 }
 0xfec   :  { %2805 = vrot.lane.b32.xlu1 %v5994_v47, %s5313_s1 }
 0xff0   :  { %2853 = vrot.lane.b32.xlu1 %v5998_v51, %s5313_s1 }
 0xff4   :  { %2901 = vrot.lane.b32.xlu1 %v6002_v59, %s5313_s1 }
 0xff5   :  { %2757 = vrot.lane.b32.xlu0 %v5988_v11, %s5313_s1 }
0x1029   :  { %v2639_v61 = vpop.xlane.xlu1 %2638 }
0x102a   :  { %v2655_v7 = vsub.f32 %v2392_v17, %v2639_v61 }
0x102b   :  { %v2642_v15 = vpop.xlane.xlu0 %2641 }
0x102c   :  { %v2661_v24 = vmul.f32 1.442695, %v2655_v7  ;;  %v2656_v0 = vsub.f32 %v2440_v18, %v2642_v15 }
0x102e   :  { %5223 = vpow2.f32 %v2661_v24  ;;  %v2663_v23 = vmul.f32 1.442695, %v2656_v0 }
0x1030   :  { %5225 = vpow2.f32 %v2663_v23 }
0x1038   :  { %v5224_v30 = vpop.eup %5223 }
0x1039   :  { %v2673_v27 = vsel %vm633_vm3, %v5224_v30, 0.0 }
0x103a   :  { %v5226_v31 = vpop.eup %5225  ;;  %2674 = vadd.xlane.f32.xlu1 %v2673_v27 }
0x103b   :  { %v2676_v46 = vsel %vm633_vm3, %v5226_v31, 0.0 }
0x103c   :  { %2677 = vadd.xlane.f32.xlu0 %v2676_v46 }
0x1060   :  { %v2645_v38 = vpop.xlane.xlu0 %2644 }
0x1061   :  { %v2657_v33 = vsub.f32 %v2488_v56, %v2645_v38 }
0x1063   :  { %v2665_v55 = vmul.f32 1.442695, %v2657_v33 }
0x1064   :  { %v2648_v40 = vpop.xlane.xlu0 %2647 }
0x1065   :  { %5227 = vpow2.f32 %v2665_v55  ;;  %v2658_v17 = vsub.f32 %v2536_v16, %v2648_v40 }
0x1067   :  { %v2667_v32 = vmul.f32 1.442695, %v2658_v17 }
0x1068   :  { %v2651_v16 = vpop.xlane.xlu1 %2650 }
0x1069   :  { %5229 = vpow2.f32 %v2667_v32  ;;  %v2659_v29 = vsub.f32 %v2584_v19, %v2651_v16 }
0x106b   :  { %v2669_v37 = vmul.f32 1.442695, %v2659_v29 }
0x106c   :  { %v2654_v18 = vpop.xlane.xlu0 %2653  ;;  %v2806_v3 = vpop.permute.xlu1 %2805 }
0x106d   :  { %v2660_v60 = vsub.f32 %v2632_v36, %v2654_v18  ;;  %5231 = vpow2.f32 %v2669_v37  ;;  %v2811_v0 = vsel %vm711_vm4, %v2806_v3, 0 }
0x106f   :  { %v6072_v9 = vpop.eup %5227  ;;  %v2671_v62 = vmul.f32 1.442695, %v2660_v60 }
0x1070   :  { %v2758_v49 = vpop.permute.xlu0 %2757  ;;  %v2679_v50 = vsel %vm633_vm3, %v6072_v9, 0.0  ;;  %v2854_v19 = vpop.permute.xlu1 %2853 }
0x1071   :  { %v2763_v52 = vsel %vm711_vm4, %v2758_v49, 0  ;;  %2680 = vadd.xlane.f32.xlu1 %v2679_v50  ;;  %5233 = vpow2.f32 %v2671_v62  ;;  %v2859_v27 = vsel %vm711_vm4, %v2854_v19, 0 }
0x1072   :  { %4904 = vmatpush3.bf16.msra.mxu0 %v2763_v52 }
0x1073   :  { %v5230_v57 = vpop.eup %5229  ;;  %4915 = vmatprep.subr.bf16.mxu0 %v5309_v42 }
0x1074   :  { %v2682_v56 = vsel %vm633_vm3, %v5230_v57, 0.0  ;;  %v2902_v36 = vpop.permute.xlu1 %2901 }
0x1075   :  { %2683 = vadd.xlane.f32.xlu0 %v2682_v56  ;;  %v2907_v40 = vsel %vm711_vm4, %v2902_v36, 0 }
0x1077   :  { %v6083_v8 = vpop.eup %5231 }
0x1078   :  { %v2685_v22 = vsel %vm633_vm3, %v6083_v8, 0.0 }
0x107b   :  { %v6087_v63 = vpop.eup %5233 }
0x107c   :  { %v2688_v1 = vsel %vm633_vm3, %v6087_v63, 0.0 }
0x1082   :  { %2999 = vrot.lane.b32.xlu1 %v5986_v34, %s5314_s26 }
0x108b   :  { %2949 = vrot.lane.b32.xlu0 %v6004_v21, %s5313_s1 }
0x10a6   :  { %2686 = vadd.xlane.f32.xlu1 %v2685_v22 }
0x10aa   :  { %2689 = vadd.xlane.f32.xlu0 %v2688_v1 }
0x10b7   :  { %2997 = vrot.lane.b32.xlu1 %v5986_v34, %s5315_s27 }
0x10bb   :  { %3099 = vrot.lane.b32.xlu1 %v5994_v47, %s5314_s26 }
0x10bf   :  { %3097 = vrot.lane.b32.xlu1 %v5994_v47, %s5315_s27 }
0x10c0   :  { %3049 = vrot.lane.b32.xlu0 %v5988_v11, %s5314_s26 }
0x10c3   :  { %3199 = vrot.lane.b32.xlu1 %v6002_v59, %s5314_s26 }
0x10c4   :  { %3047 = vrot.lane.b32.xlu0 %v5988_v11, %s5315_s27 }
0x10c7   :  { %3197 = vrot.lane.b32.xlu1 %v6002_v59, %s5315_s27  ;;  %v2675_v41 = vpop.xlane.xlu1 %2674 }
0x10c8   :  { %5235 = vrcp.f32 %v2675_v41  ;;  %3149 = vrot.lane.b32.xlu0 %v5998_v51, %s5314_s26 }
0x10c9   :  { %v2678_v25 = vpop.xlane.xlu0 %2677 }
0x10ca   :  { %5237 = vrcp.f32 %v2678_v25 }
0x10cc   :  { %3147 = vrot.lane.b32.xlu0 %v5998_v51, %s5315_s27 }
0x10d0   :  { %3249 = vrot.lane.b32.xlu0 %v6004_v21, %s5314_s26 }
0x10d2   :  { %v5236_v54 = vpop.eup %5235 }
0x10d3   :  { %v2692_v61 = vmul.f32 %v5236_v54, %v5224_v30 }
0x10d4   :  { %v5238_v7 = vpop.eup %5237  ;;  %3247 = vrot.lane.b32.xlu0 %v6004_v21, %s5315_s27 }
0x10d5   :  { %v2694_v15 = vmul.f32 %v5238_v7, %v5226_v31  ;;  %v2703_v24 = vpack.c.bf16 %v2692_v61, %v2692_v61 }
0x10d7   :  { %4900 = vmatmul.mubr.msk.bf16.vlgmr.msra.gmra.mrb[88].mxu1 %vm633_vm3, %v2703_v24  ;;  %v2704_v23 = vpack.c.bf16 %v2694_v15, %v2694_v15 }
0x10d8   :  { %4910 = vmatpush3.bf16.msra.mxu1 %v2811_v0  ;;  %4911 = vmatprep.mubr.msk.bf16.mxu1 %vm5310_vm1, %v5309_v42 }
0x10d9   :  { %4906 = vmatmul.mubr.msk.bf16.vlgmr.msra.gmra.mrb[92].mxu0 %vm633_vm3, %v2704_v23  ;;  %4921 = vmatprep.subr.bf16.mxu1 %v5309_v42 }
0x10da   :  { %4916 = vmatpush3.bf16.msra.mxu0 %v2859_v27  ;;  %4917 = vmatprep.mubr.msk.bf16.mxu0 %vm5310_vm1, %v5309_v42 }
0x10db   :  { %4927 = vmatprep.subr.bf16.mxu0 %v5309_v42 }
0x10fe   :  { %v2681_v30 = vpop.xlane.xlu1 %2680 }
0x10ff   :  { %5239 = vrcp.f32 %v2681_v30 }
0x1102   :  { %v2684_v31 = vpop.xlane.xlu0 %2683 }
0x1103   :  { %5241 = vrcp.f32 %v2684_v31 }
0x1106   :  { %v2950_v32 = vpop.permute.xlu0 %2949 }
0x1107   :  { %v2955_v49 = vsel %vm711_vm4, %v2950_v32, 0 }
0x1109   :  { %v5240_v46 = vpop.eup %5239 }
0x110a   :  { %v2696_v38 = vmul.f32 %v5240_v46, %v6072_v9  ;;  %v3000_v9 = vpop.permute.xlu1 %2999 }
0x110b   :  { %v3005_v22 = vsel %vm346_vm2, %v3000_v9, 0 }
0x110c   :  { %v2705_v33 = vpack.c.bf16 %v2696_v38, %v2696_v38 }
0x110d   :  { %v5242_v55 = vpop.eup %5241 }
0x110e   :  { %v2698_v17 = vmul.f32 %v5242_v55, %v5230_v57  ;;  %4912 = vmatmul.mubr.msk.bf16.vlgmr.msra.gmra.mrb[92].mxu1 %vm633_vm3, %v2705_v33 }
0x110f   :  { %4922 = vmatpush3.bf16.msra.mxu1 %v2907_v40  ;;  %4923 = vmatprep.mubr.msk.bf16.mxu1 %vm5310_vm1, %v5309_v42 }
0x1110   :  { %v2706_v18 = vpack.c.bf16 %v2698_v17, %v2698_v17  ;;  %4933 = vmatprep.subr.bf16.mxu1 %v5309_v42 }
0x1112   :  { %4918 = vmatmul.mubr.msk.bf16.vlgmr.msra.gmra.mrb[96].mxu0 %vm633_vm3, %v2706_v18 }
0x1113   :  { %4928 = vmatpush3.bf16.msra.mxu0 %v2955_v49  ;;  %4929 = vmatprep.mubr.msk.bf16.mxu0 %vm5310_vm1, %v5309_v42 }
0x1114   :  { %4939 = vmatprep.subr.bf16.mxu0 %v5309_v42 }
0x1133   :  { %v2687_v50 = vpop.xlane.xlu1 %2686 }
0x1134   :  { %5243 = vrcp.f32 %v2687_v50 }
0x1137   :  { %v2690_v52 = vpop.xlane.xlu0 %2689  ;;  %v2998_v16 = vpop.permute.xlu1 %2997 }
0x1138   :  { %5245 = vrcp.f32 %v2690_v52 }
0x113b   :  { %v3050_v57 = vpop.permute.xlu0 %3049  ;;  %v3100_v3 = vpop.permute.xlu1 %3099 }
0x113c   :  { %v3055_v36 = vsel %vm346_vm2, %v3050_v57, 0  ;;  %v3105_v41 = vsel %vm346_vm2, %v3100_v3, 0 }
0x113e   :  { %v5244_v56 = vpop.eup %5243 }
0x113f   :  { %v2700_v29 = vmul.f32 %v5244_v56, %v6083_v8  ;;  %v3048_v62 = vpop.permute.xlu0 %3047 }
0x1141   :  { %v2707_v37 = vpack.c.bf16 %v2700_v29, %v2700_v29 }
0x1142   :  { %v5246_v60 = vpop.eup %5245 }
0x1143   :  { %v2702_v1 = vmul.f32 %v5246_v60, %v6087_v63  ;;  %4924 = vmatmul.mubr.msk.bf16.vlgmr.msra.gmra.mrb[96].mxu1 %vm633_vm3, %v2707_v37  ;;  %v3150_v8 = vpop.permute.xlu0 %3149  ;;  %v3098_v63 = vpop.permute.xlu1 %3097 }
0x1144   :  { %4934 = vmatpush3.bf16.xpose.msra.mxu1 %v3005_v22  ;;  %4935 = vmatprep.mubr.msk.bf16.mxu1 %vm5310_vm1, %v5309_v42  ;;  %v3155_v54 = vsel %vm346_vm2, %v3150_v8, 0 }
0x1145   :  { %v2708_v19 = vpack.c.bf16 %v2702_v1, %v2702_v1  ;;  %4945 = vmatprep.subr.bf16.mxu1 %v5309_v42 }
0x1147   :  { %4930 = vmatmul.mubr.msk.bf16.vlgmr.msra.gmra.mrb[100].mxu0 %vm633_vm3, %v2708_v19  ;;  %v3148_v25 = vpop.permute.xlu0 %3147  ;;  %v3200_v61 = vpop.permute.xlu1 %3199 }
0x1148   :  { %4940 = vmatpush3.bf16.xpose.msra.mxu0 %v3055_v36  ;;  %4941 = vmatprep.mubr.msk.bf16.mxu0 %vm5310_vm1, %v5309_v42  ;;  %v3205_v7 = vsel %vm346_vm2, %v3200_v61, 0 }
0x1149   :  { %4951 = vmatprep.subr.bf16.mxu0 %v5309_v42 }
0x114b   :  { %4936 = vmatmul.mubr.msk.bf16.vlgmr.msra.gmra.mrb[100].mxu1 %vm346_vm2, %v2998_v16  ;;  %v3250_v15 = vpop.permute.xlu0 %3249  ;;  %v3198_v0 = vpop.permute.xlu1 %3197 }
0x114c   :  { %4946 = vmatpush3.bf16.xpose.msra.mxu1 %v3105_v41  ;;  %4947 = vmatprep.mubr.msk.bf16.mxu1 %vm5310_vm1, %v5309_v42  ;;  %v3255_v24 = vsel %vm346_vm2, %v3250_v15, 0 }
0x114d   :  { %4957 = vmatprep.subr.bf16.mxu1 %v5309_v42 }
0x114f   :  { %4942 = vmatmul.mubr.msk.bf16.vlgmr.msra.gmra.mrb[104].mxu0 %vm346_vm2, %v3048_v62  ;;  %v3248_v23 = vpop.permute.xlu0 %3247 }
0x1150   :  { %4952 = vmatpush3.bf16.xpose.msra.mxu0 %v3155_v54  ;;  %4953 = vmatprep.mubr.msk.bf16.mxu0 %vm5310_vm1, %v5309_v42 }
0x1151   :  { %4963 = vmatprep.subr.bf16.mxu0 %v5309_v42 }
0x1153   :  { %4948 = vmatmul.mubr.msk.bf16.vlgmr.msra.gmra.mrb[104].mxu1 %vm346_vm2, %v3098_v63 }
0x1154   :  { %4958 = vmatpush3.bf16.xpose.msra.mxu1 %v3205_v7  ;;  %4959 = vmatprep.mubr.msk.bf16.mxu1 %vm5310_vm1, %v5309_v42 }
0x1155   :  { %4969 = vmatprep.subr.bf16.mxu1 %v5309_v42 }
0x1157   :  { %4954 = vmatmul.mubr.msk.bf16.vlgmr.msra.gmra.mrb[108].mxu0 %vm346_vm2, %v3148_v25 }
0x1158   :  { %4964 = vmatpush3.bf16.xpose.msra.mxu0 %v3255_v24  ;;  %4965 = vmatprep.mubr.msk.bf16.mxu0 %vm5310_vm1, %v5309_v42 }
0x1159   :  { %4975 = vmatprep.subr.bf16.mxu0 %v5309_v42 }
0x115b   :  { %4960 = vmatmul.mubr.msk.bf16.vlgmr.msra.gmra.mrb[108].mxu1 %vm346_vm2, %v3198_v0 }
0x115c   :  { %4971 = vmatprep.mubr.msk.bf16.mxu1 %vm5310_vm1, %v5309_v42 }
0x115f   :  { %4966 = vmatmul.mubr.msk.bf16.vlgmr.msra.gmra.mrb[112].mxu0 %vm346_vm2, %v3248_v23 }
0x1160   :  { %4977 = vmatprep.mubr.msk.bf16.mxu0 %vm5310_vm1, %v5309_v42 }
0x11aa   :  { %v6172_v27 = vpop.f32.mrb[88].mxu1 }
0x11ab   :  { %v4901_v30 = vpop.f32.mrb[89].mxu1 }
0x11ac   :  { %v2754_v31 = vpop.f32.mrb[90].mxu1  ;;  %v6174_v46 = vpop.f32.mrb[92].mxu0 }
0x11ad   :  { %v4902_v38 = vpop.f32.mrb[91].mxu1  ;;  %v4907_v33 = vpop.f32.mrb[93].mxu0 }
0x11ae   :  { %v2802_v55 = vpop.f32.mrb[94].mxu0 }
0x11af   :  { %v4908_v40 = vpop.f32.mrb[95].mxu0 }
0x11e1   :  { %v6176_v17 = vpop.f32.mrb[92].mxu1 }
0x11e2   :  { %v4913_v32 = vpop.f32.mrb[93].mxu1 }
0x11e3   :  { %v2850_v18 = vpop.f32.mrb[94].mxu1 }
0x11e4   :  { %v4914_v49 = vpop.f32.mrb[95].mxu1 }
0x11e5   :  { %v6178_v9 = vpop.f32.mrb[96].mxu0 }
0x11e6   :  { %v4919_v50 = vpop.f32.mrb[97].mxu0 }
0x11e7   :  { %v2898_v52 = vpop.f32.mrb[98].mxu0 }
0x11e8   :  { %v4920_v57 = vpop.f32.mrb[99].mxu0 }
0x1216   :  { %v6180_v56 = vpop.f32.mrb[96].mxu1 }
0x1217   :  { %v4925_v16 = vpop.f32.mrb[97].mxu1 }
0x1218   :  { %v2946_v29 = vpop.f32.mrb[98].mxu1 }
0x1219   :  { %v4926_v37 = vpop.f32.mrb[99].mxu1 }
0x121a   :  { %v6182_v60 = vpop.f32.mrb[100].mxu0 }
0x121b   :  { %v4931_v62 = vpop.f32.mrb[101].mxu0 }
0x121c   :  { %v2994_v22 = vpop.f32.mrb[102].mxu0 }
0x121d   :  { %v4932_v1 = vpop.f32.mrb[103].mxu0 }
0x121e   :  { %v3041_v3 = vpop.f32.mrb[100].mxu1 }
0x121f   :  { %v3042_v19 = vadd.f32 %v3041_v3, %v5563_v14  ;;  %v4937_v36 = vpop.f32.mrb[101].mxu1 }
0x1220   :  { %v3044_v8 = vpop.f32.mrb[102].mxu1 }
0x1221   :  { %v4938_v63 = vpop.f32.mrb[103].mxu1  ;;  %v3297_v41 = vsel %vm633_vm3, %v3042_v19, -inf }
0x1222   :  { %v3091_v25 = vpop.f32.mrb[104].mxu0  ;;  %3298 = vmax.xlane.f32.xlu1 %v3297_v41 }
0x1223   :  { %v3092_v54 = vadd.f32 %v3091_v25, %v5568_v28  ;;  %v4943_v61 = vpop.f32.mrb[105].mxu0 }
0x1224   :  { %v3094_v7 = vpop.f32.mrb[106].mxu0 }
0x1225   :  { %v4944_v15 = vpop.f32.mrb[107].mxu0  ;;  %v3300_v24 = vsel %vm633_vm3, %v3092_v54, -inf }
0x1226   :  { %3301 = vmax.xlane.f32.xlu0 %v3300_v24  ;;  %v3141_v0 = vpop.f32.mrb[104].mxu1 }
0x1227   :  { %v3142_v23 = vadd.f32 %v3141_v0, %v5577_v48  ;;  %v4949_v30 = vpop.f32.mrb[105].mxu1 }
0x1228   :  { %v3144_v14 = vpop.f32.mrb[106].mxu1 }
0x1229   :  { %v4950_v31 = vpop.f32.mrb[107].mxu1  ;;  %v3303_v38 = vsel %vm633_vm3, %v3142_v23, -inf }
0x122a   :  { %v3191_v33 = vpop.f32.mrb[108].mxu0  ;;  %3304 = vmax.xlane.f32.xlu0 %v3303_v38 }
0x122b   :  { %v3192_v55 = vadd.f32 %v3191_v33, %v5572_v35  ;;  %v4955_v40 = vpop.f32.mrb[109].mxu0 }
0x122c   :  { %v3194_v28 = vpop.f32.mrb[110].mxu0 }
0x122d   :  { %v4956_v32 = vpop.f32.mrb[111].mxu0  ;;  %v3306_v18 = vsel %vm633_vm3, %v3192_v55, -inf }
0x122e   :  { %3307 = vmax.xlane.f32.xlu0 %v3306_v18  ;;  %v3241_v49 = vpop.f32.mrb[108].mxu1 }
0x122f   :  { %v3242_v50 = vadd.f32 %v3241_v49, %v5587_v2  ;;  %v4961_v52 = vpop.f32.mrb[109].mxu1 }
0x1230   :  { %v3244_v48 = vpop.f32.mrb[110].mxu1 }
0x1231   :  { %v4962_v57 = vpop.f32.mrb[111].mxu1  ;;  %v3309_v16 = vsel %vm633_vm3, %v3242_v50, -inf }
0x1232   :  { %v3291_v29 = vpop.f32.mrb[112].mxu0  ;;  %3310 = vmax.xlane.f32.xlu1 %v3309_v16 }
0x1233   :  { %v3292_v37 = vadd.f32 %v3291_v29, %v5582_v58  ;;  %v4967_v62 = vpop.f32.mrb[113].mxu0 }
0x1234   :  { %v3294_v35 = vpop.f32.mrb[114].mxu0 }
0x1235   :  { %v4968_v22 = vpop.f32.mrb[115].mxu0  ;;  %v3312_v1 = vsel %vm633_vm3, %v3292_v37, -inf }
0x1236   :  { %3313 = vmax.xlane.f32.xlu0 %v3312_v1 }
0x1243   :  { %3369 = vrot.lane.b32.xlu1 %v5986_v34, %s5316_s28 }
0x12af   :  { %v3299_v3 = vpop.xlane.xlu1 %3298 }
0x12b0   :  { %v3315_v2 = vsub.f32 %v3042_v19, %v3299_v3 }
0x12b2   :  { %v3321_v36 = vmul.f32 1.442695, %v3315_v2 }
0x12b3   :  { %v3302_v8 = vpop.xlane.xlu0 %3301 }
0x12b4   :  { %5247 = vpow2.f32 %v3321_v36  ;;  %v3316_v63 = vsub.f32 %v3092_v54, %v3302_v8 }
0x12b6   :  { %v3323_v41 = vmul.f32 1.442695, %v3316_v63 }
0x12b7   :  { %v3305_v34 = vpop.xlane.xlu0 %3304 }
0x12b8   :  { %5249 = vpow2.f32 %v3323_v41  ;;  %v3317_v54 = vsub.f32 %v3142_v23, %v3305_v34 }
0x12ba   :  { %v3325_v31 = vmul.f32 1.442695, %v3317_v54 }
0x12bb   :  { %v3308_v19 = vpop.xlane.xlu0 %3307 }
0x12bc   :  { %v3318_v30 = vsub.f32 %v3192_v55, %v3308_v19  ;;  %5251 = vpow2.f32 %v3325_v31 }
0x12be   :  { %v5248_v25 = vpop.eup %5247  ;;  %v3327_v33 = vmul.f32 1.442695, %v3318_v30 }
0x12bf   :  { %v3311_v61 = vpop.xlane.xlu1 %3310  ;;  %v3333_v58 = vsel %vm633_vm3, %v5248_v25, 0.0 }
0x12c0   :  { %3334 = vadd.xlane.f32.xlu1 %v3333_v58  ;;  %v3319_v38 = vsub.f32 %v3242_v50, %v3311_v61  ;;  %5253 = vpow2.f32 %v3327_v33 }
0x12c2   :  { %v5250_v7 = vpop.eup %5249  ;;  %v3329_v28 = vmul.f32 1.442695, %v3319_v38 }
0x12c3   :  { %v3370_v15 = vpop.permute.xlu1 %3369  ;;  %v3336_v24 = vsel %vm633_vm3, %v5250_v7, 0.0  ;;  %v3314_v14 = vpop.xlane.xlu0 %3313 }
0x12c4   :  { %v3375_v0 = vsel %vm711_vm4, %v3370_v15, 0  ;;  %3337 = vadd.xlane.f32.xlu0 %v3336_v24  ;;  %v3320_v40 = vsub.f32 %v3292_v37, %v3314_v14  ;;  %5255 = vpow2.f32 %v3329_v28  ;;  %v5117_v28 = vld [vmem:[%s6427_s5 + $0x10] sm:$0xff]  }
0x12c5   :  { %4970 = vmatpush3.bf16.msra.mxu1 %v3375_v0 }
0x12c6   :  { %4981 = vmatprep.subr.bf16.mxu1 %v5309_v42  ;;  %v3331_v32 = vmul.f32 1.442695, %v3320_v40 }
0x12c8   :  { %5257 = vpow2.f32 %v3331_v32  ;;  %v5118_v32 = vld [vmem:[%s6427_s5 + $0x18] sm:$0xff]  }
0x12d1   :  { %3465 = vrot.lane.b32.xlu1 %v5994_v47, %s5316_s28  ;;  %v5252_v47 = vpop.eup %5251 }
0x12d2   :  { %v3339_v23 = vsel %vm633_vm3, %v5252_v47, 0.0 }
0x12d5   :  { %3513 = vrot.lane.b32.xlu1 %v5998_v51, %s5316_s28  ;;  %v5254_v51 = vpop.eup %5253 }
0x12d6   :  { %v6208_v18 = vpop.eup %5255 }
0x12d7   :  { %v5258_v55 = vpop.eup %5257  ;;  %v3345_v50 = vsel %vm633_vm3, %v6208_v18, 0.0 }
0x12d8   :  { %v3348_v49 = vsel %vm633_vm3, %v5258_v55, 0.0 }
0x12da   :  { %3417 = vrot.lane.b32.xlu0 %v5988_v11, %s5316_s28  ;;  %v3342_v11 = vsel %vm633_vm3, %v5254_v51, 0.0 }
0x12f9   :  { %3343 = vadd.xlane.f32.xlu0 %v3342_v11  ;;  %3340 = vadd.xlane.f32.xlu1 %v3339_v23 }
0x12fd   :  { %3349 = vadd.xlane.f32.xlu0 %v3348_v49  ;;  %3346 = vadd.xlane.f32.xlu1 %v3345_v50 }
0x130e   :  { %3561 = vrot.lane.b32.xlu1 %v6002_v59, %s5316_s28 }
0x1313   :  { %3609 = vrot.lane.b32.xlu0 %v6004_v21, %s5316_s28 }
0x134d   :  { %v3335_v52 = vpop.xlane.xlu1 %3334 }
0x134e   :  { %5259 = vrcp.f32 %v3335_v52 }
0x1351   :  { %v3338_v48 = vpop.xlane.xlu0 %3337  ;;  %v3466_v37 = vpop.permute.xlu1 %3465 }
0x1352   :  { %5261 = vrcp.f32 %v3338_v48  ;;  %v3471_v59 = vsel %vm711_vm4, %v3466_v37, 0 }
0x1355   :  { %v3418_v57 = vpop.permute.xlu0 %3417  ;;  %v3514_v21 = vpop.permute.xlu1 %3513 }
0x1356   :  { %v3423_v16 = vsel %vm711_vm4, %v3418_v57, 0  ;;  %v3519_v2 = vsel %vm711_vm4, %v3514_v21, 0 }
0x1357   :  { %4976 = vmatpush3.bf16.msra.mxu0 %v3423_v16 }
0x1358   :  { %v5260_v29 = vpop.eup %5259  ;;  %4987 = vmatprep.subr.bf16.mxu0 %v5309_v42 }
0x1359   :  { %v3352_v62 = vmul.f32 %v5260_v29, %v5248_v25 }
0x135b   :  { %v3363_v35 = vpack.c.bf16 %v3352_v62, %v3352_v62 }
0x135c   :  { %v5262_v22 = vpop.eup %5261 }
0x135d   :  { %v3354_v1 = vmul.f32 %v5262_v22, %v5250_v7  ;;  %4972 = vmatmul.mubr.msk.bf16.vlgmr.msra.gmra.mrb[112].mxu1 %vm633_vm3, %v3363_v35 }
0x135e   :  { %4982 = vmatpush3.bf16.msra.mxu1 %v3471_v59  ;;  %4983 = vmatprep.mubr.msk.bf16.mxu1 %vm5310_vm1, %v5309_v42 }
0x135f   :  { %v3364_v3 = vpack.c.bf16 %v3354_v1, %v3354_v1  ;;  %4993 = vmatprep.subr.bf16.mxu1 %v5309_v42 }
0x1361   :  { %4978 = vmatmul.mubr.msk.bf16.vlgmr.msra.gmra.mrb[116].mxu0 %vm633_vm3, %v3364_v3 }
0x1362   :  { %4988 = vmatpush3.bf16.msra.mxu0 %v3519_v2  ;;  %4989 = vmatprep.mubr.msk.bf16.mxu0 %vm5310_vm1, %v5309_v42 }
0x1363   :  { %4999 = vmatprep.subr.bf16.mxu0 %v5309_v42 }
0x1386   :  { %v3344_v36 = vpop.xlane.xlu0 %3343  ;;  %v3341_v8 = vpop.xlane.xlu1 %3340 }
0x1387   :  { %5263 = vrcp.f32 %v3344_v36 }
0x1388   :  { %5265 = vrcp.f32 %v3341_v8 }
0x138a   :  { %v3350_v63 = vpop.xlane.xlu0 %3349  ;;  %v3347_v41 = vpop.xlane.xlu1 %3346 }
0x138b   :  { %5267 = vrcp.f32 %v3350_v63 }
0x138c   :  { %5269 = vrcp.f32 %v3347_v41 }
0x138e   :  { %v3610_v15 = vpop.permute.xlu0 %3609  ;;  %v3562_v24 = vpop.permute.xlu1 %3561 }
0x138f   :  { %v3615_v30 = vsel %vm711_vm4, %v3610_v15, 0  ;;  %v3567_v14 = vsel %vm711_vm4, %v3562_v24, 0 }
0x1391   :  { %v5264_v25 = vpop.eup %5263 }
0x1392   :  { %v5266_v61 = vpop.eup %5265  ;;  %v3358_v58 = vmul.f32 %v5264_v25, %v5254_v51 }
0x1393   :  { %v3356_v7 = vmul.f32 %v5266_v61, %v5252_v47 }
0x1394   :  { %v3366_v0 = vpack.c.bf16 %v3358_v58, %v3358_v58 }
0x1395   :  { %v5268_v34 = vpop.eup %5267  ;;  %v3365_v19 = vpack.c.bf16 %v3356_v7, %v3356_v7 }
0x1396   :  { %v5270_v54 = vpop.eup %5269  ;;  %4990 = vmatmul.mubr.msk.bf16.vlgmr.msra.gmra.mrb[120].mxu0 %vm633_vm3, %v3366_v0  ;;  %v3362_v31 = vmul.f32 %v5268_v34, %v5258_v55 }
0x1397   :  { %4984 = vmatmul.mubr.msk.bf16.vlgmr.msra.gmra.mrb[116].mxu1 %vm633_vm3, %v3365_v19  ;;  %5000 = vmatpush3.bf16.msra.mxu0 %v3615_v30  ;;  %v3360_v38 = vmul.f32 %v5270_v54, %v6208_v18 }
0x1398   :  { %4994 = vmatpush3.bf16.msra.mxu1 %v3567_v14  ;;  %4995 = vmatprep.mubr.msk.bf16.mxu1 %vm5310_vm1, %v5309_v42  ;;  %v3368_v33 = vpack.c.bf16 %v3362_v31, %v3362_v31 }
0x1399   :  { %5001 = vmatprep.mubr.msk.bf16.mxu0 %vm5310_vm1, %v5309_v42  ;;  %5005 = vmatprep.subr.bf16.mxu1 %v5309_v42  ;;  %v3367_v40 = vpack.c.bf16 %v3360_v38, %v3360_v38 }
0x139a   :  { %5021 = vmatprep.subr.bf16.mxu0 %v5309_v42 }
0x139e   :  { %5002 = vmatmul.mubr.msk.bf16.vlgmr.msra.gmra.mrb[124].mxu0 %vm633_vm3, %v3368_v33 }
0x139f   :  { %4996 = vmatmul.mubr.msk.bf16.vlgmr.msra.gmra.mrb[120].mxu1 %vm633_vm3, %v3367_v40  ;;  %5025 = vmatprep.mubr.msk.bf16.mxu0 %vm5310_vm1, %v5309_v42 }
0x13a0   :  { %5009 = vmatprep.mubr.msk.bf16.mxu1 %vm5310_vm1, %v5309_v42  ;;  %5006 = vmatpush3.bf16.msra.mxu1 %v5117_v28 }
0x13a1   :  { %5007 = vmatprep.subr.bf16.mxu1 %v5309_v42 }
0x13a4   :  { %5008 = vmatpush3.bf16.msra.mxu1 %v5118_v32 }
0x13a5   :  { %5037 = vmatprep.subr.bf16.mxu1 %v5309_v42 }
0x1430   :  { %v3411_v47 = vpop.f32.mrb[112].mxu1 }
0x1431   :  { %v4973_v51 = vpop.f32.mrb[113].mxu1 }
0x1432   :  { %v3414_v18 = vpop.f32.mrb[114].mxu1 }
0x1433   :  { %v4974_v11 = vpop.f32.mrb[115].mxu1 }
0x1434   :  { %v3459_v23 = vpop.f32.mrb[116].mxu0 }
0x1435   :  { %v5089_v55 = vpack.i.bf16 %v3459_v23, %v3411_v47  ;;  %v4979_v49 = vpop.f32.mrb[117].mxu0 }
0x1436   :  { %v3462_v50 = vpop.f32.mrb[118].mxu0 }
0x1437   :  { %v4980_v52 = vpop.f32.mrb[119].mxu0  ;;  %5090 = vrot.lane.b32.xlu1 %v5089_v55, %s5317_s0 }
0x1469   :  { %v3555_v48 = vpop.f32.mrb[120].mxu0 }
0x146a   :  { %v3507_v57 = vpop.f32.mrb[116].mxu1  ;;  %v4991_v16 = vpop.f32.mrb[121].mxu0 }
0x146b   :  { %v5094_v29 = vpack.i.bf16 %v3555_v48, %v3507_v57  ;;  %v4985_v37 = vpop.f32.mrb[117].mxu1  ;;  %v3558_v62 = vpop.f32.mrb[122].mxu0 }
0x146c   :  { %v3510_v35 = vpop.f32.mrb[118].mxu1  ;;  %v4992_v22 = vpop.f32.mrb[123].mxu0 }
0x146d   :  { %5095 = vrot.lane.b32.xlu0 %v5094_v29, %s5317_s0  ;;  %v4986_v1 = vpop.f32.mrb[119].mxu1 }
0x1471   :  { %v3651_v59 = vpop.f32.mrb[124].mxu0 }
0x1472   :  { %v3603_v21 = vpop.f32.mrb[120].mxu1  ;;  %v5003_v3 = vpop.f32.mrb[125].mxu0 }
0x1473   :  { %v5099_v2 = vpack.i.bf16 %v3651_v59, %v3603_v21  ;;  %v4997_v36 = vpop.f32.mrb[121].mxu1  ;;  %v3654_v8 = vpop.f32.mrb[126].mxu0 }
0x1474   :  { %v3606_v63 = vpop.f32.mrb[122].mxu1  ;;  %v5004_v41 = vpop.f32.mrb[127].mxu0 }
0x1475   :  { %5100 = vrot.lane.b32.xlu1 %v5099_v2, %s5317_s0  ;;  %v4998_v25 = vpop.f32.mrb[123].mxu1 }
0x14a9   :  { %v5091_v61 = vpop.permute.xlu1 %5090 }
0x14aa   :  { %v5093_v58 = vunpack.i.h.bf16 %v5091_v61  ;;  %v5092_v7 = vunpack.i.l.bf16 %v5091_v61 }
0x14ac   :  { %v3682_v15 = vsel %vm346_vm2, %v6174_v46, %v5093_v58  ;;  %v3681_v24 = vsel %vm346_vm2, %v6172_v27, %v5092_v7 }
0x14ad   :  { %v3687_v0 = vpack.c.bf16 %v3682_v15, %v3681_v24  ;;  %v5120_v24 = vld [vmem:[%s6429_s6 + $0x18] sm:$0xff]  }
0x14af   :  { %5010 = vmatmul.mubr.msk.bf16.vlgmr.msra.gmra.mrb[124].mxu1 %vm50_vm0, %v3687_v0 }
0x14b0   :  { %5013 = vmatprep.mubr.msk.bf16.mxu1 %vm5310_vm1, %v5309_v42 }
0x14df   :  { %v5096_v34 = vpop.permute.xlu0 %5095 }
0x14e0   :  { %v5098_v19 = vunpack.i.h.bf16 %v5096_v34  ;;  %v5097_v54 = vunpack.i.l.bf16 %v5096_v34 }
0x14e2   :  { %v3684_v30 = vsel %vm346_vm2, %v6178_v9, %v5098_v19  ;;  %v3683_v14 = vsel %vm346_vm2, %v6176_v17, %v5097_v54  ;;  %v6283_v17 = vld [vmem:[%s6428_s9 + $0x8] sm:$0x3f] }
0x14e3   :  { %v3688_v31 = vpack.c.bf16 %v3684_v30, %v3683_v14  ;;  %v3693_v9 = vrot.slane %v6283_v17, %v5560_v13 }
0x14e5   :  { %5014 = vmatmul.mubr.msk.bf16.gmra.mrb[128].mxu1 %vm50_vm0, %v3688_v31 }
0x14e6   :  { %5017 = vmatprep.mubr.msk.bf16.mxu1 %vm5310_vm1, %v5309_v42 }
0x14e7   :  { %v5101_v27 = vpop.permute.xlu1 %5100 }
0x14e8   :  { %v5103_v46 = vunpack.i.h.bf16 %v5101_v27  ;;  %v5102_v38 = vunpack.i.l.bf16 %v5101_v27 }
0x14ea   :  { %v3686_v33 = vsel %vm346_vm2, %v6182_v60, %v5103_v46  ;;  %v3685_v40 = vsel %vm346_vm2, %v6180_v56, %v5102_v38 }
0x14eb   :  { %v3689_v28 = vpack.c.bf16 %v3686_v33, %v3685_v40 }
0x14ed   :  { %5018 = vmatmul.mubr.msk.bf16.gmra.mrb[132].mxu1 %vm50_vm0, %v3689_v28 }
0x14ee   :  { %5045 = vmatprep.mubr.msk.bf16.mxu1 %vm5310_vm1, %v5309_v42 }
0x1582   :  { %v3749_v32 = vpop.f32.mrb[124].mxu1 }
0x1583   :  { %v3750_v47 = vadd.f32 %v3749_v32, %v3693_v9  ;;  %v5011_v60 = vpop.f32.mrb[125].mxu1 }
0x1584   :  { %v3752_v51 = vpop.f32.mrb[126].mxu1 }
0x1585   :  { %v3772_v56 = vadd.f32 %v3750_v47, %v5956_v10  ;;  %v3753_v18 = vadd.f32 %v3752_v51, %v3693_v9  ;;  %v5012_v11 = vpop.f32.mrb[127].mxu1 }
0x1587   :  { %v3773_v23 = vadd.f32 %v3753_v18, %v5958_v12  ;;  %v3778_v55 = vsel %vm50_vm0, %v3772_v56, 0.0 }
0x1588   :  { %3779 = vadd.xlane.f32.xlu0 %v3778_v55 }
0x1589   :  { %v3781_v49 = vsel %vm50_vm0, %v3773_v23, 0.0 }
0x158a   :  { %3782 = vadd.xlane.f32.xlu1 %v3781_v49 }
0x15b8   :  { %v3757_v50 = vpop.f32.mrb[128].mxu1 }
0x15b9   :  { %v3758_v52 = vadd.f32 %v3757_v50, %v3693_v9  ;;  %v5015_v48 = vpop.f32.mrb[129].mxu1 }
0x15ba   :  { %v3760_v13 = vpop.f32.mrb[130].mxu1  ;;  %v3859_v48 = vrot.slane %v6283_v17, %v1856_v43 }
0x15bb   :  { %v3774_v57 = vadd.f32 %v3758_v52, %v5965_v45  ;;  %v3761_v16 = vadd.f32 %v3760_v13, %v3693_v9  ;;  %v5016_v29 = vpop.f32.mrb[131].mxu1 }
0x15bd   :  { %v3775_v10 = vadd.f32 %v3761_v16, %v5967_v5  ;;  %v3784_v37 = vsel %vm50_vm0, %v3774_v57, 0.0 }
0x15be   :  { %3785 = vadd.xlane.f32.xlu0 %v3784_v37  ;;  %v3869_v37 = vrot.slane %v6283_v17, %v1866_v44 }
0x15bf   :  { %v3787_v22 = vsel %vm50_vm0, %v3775_v10, 0.0 }
0x15c0   :  { %v3765_v12 = vpop.f32.mrb[132].mxu1 }
0x15c1   :  { %v3766_v62 = vadd.f32 %v3765_v12, %v3693_v9  ;;  %v5019_v35 = vpop.f32.mrb[133].mxu1 }
0x15c2   :  { %3788 = vadd.xlane.f32.xlu0 %v3787_v22  ;;  %v3768_v1 = vpop.f32.mrb[134].mxu1 }
0x15c3   :  { %v3776_v59 = vadd.f32 %v3766_v62, %v5974_v26  ;;  %v3769_v21 = vadd.f32 %v3768_v1, %v3693_v9  ;;  %v5020_v3 = vpop.f32.mrb[135].mxu1 }
0x15c5   :  { %v3777_v45 = vadd.f32 %v3769_v21, %v5976_v20  ;;  %v3790_v2 = vsel %vm50_vm0, %v3776_v59, 0.0  ;;  %v5119_v20 = vld [vmem:[%s6429_s6 + $0x10] sm:$0xff]  }
0x15c6   :  { %3791 = vadd.xlane.f32.xlu0 %v3790_v2  ;;  %5022 = vmatpush3.bf16.msra.mxu0 %v5119_v20 }
0x15c7   :  { %v3793_v5 = vsel %vm50_vm0, %v3777_v45, 0.0  ;;  %5023 = vmatprep.subr.bf16.mxu0 %v5309_v42 }
0x15c8   :  { %3794 = vadd.xlane.f32.xlu1 %v3793_v5 }
0x15ca   :  { %5024 = vmatpush3.bf16.msra.mxu0 %v5120_v24 }
0x15cb   :  { %5057 = vmatprep.subr.bf16.mxu0 %v5309_v42 }
0x1615   :  { %v3780_v36 = vpop.xlane.xlu0 %3779 }
0x1616   :  { %v3796_v8 = vmul.f32 0.03125, %v3780_v36 }
0x1617   :  { %v3783_v63 = vpop.xlane.xlu1 %3782 }
0x1618   :  { %v3802_v41 = vsub.f32 %v3772_v56, %v3796_v8  ;;  %v3797_v25 = vmul.f32 0.03125, %v3783_v63 }
0x161a   :  { %v3803_v61 = vsub.f32 %v3773_v23, %v3797_v25  ;;  %v3808_v58 = vmul.f32 %v3802_v41, %v3802_v41 }
0x161c   :  { %v3814_v7 = vsel %vm50_vm0, %v3808_v58, 0.0  ;;  %v3809_v26 = vmul.f32 %v3803_v61, %v3803_v61 }
0x161d   :  { %3815 = vadd.xlane.f32.xlu0 %v3814_v7 }
0x161e   :  { %v3817_v15 = vsel %vm50_vm0, %v3809_v26, 0.0 }
0x161f   :  { %3818 = vadd.xlane.f32.xlu1 %v3817_v15 }
0x164b   :  { %v3786_v0 = vpop.xlane.xlu0 %3785 }
0x164c   :  { %v3798_v34 = vmul.f32 0.03125, %v3786_v0 }
0x164e   :  { %v3804_v19 = vsub.f32 %v3774_v57, %v3798_v34 }
0x164f   :  { %v3789_v54 = vpop.xlane.xlu0 %3788 }
0x1650   :  { %v3799_v30 = vmul.f32 0.03125, %v3789_v54  ;;  %v3810_v14 = vmul.f32 %v3804_v19, %v3804_v19 }
0x1652   :  { %v3805_v31 = vsub.f32 %v3775_v10, %v3799_v30  ;;  %v3820_v27 = vsel %vm50_vm0, %v3810_v14, 0.0 }
0x1653   :  { %3821 = vadd.xlane.f32.xlu0 %v3820_v27  ;;  %v3792_v46 = vpop.xlane.xlu0 %3791 }
0x1654   :  { %v3800_v38 = vmul.f32 0.03125, %v3792_v46  ;;  %v3811_v33 = vmul.f32 %v3805_v31, %v3805_v31 }
0x1655   :  { %v3795_v40 = vpop.xlane.xlu1 %3794 }
0x1656   :  { %v3806_v28 = vsub.f32 %v3776_v59, %v3800_v38  ;;  %v3801_v9 = vmul.f32 0.03125, %v3795_v40  ;;  %v3823_v32 = vsel %vm50_vm0, %v3811_v33, 0.0  ;;  %v5121_v38 = vld [vmem:[%s6430_s8 + $0x20] sm:$0xff]   ;;  %v5122_v33 = vld [vmem:[%s6430_s8 + $0x28] sm:$0xff]   ;;  %v5123_v40 = vld [vmem:[%s6430_s8 + $0x30] sm:$0xff]  }
0x1657   :  { %3824 = vadd.xlane.f32.xlu1 %v3823_v32  ;;  %5038 = vmatpush3.bf16.msra.mxu1 %v5121_v38 }
0x1658   :  { %v3807_v47 = vsub.f32 %v3777_v45, %v3801_v9  ;;  %v3812_v60 = vmul.f32 %v3806_v28, %v3806_v28  ;;  %5039 = vmatprep.subr.bf16.mxu1 %v5309_v42  ;;  %v4453_v9 = vld [vmem:[%s6431_s7 + $0x1] ss:$0 sm:$0xff] }
0x165a   :  { %v3826_v51 = vsel %vm50_vm0, %v3812_v60, 0.0  ;;  %v3813_v56 = vmul.f32 %v3807_v47, %v3807_v47 }
0x165b   :  { %3827 = vadd.xlane.f32.xlu0 %v3826_v51  ;;  %5040 = vmatpush3.bf16.msra.mxu1 %v5122_v33 }
0x165c   :  { %v3829_v18 = vsel %vm50_vm0, %v3813_v56, 0.0  ;;  %5041 = vmatprep.subr.bf16.mxu1 %v5309_v42 }
0x165d   :  { %3830 = vadd.xlane.f32.xlu1 %v3829_v18 }
0x165f   :  { %5042 = vmatpush3.bf16.msra.mxu1 %v5123_v40 }
0x1660   :  { %5043 = vmatprep.subr.bf16.mxu1 %v5309_v42 }
0x16aa   :  { %v3816_v11 = vpop.xlane.xlu0 %3815 }
0x16ab   :  { %v3832_v23 = vmul.f32 0.03125, %v3816_v11 }
0x16ac   :  { %v3819_v55 = vpop.xlane.xlu1 %3818 }
0x16ad   :  { %v3838_v49 = vadd.f32 1e-12, %v3832_v23  ;;  %v3833_v50 = vmul.f32 0.03125, %v3819_v55 }
0x16af   :  { %5271 = vrsqrt.f32 %v3838_v49  ;;  %v3839_v52 = vadd.f32 1e-12, %v3833_v50 }
0x16b1   :  { %5273 = vrsqrt.f32 %v3839_v52 }
0x16b9   :  { %v5272_v13 = vpop.eup %5271 }
0x16ba   :  { %v3850_v57 = vmul.f32 %v5272_v13, %v3802_v41 }
0x16bb   :  { %v5274_v16 = vpop.eup %5273 }
0x16bc   :  { %v3860_v29 = vmul.f32 %v3859_v48, %v3850_v57  ;;  %v3851_v10 = vmul.f32 %v5274_v16, %v3803_v61 }
0x16be   :  { %v3861_v12 = vmul.f32 %v3859_v48, %v3851_v10  ;;  %v6319_v62 = vadd.f32 %v3869_v37, %v3860_v29 }
0x16c0   :  { %v6321_v35 = vadd.f32 %v3869_v37, %v3861_v12 }
0x16c2   :  { %v3876_v22 = vpack.c.bf16 %v6321_v35, %v6319_v62 }
0x16c4   :  { %5026 = vmatmul.mubr.msk.bf16.vlgmr.msra.gmra.mrb[128].mxu0 %vm50_vm0, %v3876_v22 }
0x16c5   :  { %5029 = vmatprep.mubr.msk.bf16.mxu0 %vm5310_vm1, %v5309_v42 }
0x16e0   :  { %v3822_v43 = vpop.xlane.xlu0 %3821 }
0x16e1   :  { %v3834_v1 = vmul.f32 0.03125, %v3822_v43 }
0x16e3   :  { %v3840_v59 = vadd.f32 1e-12, %v3834_v1 }
0x16e4   :  { %v3825_v21 = vpop.xlane.xlu1 %3824 }
0x16e5   :  { %5275 = vrsqrt.f32 %v3840_v59  ;;  %v3835_v3 = vmul.f32 0.03125, %v3825_v21 }
0x16e7   :  { %v3841_v44 = vadd.f32 1e-12, %v3835_v3 }
0x16e8   :  { %v3828_v45 = vpop.xlane.xlu0 %3827 }
0x16e9   :  { %5277 = vrsqrt.f32 %v3841_v44  ;;  %v3836_v2 = vmul.f32 0.03125, %v3828_v45 }
0x16ea   :  { %v3831_v5 = vpop.xlane.xlu1 %3830 }
0x16eb   :  { %v3842_v36 = vadd.f32 1e-12, %v3836_v2  ;;  %v3837_v8 = vmul.f32 0.03125, %v3831_v5 }
0x16ed   :  { %5279 = vrsqrt.f32 %v3842_v36  ;;  %v3843_v63 = vadd.f32 1e-12, %v3837_v8 }
0x16ef   :  { %v5276_v41 = vpop.eup %5275  ;;  %5281 = vrsqrt.f32 %v3843_v63 }
0x16f0   :  { %v3852_v25 = vmul.f32 %v5276_v41, %v3804_v19 }
0x16f2   :  { %v3862_v7 = vmul.f32 %v3859_v48, %v3852_v25 }
0x16f3   :  { %v5278_v61 = vpop.eup %5277 }
0x16f4   :  { %v3853_v58 = vmul.f32 %v5278_v61, %v3805_v31  ;;  %v6328_v24 = vadd.f32 %v3869_v37, %v3862_v7 }
0x16f6   :  { %v3863_v26 = vmul.f32 %v3859_v48, %v3853_v58 }
0x16f7   :  { %v5280_v15 = vpop.eup %5279 }
0x16f8   :  { %v3854_v20 = vmul.f32 %v5280_v15, %v3806_v28  ;;  %v6330_v0 = vadd.f32 %v3869_v37, %v3863_v26  ;;  %v5124_v28 = vld [vmem:[%s6430_s8 + $0x38] sm:$0xff]  }
0x16f9   :  { %v5282_v34 = vpop.eup %5281  ;;  %5044 = vmatpush3.bf16.msra.mxu1 %v5124_v28 }
0x16fa   :  { %v3855_v54 = vmul.f32 %v5282_v34, %v3807_v47  ;;  %v3877_v30 = vpack.c.bf16 %v6330_v0, %v6328_v24  ;;  %v3864_v14 = vmul.f32 %v3859_v48, %v3854_v20 }
0x16fc   :  { %5030 = vmatmul.mubr.msk.bf16.gmra.mrb[132].mxu0 %vm50_vm0, %v3877_v30  ;;  %v3865_v27 = vmul.f32 %v3859_v48, %v3855_v54  ;;  %v6335_v19 = vadd.f32 %v3869_v37, %v3864_v14 }
0x16fd   :  { %5033 = vmatprep.mubr.msk.bf16.mxu0 %vm5310_vm1, %v5309_v42 }
0x16fe   :  { %v6339_v31 = vadd.f32 %v3869_v37, %v3865_v27 }
0x1700   :  { %v3878_v46 = vpack.c.bf16 %v6339_v31, %v6335_v19 }
0x1704   :  { %5034 = vmatmul.mubr.msk.bf16.gmra.mrb[136].mxu0 %vm50_vm0, %v3878_v46 }
0x1705   :  { %5061 = vmatprep.mubr.msk.bf16.mxu0 %vm5310_vm1, %v5309_v42 }
0x1797   :  { %v3947_v32 = vpop.f32.mrb[128].mxu0 }
0x1798   :  { %v3948_v47 = vadd.f32 %v4453_v9, %v3947_v32  ;;  %v5027_v60 = vpop.f32.mrb[129].mxu0 }
0x1799   :  { %v3950_v51 = vpop.f32.mrb[130].mxu0 }
0x179a   :  { %v3970_v56 = vmul.f32 %v3948_v47, %v3948_v47  ;;  %v3951_v18 = vadd.f32 %v4453_v9, %v3950_v51  ;;  %v5028_v11 = vpop.f32.mrb[131].mxu0 }
0x179c   :  { %v3976_v23 = vmul.f32 %v3970_v56, %v3948_v47  ;;  %v3971_v55 = vmul.f32 %v3951_v18, %v3951_v18 }
0x179e   :  { %v3982_v49 = vmul.f32 0.044715, %v3976_v23  ;;  %v3977_v50 = vmul.f32 %v3971_v55, %v3951_v18 }
0x17a0   :  { %v3988_v52 = vadd.f32 %v3982_v49, %v3948_v47  ;;  %v3983_v48 = vmul.f32 0.044715, %v3977_v50 }
0x17a2   :  { %v3994_v13 = vmul.f32 0.7978846, %v3988_v52  ;;  %v3989_v57 = vadd.f32 %v3983_v48, %v3951_v18 }
0x17a4   :  { %5283 = vtanh.f32 %v3994_v13  ;;  %v3995_v16 = vmul.f32 0.7978846, %v3989_v57 }
0x17a6   :  { %5285 = vtanh.f32 %v3995_v16 }
0x17ae   :  { %v5284_v29 = vpop.eup %5283 }
0x17af   :  { %v4006_v10 = vadd.f32 1.0, %v5284_v29 }
0x17b0   :  { %v5286_v37 = vpop.eup %5285 }
0x17b1   :  { %v4012_v12 = vmul.f32 0.5, %v4006_v10  ;;  %v4007_v22 = vadd.f32 1.0, %v5286_v37 }
0x17b3   :  { %v4013_v43 = vmul.f32 0.5, %v4007_v22  ;;  %v4018_v1 = vmul.f32 %v4012_v12, %v3948_v47 }
0x17b5   :  { %v4019_v59 = vmul.f32 %v4013_v43, %v3951_v18 }
0x17b7   :  { %v4024_v21 = vpack.c.bf16 %v4019_v59, %v4018_v1  ;;  %v4039_v59 = vrot.slane %v6283_v17, %v2033_v4 }
0x17b9   :  { %5046 = vmatmul.mubr.msk.bf16.vlgmr.msra.gmra.mrb[136].mxu1 %vm2059_vm5, %v4024_v21 }
0x17ba   :  { %5049 = vmatprep.mubr.msk.bf16.mxu1 %vm5310_vm1, %v5309_v42 }
0x17cf   :  { %v3955_v3 = vpop.f32.mrb[132].mxu0 }
0x17d0   :  { %v3956_v44 = vadd.f32 %v4453_v9, %v3955_v3  ;;  %v5031_v45 = vpop.f32.mrb[133].mxu0 }
0x17d1   :  { %v3958_v2 = vpop.f32.mrb[134].mxu0 }
0x17d2   :  { %v3972_v5 = vmul.f32 %v3956_v44, %v3956_v44  ;;  %v3959_v36 = vadd.f32 %v4453_v9, %v3958_v2  ;;  %v5032_v8 = vpop.f32.mrb[135].mxu0 }
0x17d4   :  { %v3978_v63 = vmul.f32 %v3972_v5, %v3956_v44  ;;  %v3973_v41 = vmul.f32 %v3959_v36, %v3959_v36 }
0x17d6   :  { %v3984_v25 = vmul.f32 0.044715, %v3978_v63  ;;  %v3979_v61 = vmul.f32 %v3973_v41, %v3959_v36 }
0x17d7   :  { %v3963_v58 = vpop.f32.mrb[136].mxu0 }
0x17d8   :  { %v3990_v7 = vadd.f32 %v3984_v25, %v3956_v44  ;;  %v3985_v26 = vmul.f32 0.044715, %v3979_v61  ;;  %v3964_v15 = vadd.f32 %v4453_v9, %v3963_v58  ;;  %v5035_v20 = vpop.f32.mrb[137].mxu0 }
0x17d9   :  { %v3966_v34 = vpop.f32.mrb[138].mxu0 }
0x17da   :  { %v3996_v54 = vmul.f32 0.7978846, %v3990_v7  ;;  %v3991_v30 = vadd.f32 %v3985_v26, %v3959_v36  ;;  %v3974_v14 = vmul.f32 %v3964_v15, %v3964_v15  ;;  %v3967_v27 = vadd.f32 %v4453_v9, %v3966_v34  ;;  %v5036_v46 = vpop.f32.mrb[139].mxu0 }
0x17dc   :  { %5287 = vtanh.f32 %v3996_v54  ;;  %v3997_v38 = vmul.f32 0.7978846, %v3991_v30  ;;  %v3980_v33 = vmul.f32 %v3974_v14, %v3964_v15  ;;  %v3975_v40 = vmul.f32 %v3967_v27, %v3967_v27 }
0x17de   :  { %5289 = vtanh.f32 %v3997_v38  ;;  %v3986_v28 = vmul.f32 0.044715, %v3980_v33  ;;  %v3981_v32 = vmul.f32 %v3975_v40, %v3967_v27 }
0x17e0   :  { %v3992_v47 = vadd.f32 %v3986_v28, %v3964_v15  ;;  %v3987_v60 = vmul.f32 0.044715, %v3981_v32 }
0x17e2   :  { %v3998_v51 = vmul.f32 0.7978846, %v3992_v47  ;;  %v3993_v56 = vadd.f32 %v3987_v60, %v3967_v27 }
0x17e4   :  { %5291 = vtanh.f32 %v3998_v51  ;;  %v3999_v18 = vmul.f32 0.7978846, %v3993_v56 }
0x17e6   :  { %v5288_v11 = vpop.eup %5287  ;;  %5293 = vtanh.f32 %v3999_v18 }
0x17e7   :  { %v4008_v23 = vadd.f32 1.0, %v5288_v11 }
0x17e8   :  { %v5290_v55 = vpop.eup %5289 }
0x17e9   :  { %v4014_v49 = vmul.f32 0.5, %v4008_v23  ;;  %v4009_v9 = vadd.f32 1.0, %v5290_v55 }
0x17eb   :  { %v4015_v50 = vmul.f32 0.5, %v4009_v9  ;;  %v4020_v52 = vmul.f32 %v4014_v49, %v3956_v44 }
0x17ed   :  { %v4021_v48 = vmul.f32 %v4015_v50, %v3959_v36 }
0x17ee   :  { %v5292_v13 = vpop.eup %5291 }
0x17ef   :  { %v4010_v57 = vadd.f32 1.0, %v5292_v13  ;;  %v4025_v16 = vpack.c.bf16 %v4021_v48, %v4020_v52 }
0x17f0   :  { %v5294_v29 = vpop.eup %5293 }
0x17f1   :  { %v4016_v10 = vmul.f32 0.5, %v4010_v57  ;;  %v4011_v37 = vadd.f32 1.0, %v5294_v29  ;;  %5050 = vmatmul.mubr.msk.bf16.gmra.mrb[140].mxu1 %vm2059_vm5, %v4025_v16 }
0x17f2   :  { %5053 = vmatprep.mubr.msk.bf16.mxu1 %vm5310_vm1, %v5309_v42 }
0x17f3   :  { %v4017_v12 = vmul.f32 0.5, %v4011_v37  ;;  %v4022_v22 = vmul.f32 %v4016_v10, %v3964_v15 }
0x17f5   :  { %v4023_v43 = vmul.f32 %v4017_v12, %v3967_v27 }
0x17f7   :  { %v4026_v1 = vpack.c.bf16 %v4023_v43, %v4022_v22 }
0x17f9   :  { %5054 = vmatmul.mubr.msk.bf16.gmra.mrb[144].mxu1 %vm2059_vm5, %v4026_v1 }
0x188c   :  { %v4107_v21 = vpop.f32.mrb[136].mxu1 }
0x188d   :  { %v4108_v3 = vadd.f32 %v4107_v21, %v4039_v59  ;;  %v5047_v44 = vpop.f32.mrb[137].mxu1 }
0x188e   :  { %v4110_v45 = vpop.f32.mrb[138].mxu1  ;;  %v5126_v44 = vld [vmem:[%s6432_s10 + $0x8] sm:$0xff]  }
0x188f   :  { %v4130_v2 = vadd.f32 %v4108_v3, %v6319_v62  ;;  %v4111_v5 = vadd.f32 %v4110_v45, %v4039_v59  ;;  %v5048_v36 = vpop.f32.mrb[139].mxu1  ;;  %v5125_v3 = vld [vmem:[%s6432_s10] sm:$0xff]  }
0x1890   :  { %5058 = vmatpush3.bf16.msra.mxu0 %v5125_v3 }
0x1891   :  { %v4131_v8 = vadd.f32 %v4111_v5, %v6321_v35  ;;  %v4136_v63 = vsel %vm50_vm0, %v4130_v2, 0.0  ;;  %5059 = vmatprep.subr.bf16.mxu0 %v5309_v42 }
0x1892   :  { %4137 = vadd.xlane.f32.xlu0 %v4136_v63 }
0x1893   :  { %v4139_v41 = vsel %vm50_vm0, %v4131_v8, 0.0 }
0x1894   :  { %5060 = vmatpush3.bf16.msra.mxu0 %v5126_v44 }
0x1896   :  { %4140 = vadd.xlane.f32.xlu0 %v4139_v41 }
0x18c4   :  { %v4115_v25 = vpop.f32.mrb[140].mxu1 }
0x18c5   :  { %v4116_v61 = vadd.f32 %v4115_v25, %v4039_v59  ;;  %v5051_v58 = vpop.f32.mrb[141].mxu1 }
0x18c6   :  { %v4118_v4 = vpop.f32.mrb[142].mxu1 }
0x18c7   :  { %v4132_v7 = vadd.f32 %v4116_v61, %v6328_v24  ;;  %v4119_v26 = vadd.f32 %v4118_v4, %v4039_v59  ;;  %v5052_v15 = vpop.f32.mrb[143].mxu1 }
0x18c9   :  { %v4133_v62 = vadd.f32 %v4119_v26, %v6330_v0  ;;  %v4142_v20 = vsel %vm50_vm0, %v4132_v7, 0.0 }
0x18ca   :  { %4143 = vadd.xlane.f32.xlu1 %v4142_v20 }
0x18cb   :  { %v4145_v30 = vsel %vm50_vm0, %v4133_v62, 0.0 }
0x18cc   :  { %v4123_v35 = vpop.f32.mrb[144].mxu1 }
0x18cd   :  { %v4124_v34 = vadd.f32 %v4123_v35, %v4039_v59  ;;  %v5055_v54 = vpop.f32.mrb[145].mxu1  ;;  %v4217_v35 = vrot.slane %v6283_v17, %v2212_v39 }
0x18ce   :  { %4146 = vadd.xlane.f32.xlu1 %v4145_v30  ;;  %v4126_v14 = vpop.f32.mrb[146].mxu1 }
0x18cf   :  { %v4134_v27 = vadd.f32 %v4124_v34, %v6335_v19  ;;  %v4127_v46 = vadd.f32 %v4126_v14, %v4039_v59  ;;  %v5056_v38 = vpop.f32.mrb[147].mxu1 }
0x18d0   :  { %v4227_v38 = vrot.slane %v6283_v17, %v2222_v53 }
0x18d1   :  { %v4135_v24 = vadd.f32 %v4127_v46, %v6339_v31  ;;  %v4148_v33 = vsel %vm50_vm0, %v4134_v27, 0.0 }
0x18d2   :  { %4149 = vadd.xlane.f32.xlu0 %v4148_v33 }
0x18d3   :  { %v4151_v0 = vsel %vm50_vm0, %v4135_v24, 0.0 }
0x18d4   :  { %4152 = vadd.xlane.f32.xlu1 %v4151_v0 }
0x191f   :  { %v4138_v40 = vpop.xlane.xlu0 %4137 }
0x1920   :  { %v4154_v28 = vmul.f32 0.03125, %v4138_v40 }
0x1922   :  { %v6386_v32 = vsub.f32 %v4130_v2, %v4154_v28 }
0x1923   :  { %v4141_v47 = vpop.xlane.xlu0 %4140 }
0x1924   :  { %v4155_v60 = vmul.f32 0.03125, %v4141_v47  ;;  %v4166_v51 = vmul.f32 %v6386_v32, %v6386_v32 }
0x1926   :  { %v4161_v19 = vsub.f32 %v4131_v8, %v4155_v60  ;;  %v4172_v56 = vsel %vm50_vm0, %v4166_v51, 0.0 }
0x1927   :  { %4173 = vadd.xlane.f32.xlu0 %v4172_v56 }
0x1928   :  { %v4167_v31 = vmul.f32 %v4161_v19, %v4161_v19 }
0x192a   :  { %v4175_v18 = vsel %vm50_vm0, %v4167_v31, 0.0 }
0x192b   :  { %4176 = vadd.xlane.f32.xlu0 %v4175_v18 }
0x1957   :  { %v4144_v11 = vpop.xlane.xlu1 %4143 }
0x1958   :  { %v4156_v23 = vmul.f32 0.03125, %v4144_v11 }
0x195a   :  { %v4162_v55 = vsub.f32 %v4132_v7, %v4156_v23 }
0x195b   :  { %v4147_v49 = vpop.xlane.xlu1 %4146 }
0x195c   :  { %v4157_v9 = vmul.f32 0.03125, %v4147_v49  ;;  %v4168_v50 = vmul.f32 %v4162_v55, %v4162_v55 }
0x195e   :  { %v4163_v52 = vsub.f32 %v4133_v62, %v4157_v9  ;;  %v4178_v48 = vsel %vm50_vm0, %v4168_v50, 0.0 }
0x195f   :  { %v4150_v13 = vpop.xlane.xlu0 %4149  ;;  %4179 = vadd.xlane.f32.xlu1 %v4178_v48 }
0x1960   :  { %v4158_v57 = vmul.f32 0.03125, %v4150_v13  ;;  %v4169_v16 = vmul.f32 %v4163_v52, %v4163_v52 }
0x1961   :  { %v4153_v29 = vpop.xlane.xlu1 %4152 }
0x1962   :  { %v4164_v10 = vsub.f32 %v4134_v27, %v4158_v57  ;;  %v4159_v37 = vmul.f32 0.03125, %v4153_v29  ;;  %v4181_v12 = vsel %vm50_vm0, %v4169_v16, 0.0 }
0x1963   :  { %4182 = vadd.xlane.f32.xlu1 %v4181_v12 }
0x1964   :  { %v6394_v22 = vsub.f32 %v4135_v24, %v4159_v37  ;;  %v4170_v43 = vmul.f32 %v4164_v10, %v4164_v10 }
0x1966   :  { %v4184_v1 = vsel %vm50_vm0, %v4170_v43, 0.0  ;;  %v4171_v59 = vmul.f32 %v6394_v22, %v6394_v22 }
0x1967   :  { %4185 = vadd.xlane.f32.xlu0 %v4184_v1 }
0x1968   :  { %v4187_v21 = vsel %vm50_vm0, %v4171_v59, 0.0 }
0x1969   :  { %4188 = vadd.xlane.f32.xlu1 %v4187_v21 }
0x19b4   :  { %v4174_v45 = vpop.xlane.xlu0 %4173 }
0x19b5   :  { %v4190_v8 = vmul.f32 0.03125, %v4174_v45 }
0x19b7   :  { %v4196_v63 = vadd.f32 1e-12, %v4190_v8 }
0x19b8   :  { %v4177_v2 = vpop.xlane.xlu0 %4176 }
0x19b9   :  { %v4191_v5 = vmul.f32 0.03125, %v4177_v2 }
0x19bb   :  { %v4197_v36 = vadd.f32 1e-12, %v4191_v5 }
0x19bd   :  { %5295 = vrsqrt.f32 %v4197_v36  ;;  %v4474_v36 = vld [vmem:[%s6433_s11] ss:$0 sm:$0xff] }
0x19be   :  { %5297 = vrsqrt.f32 %v4196_v63 }
0x19c7   :  { %v5296_v42 = vpop.eup %5295 }
0x19c8   :  { %v4209_v15 = vmul.f32 %v5296_v42, %v4161_v19  ;;  %v5298_v30 = vpop.eup %5297 }
0x19c9   :  { %v4208_v24 = vmul.f32 %v5298_v30, %v6386_v32 }
0x19ca   :  { %v4219_v14 = vmul.f32 %v4217_v35, %v4209_v15 }
0x19cb   :  { %v4218_v47 = vmul.f32 %v4217_v35, %v4208_v24 }
0x19cc   :  { %v4229_v0 = vadd.f32 %v4227_v38, %v4219_v14 }
0x19cd   :  { %v4228_v18 = vadd.f32 %v4227_v38, %v4218_v47 }
0x19ce   :  { %v4235_v51 = vpack.c.bf16 %v4229_v0, %v4229_v0 }
0x19cf   :  { %v4234_v9 = vpack.c.bf16 %v4228_v18, %v4228_v18 }
0x19d0   :  { %v4258_v49 = vunpack.c.l.b16 %v4235_v51 }
0x19d1   :  { %v4257_v37 = vunpack.c.l.b16 %v4234_v9 }
0x19d2   :  { %v4263_v57 = vrot.slane %v4258_v49, 7 }
0x19d4   :  { %v4265_v1 = vsel %vm4264_vm6, %v4263_v57, %v4257_v37 }
0x19ec   :  { %v4180_v41 = vpop.xlane.xlu1 %4179 }
0x19ed   :  { %v4192_v25 = vmul.f32 0.03125, %v4180_v41 }
0x19ef   :  { %v4198_v61 = vadd.f32 1e-12, %v4192_v25 }
0x19f0   :  { %v4183_v58 = vpop.xlane.xlu1 %4182 }
0x19f1   :  { %5299 = vrsqrt.f32 %v4198_v61  ;;  %v4193_v4 = vmul.f32 0.03125, %v4183_v58 }
0x19f3   :  { %v4199_v7 = vadd.f32 1e-12, %v4193_v4 }
0x19f4   :  { %v4186_v26 = vpop.xlane.xlu0 %4185 }
0x19f5   :  { %5301 = vrsqrt.f32 %v4199_v7  ;;  %v4194_v62 = vmul.f32 0.03125, %v4186_v26 }
0x19f6   :  { %v4189_v20 = vpop.xlane.xlu1 %4188 }
0x19f7   :  { %v4200_v34 = vadd.f32 1e-12, %v4194_v62  ;;  %v4195_v54 = vmul.f32 0.03125, %v4189_v20 }
0x19f9   :  { %5303 = vrsqrt.f32 %v4200_v34  ;;  %v4201_v27 = vadd.f32 1e-12, %v4195_v54 }
0x19fb   :  { %v5300_v46 = vpop.eup %5299  ;;  %5305 = vrsqrt.f32 %v4201_v27 }
0x19fc   :  { %v4210_v33 = vmul.f32 %v5300_v46, %v4162_v55 }
0x19fe   :  { %v4220_v40 = vmul.f32 %v4217_v35, %v4210_v33 }
0x19ff   :  { %v5302_v28 = vpop.eup %5301 }
0x1a00   :  { %v4230_v39 = vadd.f32 %v4227_v38, %v4220_v40  ;;  %v4211_v60 = vmul.f32 %v5302_v28, %v4163_v52 }
0x1a02   :  { %v4236_v19 = vpack.c.bf16 %v4230_v39, %v4230_v39  ;;  %v4221_v56 = vmul.f32 %v4217_v35, %v4211_v60 }
0x1a03   :  { %v5304_v31 = vpop.eup %5303 }
0x1a04   :  { %v4231_v11 = vadd.f32 %v4227_v38, %v4221_v56  ;;  %v4212_v23 = vmul.f32 %v5304_v31, %v4164_v10  ;;  %v4259_v53 = vunpack.c.l.b16 %v4236_v19 }
0x1a05   :  { %v5306_v6 = vpop.eup %5305 }
0x1a06   :  { %v4237_v17 = vpack.c.bf16 %v4231_v11, %v4231_v11  ;;  %v4222_v32 = vmul.f32 %v4217_v35, %v4212_v23  ;;  %v4213_v55 = vmul.f32 %v5306_v6, %v6394_v22  ;;  %v4266_v52 = vrot.slane %v4259_v53, 6 }
0x1a08   :  { %v4260_v50 = vunpack.c.l.b16 %v4237_v17  ;;  %v4232_v48 = vadd.f32 %v4227_v38, %v4222_v32  ;;  %v4223_v13 = vmul.f32 %v4217_v35, %v4213_v55  ;;  %v4268_v59 = vsel %vm4267_vm7, %v4266_v52, %v4265_v1 }
0x1a0a   :  { %v4238_v16 = vpack.c.bf16 %v4232_v48, %v4232_v48  ;;  %v4233_v29 = vadd.f32 %v4227_v38, %v4223_v13  ;;  %v4269_v12 = vrot.slane %v4260_v50, 5 }
0x1a0c   :  { %v4261_v10 = vunpack.c.l.b16 %v4238_v16  ;;  %v4239_v43 = vpack.c.bf16 %v4233_v29, %v4233_v29  ;;  %v4271_v3 = vsel %vm4270_vm8, %v4269_v12, %v4268_v59 }
0x1a0e   :  { %v4272_v21 = vrot.slane %v4261_v10, 4  ;;  %v4262_v22 = vunpack.c.l.b16 %v4239_v43 }
0x1a10   :  { %v4275_v44 = vrot.slane %v4262_v22, 3  ;;  %v4274_v45 = vsel %vm4273_vm9, %v4272_v21, %v4271_v3 }
0x1a12   :  { %v4277_v2 = vsel %vm4276_vm10, %v4275_v44, %v4274_v45 }
0x1a13   :  { %v4278_v5 = vpack.c.b16 %v4277_v2, %v4277_v2 }
0x1a15   :  { %5062 = vmatmul.mubr.msk.bf16.vlgmr.msra.gmra.mrb[140].mxu0 %vm50_vm0, %v4278_v5 }
0x1ae8   :  { %v4328_v8 = vpop.f32.mrb[140].mxu0 }
0x1ae9   :  { %v4329_v63 = vadd.f32 %v4474_v36, %v4328_v8  ;;  %v5063_v41 = vpop.f32.mrb[141].mxu0 }
0x1aea   :  { %v4331_v25 = vpop.f32.mrb[142].mxu0 }
0x1aeb   :  { %5307 = vtanh.f32 %v4329_v63  ;;  %v5064_v61 = vpop.f32.mrb[143].mxu0 }
0x1af5   :  { %v5308_v58 = vpop.eup %5307 }
0x1af6   :  { %4336 = vst.msk [vmem:[%s6434_s12] sm:$0x3f] %vm4335_vm11, %v5308_v58 }

</bundles_post_ra>
